<compile_context>
chip_gen: v6e
topology: v6e:2x2x1
jax: 0.10.0
libtpu: 0.0.40
codegen_flags: <defaults>
</compile_context>

<pallas_src>
import functools

import jax
import jax.numpy as jnp
from jax.experimental import pallas as pl
from jax.experimental.pallas import tpu as pltpu


# ----------------------------------------------------------------------------
# helpers
# ----------------------------------------------------------------------------
def _round_up(x, m):
    return ((x + m - 1) // m) * m


def _vmem_capacity_bytes():
    try:
        info = pltpu.get_tpu_info()
        cap = getattr(info, "vmem_capacity_bytes", None)
        if cap:
            return int(cap)
    except Exception:
        pass
    return 64 * 1024 * 1024  # conservative fallback: v7x physical VMEM


def _pick_row_tile(n_rows, n_neighbor, dim, itemsize, budget_bytes):
    """Row tile for the fused per-iteration kernel.

    Uses *padded* lane width (last dim rounded up to 128), counts the output
    block, and assumes double buffering on every stream.
    """
    lanes = _round_up(max(dim, 1), 128)
    # self + user + out at `lanes` each; neigh + rel at n_neighbor*lanes each.
    per_row = (3 + 2 * n_neighbor) * lanes * itemsize
    per_row_db = 2 * per_row                      # double-buffered pipeline
    tr = 16
    for cand in (1024, 512, 256, 128, 64, 32, 16):
        if cand * per_row_db <= budget_bytes:
            tr = cand
            break
    # never tile wider than the (16-row padded) row count
    tr = min(tr, _round_up(n_rows, 16))
    # keep >= 2 row tiles when there is enough work so both v7x TensorCores
    # get a share of the "parallel" grid axis
    if n_rows >= 512:
        while tr > 16 and pl.cdiv(n_rows, tr) < 2:
            tr = _round_up(tr // 2, 16)
    return max(tr, 16)


def _fit_rows(x, rows):
    """Prefix-slice or zero-pad `x` along axis 0 to exactly `rows` rows."""
    have = x.shape[0]
    if have == rows:
        return x
    if have > rows:
        return x[:rows]
    pad = [(0, rows - have)] + [(0, 0)] * (x.ndim - 1)
    return jnp.pad(x, pad)


# ----------------------------------------------------------------------------
# Fused per-iteration aggregator kernel.
#
#   self_ref  : (tr, d)        self entity vectors (fused batch x hop rows)
#   neigh_ref : (tr*n, d)      neighbor entity vectors (row n*r+k = neighbor k of r)
#   rel_ref   : (tr*n, d)      neighbor relation vectors (same layout)
#   user_ref  : (tr, d)        per-row user embedding
#   w_ref     : (d, d)         Linear weight transposed (y = x @ W.T + b)
#   b_ref     : (1, d)         Linear bias (f32)
#   out_refs[0]: (tr, d)       aggregated output (post activation)
#   out_refs[1]: (tr, 1)       only when with_score: sigmoid(<user, item>)
# ----------------------------------------------------------------------------
def _kgcn_iter_kernel(self_ref, neigh_ref, rel_ref, user_ref, w_ref, b_ref,
                      *out_refs, act_name, with_score):
    out_ref = out_refs[0]
    tr, d = self_ref.shape
    n = neigh_ref.shape[0] // tr

    selfv = self_ref[...].astype(jnp.float32)                      # (tr, d)
    user = user_ref[...].astype(jnp.float32)                       # (tr, d)
    neigh = neigh_ref[...].astype(jnp.float32).reshape(tr, n, d)   # (tr, n, d)
    rel = rel_ref[...].astype(jnp.float32).reshape(tr, n, d)       # (tr, n, d)

    # --- user-relation attention: VPU multiply + reduce ---------------------
    # (a per-row 1xd @ dxn matmul would reload MXU weights every row, so this
    #  deliberately stays off the MXU)
    scores = jnp.sum(user[:, None, :] * rel, axis=-1)              # (tr, n)
    scores = scores - jnp.max(scores, axis=-1, keepdims=True)
    e = jnp.exp(scores)
    p = e / jnp.sum(e, axis=-1, keepdims=True)                     # exact divide

    # --- weighted neighbor aggregation (VPU mul + sublane reduce) -----------
    agg = jnp.sum(p[:, :, None] * neigh, axis=1)                   # (tr, d)

    # --- 'sum' aggregator: Linear(self + agg) -- the one real MXU matmul ----
    x = (selfv + agg).astype(w_ref.dtype)
    y = jnp.dot(x, w_ref[...], preferred_element_type=jnp.float32) + b_ref[...]
    y = jnp.tanh(y) if act_name == "tanh" else jax.nn.sigmoid(y)
    out_ref[...] = y.astype(out_ref.dtype)

    # --- fused final scoring (last iteration: rows == batch items) ----------
    if with_score:
        logit = jnp.sum(user * y, axis=-1, keepdims=True)          # (tr, 1)
        out_refs[1][...] = jax.nn.sigmoid(logit).astype(out_refs[1].dtype)


def _run_iteration(self_rows, neigh_rows, rel_rows, user_rows, w_t, bias,
                   *, act_name, with_score, tr, vmem_limit_bytes):
    rp, d = self_rows.shape
    n = neigh_rows.shape[0] // rp
    grid = (rp // tr,)

    kernel = functools.partial(_kgcn_iter_kernel, act_name=act_name,
                               with_score=with_score)

    in_specs = [
        pl.BlockSpec((tr, d), lambda g: (g, 0)),
        # TODO(synk): sweep pipeline_mode=pl.Buffered(3) on the two big streams
        # if an xprof trace shows exposed DMA after the bf16/layout changes.
        pl.BlockSpec((tr * n, d), lambda g: (g, 0)),
        pl.BlockSpec((tr * n, d), lambda g: (g, 0)),
        pl.BlockSpec((tr, d), lambda g: (g, 0)),
        pl.BlockSpec((d, d), lambda g: (0, 0)),
        pl.BlockSpec((1, d), lambda g: (0, 0)),
    ]
    out_shapes = [jax.ShapeDtypeStruct((rp, d), self_rows.dtype)]
    out_specs = [pl.BlockSpec((tr, d), lambda g: (g, 0))]
    if with_score:
        out_shapes.append(jax.ShapeDtypeStruct((rp, 1), jnp.float32))
        out_specs.append(pl.BlockSpec((tr, 1), lambda g: (g, 0)))

    return pl.pallas_call(
        kernel,
        out_shape=tuple(out_shapes) if with_score else out_shapes[0],
        grid_spec=pltpu.PrefetchScalarGridSpec(
            num_scalar_prefetch=0,
            grid=grid,
            in_specs=in_specs,
            out_specs=tuple(out_specs) if with_score else out_specs[0],
        ),
        compiler_params=pltpu.CompilerParams(
            dimension_semantics=("parallel",),
            vmem_limit_bytes=int(vmem_limit_bytes)),
    )(self_rows, neigh_rows, rel_rows, user_rows, w_t, bias)


# ----------------------------------------------------------------------------
# KGCN forward: glue in plain JAX, one fused Pallas kernel per iteration.
# ----------------------------------------------------------------------------
def kgcn_forward(params, adj_ent, adj_rel, u, v, *, n_iter, n_neighbor, dim,
                 compute_dtype=jnp.bfloat16):
    assert n_iter >= 1
    B = u.shape[0]
    n = n_neighbor

    # bf16 activations/embeddings halve HBM traffic; accumulation stays f32.
    usr = params["usr"].astype(compute_dtype)
    ent = params["ent"].astype(compute_dtype)
    rel_tab = params["rel"].astype(compute_dtype)
    w_t = params["agg_w"].T.astype(compute_dtype)           # y = x @ W.T + b
    bias = params["agg_b"].reshape(1, dim).astype(jnp.float32)

    user_emb = usr[u]                                        # (B, dim)

    # _get_neighbors: fixed-size adjacency expansion (XLA gathers)
    entities = [v.reshape(B, 1).astype(jnp.int32)]
    relations = []
    for h in range(n_iter):
        entities.append(adj_ent[entities[h]].reshape(B, -1))
        relations.append(adj_rel[entities[h]].reshape(B, -1))

    m = [B * n ** h for h in range(n_iter + 1)]              # rows per hop
    offs = [0]
    for h in range(n_iter + 1):
        offs.append(offs[-1] + m[h])

    itemsize = jnp.dtype(compute_dtype).itemsize
    vmem_cap = _vmem_capacity_bytes()
    vmem_limit = int(min(0.75 * vmem_cap, 112 * 2 ** 20))    # v7x ~48MiB, v5e/v6e ~96MiB
    tile_budget = max(8 * 2 ** 20, vmem_limit - 16 * 2 ** 20)

    # Fused-row layout: rows = [hop0 | hop1 | ...].  Neighbor k of fused row r
    # always lives at flat-neighbor row n*r + k, so a single 2-D (rows, dim)
    # array feeds the self / neighbor / relation streams with the SAME block
    # index map -- no per-iteration concat / repeat / split plumbing.
    user_rows_full = jnp.concatenate(
        [jnp.repeat(user_emb, n ** h, axis=0) for h in range(n_iter)], axis=0)
    rel_idx_full = jnp.concatenate(
        [relations[h].reshape(-1) for h in range(n_iter)], axis=0)

    prev = None                 # fused output of the previous iteration
    rel_rows_full = None
    score = None
    for i in range(n_iter):
        last = i == n_iter - 1
        n_hops = n_iter - i
        s_rows = offs[n_hops]                                # rows this iteration
        tr = _pick_row_tile(s_rows, n, dim, itemsize, tile_budget)
        sp = _round_up(s_rows, tr)

        if i == 0:
            # Build padded inputs directly from the embedding tables by padding
            # the (tiny) int32 index vectors -- no post-gather slice/pad copies.
            self_idx = _fit_rows(jnp.concatenate(
                [entities[h].reshape(-1) for h in range(n_hops)], axis=0), sp)
            neigh_idx = _fit_rows(jnp.concatenate(
                [entities[h + 1].reshape(-1) for h in range(n_hops)], axis=0), n * sp)
            rel_idx = _fit_rows(rel_idx_full, n * sp)
            self_rows = ent[self_idx]                        # (sp, dim)
            neigh_rows = ent[neigh_idx]                      # (n*sp, dim)
            rel_rows = rel_tab[rel_idx]                      # (n*sp, dim)
            rel_rows_full = rel_rows                         # reused as prefixes later
        else:
            self_rows = _fit_rows(prev, sp)
            neigh_rows = _fit_rows(prev[B:], n * sp)
            rel_rows = _fit_rows(rel_rows_full, n * sp)
        user_rows = _fit_rows(user_rows_full, sp)

        result = _run_iteration(
            self_rows, neigh_rows, rel_rows, user_rows, w_t, bias,
            act_name="tanh" if last else "sigmoid",
            with_score=last, tr=tr, vmem_limit_bytes=vmem_limit)

        if last:
            _, score = result
        else:
            prev = result

    return score[:B, 0]


# ----------------------------------------------------------------------------
# Pure-JAX reference mirroring the PyTorch module (for correctness checks).
# ----------------------------------------------------------------------------
def kgcn_forward_ref(params, adj_ent, adj_rel, u, v, *, n_iter, n_neighbor, dim):
    B = u.shape[0]
    user_emb = params["usr"][u]
    entities = [v.reshape(B, 1)]
    relations = []
    for h in range(n_iter):
        entities.append(adj_ent[entities[h]].reshape(B, -1))
        relations.append(adj_rel[entities[h]].reshape(B, -1))
    ev = [params["ent"][e] for e in entities]
    rv = [params["rel"][r] for r in relations]
    W, b = params["agg_w"], params["agg_b"]
    for i in range(n_iter):
        act = jnp.tanh if i == n_iter - 1 else jax.nn.sigmoid
        nxt = []
        for hop in range(n_iter - i):
            self_v = ev[hop]
            neigh = ev[hop + 1].reshape(B, -1, n_neighbor, dim)
            rel = rv[hop].reshape(B, -1, n_neighbor, dim)
            scores = jnp.sum(rel * user_emb[:, None, None, :], axis=-1)
            p = jax.nn.softmax(scores, axis=-1)
            agg = jnp.sum(p[..., None] * neigh, axis=2)
            x = (self_v + agg).reshape(-1, dim)
            y = act(x @ W.T + b)
            nxt.append(y.reshape(B, -1, dim))
        ev = nxt
    item = ev[0].reshape(B, dim)
    return jax.nn.sigmoid(jnp.sum(user_emb * item, axis=1))


# ----------------------------------------------------------------------------
if __name__ == "__main__":
    # Tight f32-path comparison requires full-precision matmuls on both sides.
    jax.config.update("jax_default_matmul_precision", "highest")

    key = jax.random.PRNGKey(0)

    # small KGCN config (matches the module's __init__ shapes)
    num_user, num_ent, num_rel = 16, 64, 8
    dim = 32            # args.dim
    n_neighbor = 8      # args.neighbor_sample_size
    n_iter = 2          # args.n_iter
    B = 4               # batch_size

    ks = jax.random.split(key, 9)
    params = {
        # nn.Embedding default ~ N(0, 1)
        "usr": jax.random.normal(ks[0], (num_user, dim), jnp.float32),
        "ent": jax.random.normal(ks[1], (num_ent, dim), jnp.float32),
        "rel": jax.random.normal(ks[2], (num_rel, dim), jnp.float32),
        # Aggregator('sum') -> nn.Linear(dim, dim)
        "agg_w": jax.random.normal(ks[3], (dim, dim), jnp.float32) / jnp.sqrt(dim),
        "agg_b": jax.random.normal(ks[4], (dim,), jnp.float32) / jnp.sqrt(dim),
    }
    # TODO(synk): _gen_adj samples a fixed-size adjacency from the kg dict on
    # the host; a synthetic fixed-size adjacency replaces it here.
    adj_ent = jax.random.randint(ks[5], (num_ent, n_neighbor), 0, num_ent, dtype=jnp.int32)
    adj_rel = jax.random.randint(ks[6], (num_ent, n_neighbor), 0, num_rel, dtype=jnp.int32)

    u = jax.random.randint(ks[7], (B,), 0, num_user, dtype=jnp.int32)
    v = jax.random.randint(ks[8], (B,), 0, num_ent, dtype=jnp.int32)

    ref = kgcn_forward_ref(params, adj_ent, adj_rel, u, v,
                           n_iter=n_iter, n_neighbor=n_neighbor, dim=dim)

    # exact-math check of the kernel logic (f32 end to end)
    fwd_f32 = jax.jit(functools.partial(
        kgcn_forward, n_iter=n_iter, n_neighbor=n_neighbor, dim=dim,
        compute_dtype=jnp.float32))
    s_f32 = jax.block_until_ready(fwd_f32(params, adj_ent, adj_rel, u, v))

    # perf-default path (bf16 activations / embeddings, f32 accumulation)
    fwd_bf16 = jax.jit(functools.partial(
        kgcn_forward, n_iter=n_iter, n_neighbor=n_neighbor, dim=dim,
        compute_dtype=jnp.bfloat16))
    s_bf16 = jax.block_until_ready(fwd_bf16(params, adj_ent, adj_rel, u, v))

    assert s_f32.shape == (B,) and s_bf16.shape == (B,)
    assert bool(jnp.all(jnp.isfinite(s_f32)))
    assert bool(jnp.all(jnp.isfinite(s_bf16)))
    assert bool(jnp.allclose(s_f32, ref, atol=1e-3, rtol=0.0))
    assert bool(jnp.allclose(s_bf16, ref, atol=5e-2, rtol=0.0))
    print("KERNEL_OK")
</pallas_src>

<mosaic_0001>
module attributes {stable_mosaic.version = 11 : i64} {
  func.func @_kgcn_iter_kernel(%arg0: i32, %arg1: memref<48x32xf32, #tpu.memory_space<vmem>>, %arg2: memref<384x32xf32, #tpu.memory_space<vmem>>, %arg3: memref<384x32xf32, #tpu.memory_space<vmem>>, %arg4: memref<48x32xf32, #tpu.memory_space<vmem>>, %arg5: memref<32x32xf32, #tpu.memory_space<vmem>>, %arg6: memref<1x32xf32, #tpu.memory_space<vmem>>, %arg7: memref<48x32xf32, #tpu.memory_space<vmem>>) attributes {dimension_semantics = [#tpu.dimension_semantics<parallel>], iteration_bounds = array<i64: 1>, scalar_prefetch = 0 : i64, scratch_operands = 0 : i64, tpu.core_type = #tpu.core_type<tc>, window_params = [{transform_indices = @transform_0, window_bounds = array<i64: 48, 32>}, {transform_indices = @transform_1, window_bounds = array<i64: 384, 32>}, {transform_indices = @transform_2, window_bounds = array<i64: 384, 32>}, {transform_indices = @transform_3, window_bounds = array<i64: 48, 32>}, {pipeline_mode = #tpu.pipeline_mode<synchronous>, transform_indices = @transform_4, window_bounds = array<i64: 32, 32>}, {pipeline_mode = #tpu.pipeline_mode<synchronous>, transform_indices = @transform_5, window_bounds = array<i64: 1, 32>}, {transform_indices = @transform_6, window_bounds = array<i64: 48, 32>}]} {
    %c0 = arith.constant 0 : index
    %c0_0 = arith.constant 0 : index
    %0 = vector.load %arg1[%c0, %c0_0] : memref<48x32xf32, #tpu.memory_space<vmem>>, vector<48x32xf32>
    %c0_1 = arith.constant 0 : index
    %c0_2 = arith.constant 0 : index
    %1 = vector.load %arg4[%c0_1, %c0_2] : memref<48x32xf32, #tpu.memory_space<vmem>>, vector<48x32xf32>
    %c0_3 = arith.constant 0 : index
    %c0_4 = arith.constant 0 : index
    %2 = vector.load %arg2[%c0_3, %c0_4] : memref<384x32xf32, #tpu.memory_space<vmem>>, vector<384x32xf32>
    %3 = vector.shape_cast %2 : vector<384x32xf32> to vector<48x8x32xf32>
    %c0_5 = arith.constant 0 : index
    %c0_6 = arith.constant 0 : index
    %4 = vector.load %arg3[%c0_5, %c0_6] : memref<384x32xf32, #tpu.memory_space<vmem>>, vector<384x32xf32>
    %5 = vector.shape_cast %4 : vector<384x32xf32> to vector<48x8x32xf32>
    %6 = vector.shape_cast %1 : vector<48x32xf32> to vector<48x1x32xf32>
    %7 = vector.broadcast %6 : vector<48x1x32xf32> to vector<48x8x32xf32>
    %8 = arith.mulf %7, %5 : vector<48x8x32xf32>
    %cst = arith.constant dense<0.000000e+00> : vector<48x8xf32>
    %9 = vector.multi_reduction <add>, %8, %cst [2] : vector<48x8x32xf32> to vector<48x8xf32>
    %cst_7 = arith.constant dense<0xFF800000> : vector<48xf32>
    %10 = vector.multi_reduction <maximumf>, %9, %cst_7 [1] : vector<48x8xf32> to vector<48xf32>
    %11 = vector.shape_cast %10 : vector<48xf32> to vector<48x1xf32>
    %12 = vector.broadcast %11 : vector<48x1xf32> to vector<48x8xf32>
    %13 = arith.subf %9, %12 : vector<48x8xf32>
    %14 = math.exp %13 : vector<48x8xf32>
    %cst_8 = arith.constant dense<0.000000e+00> : vector<48xf32>
    %15 = vector.multi_reduction <add>, %14, %cst_8 [1] : vector<48x8xf32> to vector<48xf32>
    %16 = vector.shape_cast %15 : vector<48xf32> to vector<48x1xf32>
    %17 = vector.broadcast %16 : vector<48x1xf32> to vector<48x8xf32>
    %18 = arith.divf %14, %17 : vector<48x8xf32>
    %19 = vector.shape_cast %18 : vector<48x8xf32> to vector<48x8x1xf32>
    %20 = vector.broadcast %19 : vector<48x8x1xf32> to vector<48x8x32xf32>
    %21 = arith.mulf %20, %3 : vector<48x8x32xf32>
    %cst_9 = arith.constant dense<0.000000e+00> : vector<48x32xf32>
    %22 = vector.multi_reduction <add>, %21, %cst_9 [1] : vector<48x8x32xf32> to vector<48x32xf32>
    %23 = arith.addf %0, %22 : vector<48x32xf32>
    %c0_10 = arith.constant 0 : index
    %c0_11 = arith.constant 0 : index
    %24 = vector.load %arg5[%c0_10, %c0_11] : memref<32x32xf32, #tpu.memory_space<vmem>>, vector<32x32xf32>
    %cst_12 = arith.constant dense<0.000000e+00> : vector<48x32xf32>
    %25 = tpu.matmul %23, %24, %cst_12 {dimension_numbers = #tpu.dot_dimension_numbers<[1], [0], [0], [1], [0, 0, 1, 1], [], []>, precision = #tpu.contract_precision<fp32>} : vector<48x32xf32>, vector<32x32xf32>, vector<48x32xf32> -> vector<48x32xf32>
    %c0_13 = arith.constant 0 : index
    %c0_14 = arith.constant 0 : index
    %26 = vector.load %arg6[%c0_13, %c0_14] : memref<1x32xf32, #tpu.memory_space<vmem>>, vector<1x32xf32>
    %27 = vector.broadcast %26 : vector<1x32xf32> to vector<48x32xf32>
    %28 = arith.addf %25, %27 : vector<48x32xf32>
    %29 = arith.negf %28 : vector<48x32xf32>
    %30 = math.exp %29 : vector<48x32xf32>
    %cst_15 = arith.constant 1.000000e+00 : f32
    %31 = vector.broadcast %cst_15 : f32 to vector<48x32xf32>
    %32 = arith.addf %31, %30 : vector<48x32xf32>
    %33 = arith.divf %31, %32 : vector<48x32xf32>
    %c0_16 = arith.constant 0 : index
    %c0_17 = arith.constant 0 : index
    %34 = vector.load %arg7[%c0_16, %c0_17] : memref<48x32xf32, #tpu.memory_space<vmem>>, vector<48x32xf32>
    tpu.vector_store %arg7[%c0_16, %c0_17], %33 {strides = array<i32>} : memref<48x32xf32, #tpu.memory_space<vmem>>, vector<48x32xf32>,
    return
  }
  func.func @transform_0(%arg0: i32) -> (i32, i32) {
    %c0_i32 = arith.constant 0 : i32
    %c0_i32_0 = arith.constant 0 : i32
    return %arg0, %c0_i32 : i32, i32
  }
  func.func @transform_1(%arg0: i32) -> (i32, i32) {
    %c0_i32 = arith.constant 0 : i32
    %c0_i32_0 = arith.constant 0 : i32
    return %arg0, %c0_i32 : i32, i32
  }
  func.func @transform_2(%arg0: i32) -> (i32, i32) {
    %c0_i32 = arith.constant 0 : i32
    %c0_i32_0 = arith.constant 0 : i32
    return %arg0, %c0_i32 : i32, i32
  }
  func.func @transform_3(%arg0: i32) -> (i32, i32) {
    %c0_i32 = arith.constant 0 : i32
    %c0_i32_0 = arith.constant 0 : i32
    return %arg0, %c0_i32 : i32, i32
  }
  func.func @transform_4(%arg0: i32) -> (i32, i32) {
    %c0_i32 = arith.constant 0 : i32
    %c0_i32_0 = arith.constant 0 : i32
    %c0_i32_1 = arith.constant 0 : i32
    return %c0_i32, %c0_i32_0 : i32, i32
  }
  func.func @transform_5(%arg0: i32) -> (i32, i32) {
    %c0_i32 = arith.constant 0 : i32
    %c0_i32_0 = arith.constant 0 : i32
    %c0_i32_1 = arith.constant 0 : i32
    return %c0_i32, %c0_i32_0 : i32, i32
  }
  func.func @transform_6(%arg0: i32) -> (i32, i32) {
    %c0_i32 = arith.constant 0 : i32
    %c0_i32_0 = arith.constant 0 : i32
    return %arg0, %c0_i32 : i32, i32
  }
}

module attributes {stable_mosaic.version = 11 : i64} {
  func.func @_kgcn_iter_kernel(%arg0: i32, %arg1: memref<16x32xf32, #tpu.memory_space<vmem>>, %arg2: memref<128x32xf32, #tpu.memory_space<vmem>>, %arg3: memref<128x32xf32, #tpu.memory_space<vmem>>, %arg4: memref<16x32xf32, #tpu.memory_space<vmem>>, %arg5: memref<32x32xf32, #tpu.memory_space<vmem>>, %arg6: memref<1x32xf32, #tpu.memory_space<vmem>>, %arg7: memref<16x32xf32, #tpu.memory_space<vmem>>, %arg8: memref<16x1xf32, #tpu.memory_space<vmem>>) attributes {dimension_semantics = [#tpu.dimension_semantics<parallel>], iteration_bounds = array<i64: 1>, scalar_prefetch = 0 : i64, scratch_operands = 0 : i64, tpu.core_type = #tpu.core_type<tc>, window_params = [{transform_indices = @transform_0, window_bounds = array<i64: 16, 32>}, {transform_indices = @transform_1, window_bounds = array<i64: 128, 32>}, {transform_indices = @transform_2, window_bounds = array<i64: 128, 32>}, {transform_indices = @transform_3, window_bounds = array<i64: 16, 32>}, {pipeline_mode = #tpu.pipeline_mode<synchronous>, transform_indices = @transform_4, window_bounds = array<i64: 32, 32>}, {pipeline_mode = #tpu.pipeline_mode<synchronous>, transform_indices = @transform_5, window_bounds = array<i64: 1, 32>}, {transform_indices = @transform_6, window_bounds = array<i64: 16, 32>}, {transform_indices = @transform_7, window_bounds = array<i64: 16, 1>}]} {
    %c0 = arith.constant 0 : index
    %c0_0 = arith.constant 0 : index
    %0 = vector.load %arg1[%c0, %c0_0] : memref<16x32xf32, #tpu.memory_space<vmem>>, vector<16x32xf32>
    %c0_1 = arith.constant 0 : index
    %c0_2 = arith.constant 0 : index
    %1 = vector.load %arg4[%c0_1, %c0_2] : memref<16x32xf32, #tpu.memory_space<vmem>>, vector<16x32xf32>
    %c0_3 = arith.constant 0 : index
    %c0_4 = arith.constant 0 : index
    %2 = vector.load %arg2[%c0_3, %c0_4] : memref<128x32xf32, #tpu.memory_space<vmem>>, vector<128x32xf32>
    %3 = vector.shape_cast %2 : vector<128x32xf32> to vector<16x8x32xf32>
    %c0_5 = arith.constant 0 : index
    %c0_6 = arith.constant 0 : index
    %4 = vector.load %arg3[%c0_5, %c0_6] : memref<128x32xf32, #tpu.memory_space<vmem>>, vector<128x32xf32>
    %5 = vector.shape_cast %4 : vector<128x32xf32> to vector<16x8x32xf32>
    %6 = vector.shape_cast %1 : vector<16x32xf32> to vector<16x1x32xf32>
    %7 = vector.broadcast %6 : vector<16x1x32xf32> to vector<16x8x32xf32>
    %8 = arith.mulf %7, %5 : vector<16x8x32xf32>
    %cst = arith.constant dense<0.000000e+00> : vector<16x8xf32>
    %9 = vector.multi_reduction <add>, %8, %cst [2] : vector<16x8x32xf32> to vector<16x8xf32>
    %cst_7 = arith.constant dense<0xFF800000> : vector<16xf32>
    %10 = vector.multi_reduction <maximumf>, %9, %cst_7 [1] : vector<16x8xf32> to vector<16xf32>
    %11 = vector.shape_cast %10 : vector<16xf32> to vector<16x1xf32>
    %12 = vector.broadcast %11 : vector<16x1xf32> to vector<16x8xf32>
    %13 = arith.subf %9, %12 : vector<16x8xf32>
    %14 = math.exp %13 : vector<16x8xf32>
    %cst_8 = arith.constant dense<0.000000e+00> : vector<16xf32>
    %15 = vector.multi_reduction <add>, %14, %cst_8 [1] : vector<16x8xf32> to vector<16xf32>
    %16 = vector.shape_cast %15 : vector<16xf32> to vector<16x1xf32>
    %17 = vector.broadcast %16 : vector<16x1xf32> to vector<16x8xf32>
    %18 = arith.divf %14, %17 : vector<16x8xf32>
    %19 = vector.shape_cast %18 : vector<16x8xf32> to vector<16x8x1xf32>
    %20 = vector.broadcast %19 : vector<16x8x1xf32> to vector<16x8x32xf32>
    %21 = arith.mulf %20, %3 : vector<16x8x32xf32>
    %cst_9 = arith.constant dense<0.000000e+00> : vector<16x32xf32>
    %22 = vector.multi_reduction <add>, %21, %cst_9 [1] : vector<16x8x32xf32> to vector<16x32xf32>
    %23 = arith.addf %0, %22 : vector<16x32xf32>
    %c0_10 = arith.constant 0 : index
    %c0_11 = arith.constant 0 : index
    %24 = vector.load %arg5[%c0_10, %c0_11] : memref<32x32xf32, #tpu.memory_space<vmem>>, vector<32x32xf32>
    %cst_12 = arith.constant dense<0.000000e+00> : vector<16x32xf32>
    %25 = tpu.matmul %23, %24, %cst_12 {dimension_numbers = #tpu.dot_dimension_numbers<[1], [0], [0], [1], [0, 0, 1, 1], [], []>, precision = #tpu.contract_precision<fp32>} : vector<16x32xf32>, vector<32x32xf32>, vector<16x32xf32> -> vector<16x32xf32>
    %c0_13 = arith.constant 0 : index
    %c0_14 = arith.constant 0 : index
    %26 = vector.load %arg6[%c0_13, %c0_14] : memref<1x32xf32, #tpu.memory_space<vmem>>, vector<1x32xf32>
    %27 = vector.broadcast %26 : vector<1x32xf32> to vector<16x32xf32>
    %28 = arith.addf %25, %27 : vector<16x32xf32>
    %29 = math.tanh %28 : vector<16x32xf32>
    %c0_15 = arith.constant 0 : index
    %c0_16 = arith.constant 0 : index
    %30 = vector.load %arg7[%c0_15, %c0_16] : memref<16x32xf32, #tpu.memory_space<vmem>>, vector<16x32xf32>
    tpu.vector_store %arg7[%c0_15, %c0_16], %29 {strides = array<i32>} : memref<16x32xf32, #tpu.memory_space<vmem>>, vector<16x32xf32>,
    %31 = arith.mulf %1, %29 : vector<16x32xf32>
    %cst_17 = arith.constant dense<0.000000e+00> : vector<16xf32>
    %32 = vector.multi_reduction <add>, %31, %cst_17 [1] : vector<16x32xf32> to vector<16xf32>
    %33 = vector.shape_cast %32 : vector<16xf32> to vector<16x1xf32>
    %34 = arith.negf %33 : vector<16x1xf32>
    %35 = math.exp %34 : vector<16x1xf32>
    %cst_18 = arith.constant 1.000000e+00 : f32
    %36 = vector.broadcast %cst_18 : f32 to vector<16x1xf32>
    %37 = arith.addf %36, %35 : vector<16x1xf32>
    %38 = arith.divf %36, %37 : vector<16x1xf32>
    %c0_19 = arith.constant 0 : index
    %c0_20 = arith.constant 0 : index
    %39 = vector.load %arg8[%c0_19, %c0_20] : memref<16x1xf32, #tpu.memory_space<vmem>>, vector<16x1xf32>
    tpu.vector_store %arg8[%c0_19, %c0_20], %38 {strides = array<i32>} : memref<16x1xf32, #tpu.memory_space<vmem>>, vector<16x1xf32>,
    return
  }
  func.func @transform_0(%arg0: i32) -> (i32, i32) {
    %c0_i32 = arith.constant 0 : i32
    %c0_i32_0 = arith.constant 0 : i32
    return %arg0, %c0_i32 : i32, i32
  }
  func.func @transform_1(%arg0: i32) -> (i32, i32) {
    %c0_i32 = arith.constant 0 : i32
    %c0_i32_0 = arith.constant 0 : i32
    return %arg0, %c0_i32 : i32, i32
  }
  func.func @transform_2(%arg0: i32) -> (i32, i32) {
    %c0_i32 = arith.constant 0 : i32
    %c0_i32_0 = arith.constant 0 : i32
    return %arg0, %c0_i32 : i32, i32
  }
  func.func @transform_3(%arg0: i32) -> (i32, i32) {
    %c0_i32 = arith.constant 0 : i32
    %c0_i32_0 = arith.constant 0 : i32
    return %arg0, %c0_i32 : i32, i32
  }
  func.func @transform_4(%arg0: i32) -> (i32, i32) {
    %c0_i32 = arith.constant 0 : i32
    %c0_i32_0 = arith.constant 0 : i32
    %c0_i32_1 = arith.constant 0 : i32
    return %c0_i32, %c0_i32_0 : i32, i32
  }
  func.func @transform_5(%arg0: i32) -> (i32, i32) {
    %c0_i32 = arith.constant 0 : i32
    %c0_i32_0 = arith.constant 0 : i32
    %c0_i32_1 = arith.constant 0 : i32
    return %c0_i32, %c0_i32_0 : i32, i32
  }
  func.func @transform_6(%arg0: i32) -> (i32, i32) {
    %c0_i32 = arith.constant 0 : i32
    %c0_i32_0 = arith.constant 0 : i32
    return %arg0, %c0_i32 : i32, i32
  }
  func.func @transform_7(%arg0: i32) -> (i32, i32) {
    %c0_i32 = arith.constant 0 : i32
    %c0_i32_0 = arith.constant 0 : i32
    return %arg0, %c0_i32 : i32, i32
  }
}

</mosaic_0001>

<bundles_post_ra>
// kernel: kgcn_forward.3
= control target key start
LH: loop header
LB: loop body
LE: loop exit
PB: predicated region body
PF: predicated region fallthrough
CT: control target
= control target key end

     0   :  { %v68_v0 = vlaneseq  ;;  %v1861_v1 = vmov 1966171168   ;;  %s2472_s0 = inlined_call_operand.vmem [shape: f32[16,32], index: 0, kind: input, shape index: {}]   ;;  %s2473_s1 = inlined_call_operand.vmem [shape: f32[128,32], index: 1, kind: input, shape index: {}]   ;;  %s2474_s2 = inlined_call_operand.vmem [shape: f32[128,32], index: 2, kind: input, shape index: {}]   ;;  %s2475_s3 = inlined_call_operand.vmem [shape: f32[16,32], index: 3, kind: input, shape index: {}]   ;;  %s2476_s4 = inlined_call_operand.vmem [shape: f32[32,32], index: 4, kind: input, shape index: {}]   ;;  %s2477_s5 = inlined_call_operand.vmem [shape: f32[1,32], index: 5, kind: input, shape index: {}]   ;;  %s2478_s6 = inlined_call_operand.hbm [shape: f32[16,32], index: 6, kind: output, shape index: {0}]   ;;  %s2479_s7 = inlined_call_operand.vmem [shape: f32[16,1], index: 7, kind: output, shape index: {1}]  }
   0x1   :  { %v66_v2 = vunpack.c.l.s4 %v1861_v1  ;;  %v29_v3 = vld [vmem:[%s2475_s3 + $0x8] sm:$0xff]  ;;  %v28_v6 = vld [vmem:[%s2475_s3] sm:$0xff] }
   0x2   :  { %v1909_v4 = vshrl.u32 %v68_v0, 7  ;;  %v324_v5 = vand.u32 127, %v68_v0  ;;  %v113_v8 = vcombine.high %v29_v3, %v29_v3  ;;  %v64_v9 = vcombine.high %v28_v6, %v28_v6 }
   0x3   :  { %v67_v7 = vunpack.c.0.s8 %v66_v2 }
   0x4   :  { %v1915_v10 = vsub.s32 %v324_v5, %v1909_v4  ;;  %v1921_v12 = vsub.s32 0, %v1909_v4 }
   0x5   :  { %v1918_v11 = vsub.s32 %v67_v7, %v1909_v4 }
   0x6   :  { %13 = vsyncpa [#allocation3], 0  ;;  %v54_v17 = vld [vmem:[%s2474_s2 + $0x40] sm:$0xff]  ;;  %vm258_vm0 = vcmask 261120   ;;  %v47_v40 = vld [vmem:[%s2474_s2 + $0x8] sm:$0xff]  ;;  %vm389_vm1 = vcmask 1041409  }
   0x7   :  { %v120_v13 = vrot.slane %v29_v3, %v1918_v11  ;;  %v71_v14 = vrot.slane %v28_v6, %v1918_v11  ;;  %v1926_v15 = vrot.slane %v113_v8, %v1918_v11  ;;  %v78_v16 = vrot.slane %v64_v9, %v1918_v11  ;;  %v46_v22 = vld [vmem:[%s2474_s2] sm:$0xff]  ;;  %v48_v42 = vld [vmem:[%s2474_s2 + $0x10] sm:$0xff]  ;;  %v55_v52 = vld [vmem:[%s2474_s2 + $0x48] sm:$0xff]  ;;  %s1863_s11 = smov [#allocation2]  }
   0x8   :  { %v58_v23 = vld [vmem:[%s2474_s2 + $0x60] sm:$0xff]  ;;  %v51_v53 = vld [vmem:[%s2474_s2 + $0x28] sm:$0xff]  ;;  %v56_v1 = vld [vmem:[%s2474_s2 + $0x50] sm:$0xff]  ;;  %vm391_vm2 = vcmask 1042434   ;;  %vm393_vm3 = vcmask 1043459   ;;  %vm395_vm4 = vcmask 1044484  }
   0x9   :  { %v136_v18 = vrot.slane %v120_v13, %v1918_v11  ;;  %v87_v19 = vrot.slane %v71_v14, %v1918_v11  ;;  %v1936_v20 = vrot.slane %v1926_v15, %v1918_v11  ;;  %v94_v21 = vrot.slane %v78_v16, %v1918_v11  ;;  %v50_v24 = vld [vmem:[%s2474_s2 + $0x20] sm:$0xff]  ;;  %v52_v2 = vld [vmem:[%s2474_s2 + $0x30] sm:$0xff]  ;;  %v57_v6 = vld [vmem:[%s2474_s2 + $0x58] sm:$0xff]  ;;  %s1632_s12 = sshll.u32 %s1863_s11, 4  ;;  %s1633_s12 = int_to_ptr.vmem [resolvable:$true] %s1632_s12 }
   0xa   :  { %v79_v25 = vcombine.high %v71_v14, %v71_v14  ;;  %v128_v26 = vcombine.high %v120_v13, %v120_v13  ;;  %v80_v27 = vcombine.high %v78_v16, %v78_v16  ;;  %v129_v57 = vcombine.high %v1926_v15, %v1926_v15  ;;  %v49_v15 = vld [vmem:[%s2474_s2 + $0x18] sm:$0xff]  ;;  %s1839_s13 = scalar_lea.vmem %s1633_s12, 256  ;;  %p1844_p1 = scmp.lt.s32.totalorder %s1633_s12, %s1633_s12 }
   0xb   :  { %v197_v28 = vrot.slane %v136_v18, %v1921_v12  ;;  %v165_v29 = vrot.slane %v87_v19, %v1921_v12  ;;  %v213_v30 = vrot.slane %v1936_v20, %v1921_v12  ;;  %v181_v31 = vrot.slane %v94_v21, %v1921_v12  ;;  %p1840_p0 = scmp.ne.s32.totalorder %s1633_s12, %s1839_s13  ;;  %p1845_p2 = scmp.lt.s32.totalorder %s1839_s13, %s1839_s13 }
   0xc   :  { %v101_v32 = vrot.slane %v79_v25, %v1918_v11  ;;  %v109_v33 = vcombine.high %v87_v19, %v87_v19  ;;  %v150_v34 = vrot.slane %v128_v26, %v1918_v11  ;;  %v108_v35 = vrot.slane %v80_v27, %v1918_v11  ;;  %v59_v25 = vld [vmem:[%s2474_s2 + $0x68] sm:$0xff]  ;;  %v53_v26 = vld [vmem:[%s2474_s2 + $0x38] sm:$0xff] }
   0xd   :  { %v250_v36 = vmul.f32 %v197_v28, %v54_v17  ;;  %v242_v37 = vmul.f32 %v165_v29, %v46_v22  ;;  %v254_v38 = vmul.f32 %v213_v30, %v58_v23  ;;  %v246_v39 = vmul.f32 %v181_v31, %v50_v24  ;;  %p1846_p3 = por %p1845_p2, %p1844_p1 }
   0xe   :  { %v169_v41 = vrot.slane %v101_v32, %v1921_v12  ;;  %v173_v43 = vrot.slane %v109_v33, %v1921_v12  ;;  %v201_v48 = vrot.slane %v150_v34, %v1921_v12  ;;  %v185_v49 = vrot.slane %v108_v35, %v1921_v12  ;;  %v61_v33 = vld [vmem:[%s2474_s2 + $0x78] sm:$0xff] }
   0xf   :  { %v283_v44 = vsel %vm258_vm0, %v250_v36, 0.0  ;;  %v259_v45 = vsel %vm258_vm0, %v242_v37, 0.0  ;;  %v295_v46 = vsel %vm258_vm0, %v254_v38, 0.0  ;;  %v271_v47 = vsel %vm258_vm0, %v246_v39, 0.0  ;;  %p1847_p4 = pnand %p1846_p3, %p1840_p0 }
  0x10   :  { %284 = vadd.xlane.f32.xlu1 %v283_v44  ;;  %260 = vadd.xlane.f32.xlu0 %v259_v45  ;;  %v243_v50 = vmul.f32 %v169_v41, %v47_v40  ;;  %v244_v51 = vmul.f32 %v173_v43, %v48_v42  ;;  %v158_v54 = vcombine.high %v136_v18, %v136_v18  ;;  %vm397_vm5 = vcmask 1045509  }
  0x11   :  { %v110_v55 = vcombine.high %v94_v21, %v94_v21  ;;  %v160_v56 = vcombine.high %v150_v34, %v150_v34  ;;  %v251_v58 = vmul.f32 %v201_v48, %v55_v52  ;;  %v247_v59 = vmul.f32 %v185_v49, %v51_v53 }
  0x12   :  { %v111_v60 = vcombine.high %v101_v32, %v101_v32  ;;  %v262_v61 = vsel %vm258_vm0, %v243_v50, 0.0  ;;  %v265_v62 = vsel %vm258_vm0, %v244_v51, 0.0  ;;  %v205_v63 = vrot.slane %v158_v54, %v1921_v12  ;;  %v60_v32 = vld [vmem:[%s2474_s2 + $0x70] sm:$0xff] }
  0x13   :  { %v189_v0 = vrot.slane %v110_v55, %v1921_v12  ;;  %v209_v3 = vrot.slane %v160_v56, %v1921_v12  ;;  %v286_v5 = vsel %vm258_vm0, %v251_v58, 0.0  ;;  %v157_v8 = vrot.slane %v129_v57, %v1918_v11 }
  0x14   :  { %296 = vadd.xlane.f32.xlu0 %v295_v46  ;;  %272 = vadd.xlane.f32.xlu1 %v271_v47  ;;  %v177_v7 = vrot.slane %v111_v60, %v1921_v12  ;;  %v274_v9 = vsel %vm258_vm0, %v247_v59, 0.0  ;;  %v252_v13 = vmul.f32 %v205_v63, %v56_v1  ;;  %v112_v16 = vcombine.high %v108_v35, %v108_v35 }
  0x15   :  { %v248_v14 = vmul.f32 %v189_v0, %v52_v2  ;;  %v253_v17 = vmul.f32 %v209_v3, %v57_v6  ;;  %v217_v19 = vrot.slane %v157_v8, %v1921_v12  ;;  %v159_v21 = vcombine.high %v1936_v20, %v1936_v20 }
  0x16   :  { %v245_v18 = vmul.f32 %v177_v7, %v49_v15  ;;  %v289_v11 = vsel %vm258_vm0, %v252_v13, 0.0  ;;  %v193_v23 = vrot.slane %v112_v16, %v1921_v12  ;;  %v161_v24 = vcombine.high %v157_v8, %v157_v8 }
  0x17   :  { %v277_v22 = vsel %vm258_vm0, %v248_v14, 0.0  ;;  %v292_v27 = vsel %vm258_vm0, %v253_v17, 0.0  ;;  %v221_v20 = vrot.slane %v159_v21, %v1921_v12  ;;  %v255_v29 = vmul.f32 %v217_v19, %v59_v25 }
  0x18   :  { %263 = vadd.xlane.f32.xlu0 %v262_v61  ;;  %266 = vadd.xlane.f32.xlu1 %v265_v62  ;;  %v268_v28 = vsel %vm258_vm0, %v245_v18, 0.0  ;;  %v249_v30 = vmul.f32 %v193_v23, %v53_v26  ;;  %v225_v31 = vrot.slane %v161_v24, %v1921_v12  ;;  %vm399_vm6 = vcmask 1046534  }
  0x19   :  { %v298_v34 = vsel %vm258_vm0, %v255_v29, 0.0  ;;  %v256_v36 = vmul.f32 %v221_v20, %v60_v32  ;;  %vm401_vm7 = vcmask 1047559   ;;  %vm412_vm8 = vcmask 64512  }
  0x1a   :  { %v280_v35 = vsel %vm258_vm0, %v249_v30, 0.0  ;;  %v257_v37 = vmul.f32 %v225_v31, %v61_v33  ;;  %v1862_v20 = vmov 0   ;;  %v2103_v29 = vsub.s32 2, %v1909_v4 }
  0x1b   :  { %v301_v38 = vsel %vm258_vm0, %v256_v36, 0.0  ;;  %1758 = vset.pattern.permute.xlu1 %v1862_v20  ;;  %1757 = vset.pattern.permute.xlu0 %v1862_v20  ;;  %v2106_v30 = vsub.s32 5, %v1909_v4  ;;  %v2109_v31 = vsub.s32 6, %v1909_v4  ;;  %v2115_v36 = vsub.s32 7, %v1909_v4 }
  0x1c   :  { %287 = vadd.xlane.f32.xlu0 %v286_v5  ;;  %275 = vadd.xlane.f32.xlu1 %v274_v9  ;;  %v304_v39 = vsel %vm258_vm0, %v257_v37, 0.0 }
  0x20   :  { %290 = vadd.xlane.f32.xlu0 %v289_v11  ;;  %278 = vadd.xlane.f32.xlu1 %v277_v22 }
  0x24   :  { %293 = vadd.xlane.f32.xlu0 %v292_v27  ;;  %269 = vadd.xlane.f32.xlu1 %v268_v28  ;;  %v2100_v28 = vsub.s32 1, %v1909_v4 }
  0x28   :  { %299 = vadd.xlane.f32.xlu0 %v298_v34  ;;  %281 = vadd.xlane.f32.xlu1 %v280_v35 }
  0x2c   :  { %302 = vadd.xlane.f32.xlu0 %v301_v38  ;;  %305 = vadd.xlane.f32.xlu1 %v304_v39 }
  0x99   :  { %v2025_v40 = vpop.xlane.xlu1 %284  ;;  %v2027_v41 = vpop.xlane.xlu0 %260 }
  0x9a   :  { %v328_v51 = vrot.slane %v2027_v41, %v1915_v10  ;;  %v360_v59 = vrot.slane %v2025_v40, %v1915_v10 }
  0x9d   :  { %v2029_v42 = vpop.xlane.xlu0 %296  ;;  %v2031_v43 = vpop.xlane.xlu1 %272 }
  0x9e   :  { %v344_v60 = vrot.slane %v2031_v43, %v1915_v10  ;;  %v376_v16 = vrot.slane %v2029_v42, %v1915_v10 }
  0xa1   :  { %v2033_v44 = vpop.xlane.xlu0 %263  ;;  %v2035_v45 = vpop.xlane.xlu1 %266 }
  0xa2   :  { %v332_v48 = vrot.slane %v2033_v44, %v1915_v10  ;;  %v336_v52 = vrot.slane %v2035_v45, %v1915_v10 }
  0xa4   :  { %v390_v53 = vsel %vm389_vm1, %v332_v48, %v328_v51 }
  0xa5   :  { %v2037_v46 = vpop.xlane.xlu0 %287  ;;  %v2039_v47 = vpop.xlane.xlu1 %275  ;;  %v392_v61 = vsel %vm391_vm2, %v336_v52, %v390_v53 }
  0xa6   :  { %v364_v54 = vrot.slane %v2037_v46, %v1915_v10  ;;  %v348_v63 = vrot.slane %v2039_v47, %v1915_v10 }
  0xa8   :  { %v403_v1 = vsel %vm389_vm1, %v364_v54, %v360_v59 }
  0xa9   :  { %v2043_v49 = vpop.xlane.xlu0 %290  ;;  %v2045_v50 = vpop.xlane.xlu1 %278 }
  0xaa   :  { %v368_v57 = vrot.slane %v2043_v49, %v1915_v10  ;;  %v352_v2 = vrot.slane %v2045_v50, %v1915_v10 }
  0xac   :  { %v404_v7 = vsel %vm391_vm2, %v368_v57, %v403_v1 }
  0xad   :  { %v2054_v55 = vpop.xlane.xlu0 %293  ;;  %v2056_v56 = vpop.xlane.xlu1 %269 }
  0xae   :  { %v340_v58 = vrot.slane %v2056_v56, %v1915_v10  ;;  %v372_v62 = vrot.slane %v2054_v55, %v1915_v10 }
  0xb0   :  { %v394_v0 = vsel %vm393_vm3, %v340_v58, %v392_v61  ;;  %v405_v13 = vsel %vm393_vm3, %v372_v62, %v404_v7  ;;  %v2126_v58 = vsub.s32 3, %v1909_v4 }
  0xb1   :  { %v2075_v3 = vpop.xlane.xlu0 %299  ;;  %v282_v5 = vpop.xlane.xlu1 %281  ;;  %v396_v6 = vsel %vm395_vm4, %v344_v60, %v394_v0  ;;  %v406_v23 = vsel %vm395_vm4, %v376_v16, %v405_v13 }
  0xb2   :  { %v356_v8 = vrot.slane %v282_v5, %v1915_v10  ;;  %v398_v9 = vsel %vm397_vm5, %v348_v63, %v396_v6  ;;  %v380_v14 = vrot.slane %v2075_v3, %v1915_v10  ;;  %v2140_v6 = vsub.s32 4, %v1909_v4 }
  0xb3   :  { %v400_v15 = vsel %vm399_vm6, %v352_v2, %v398_v9 }
  0xb4   :  { %v402_v17 = vsel %vm401_vm7, %v356_v8, %v400_v15  ;;  %v407_v24 = vsel %vm397_vm5, %v380_v14, %v406_v23 }
  0xb5   :  { %v2088_v18 = vpop.xlane.xlu0 %302  ;;  %v413_v19 = vsel %vm412_vm8, %v402_v17, -inf  ;;  %v306_v21 = vpop.xlane.xlu1 %305 }
  0xb6   :  { %v384_v11 = vrot.slane %v2088_v18, %v1915_v10  ;;  %414 = vmax.xlane.f32.xlu0 %v413_v19  ;;  %v388_v22 = vrot.slane %v306_v21, %v1915_v10 }
  0xb8   :  { %v408_v25 = vsel %vm399_vm6, %v384_v11, %v407_v24 }
  0xb9   :  { %v409_v26 = vsel %vm401_vm7, %v388_v22, %v408_v25 }
  0xba   :  { %v416_v27 = vsel %vm412_vm8, %v409_v26, -inf }
  0xbb   :  { %417 = vmax.xlane.f32.xlu1 %v416_v27 }
 0x13f   :  { %v415_v32 = vpop.xlane.xlu0 %414 }
 0x140   :  { %v424_v33 = vrot.slane %v415_v32, %v1921_v12  ;;  %v428_v34 = vrot.slane %v415_v32, %v2100_v28  ;;  %v432_v35 = vrot.slane %v415_v32, %v2103_v29  ;;  %v444_v37 = vrot.slane %v415_v32, %v2106_v30 }
 0x141   :  { %v448_v38 = vrot.slane %v415_v32, %v2109_v31  ;;  %v452_v60 = vrot.slane %v415_v32, %v2115_v36  ;;  %v436_v62 = vrot.slane %v415_v32, %v2126_v58 }
 0x142   :  { %v501_v39 = vsub.f32 %v2027_v41, %v424_v33  ;;  %v502_v48 = vsub.f32 %v2033_v44, %v428_v34  ;;  %v503_v51 = vsub.f32 %v2035_v45, %v432_v35  ;;  %v506_v52 = vsub.f32 %v2039_v47, %v444_v37 }
 0x143   :  { %v507_v41 = vsub.f32 %v2045_v50, %v448_v38  ;;  %v508_v63 = vsub.f32 %v282_v5, %v452_v60  ;;  %v504_v7 = vsub.f32 %v2056_v56, %v436_v62 }
 0x144   :  { %v517_v53 = vmul.f32 1.442695, %v501_v39  ;;  %v519_v54 = vmul.f32 1.442695, %v502_v48  ;;  %v2123_v57 = vpop.xlane.xlu1 %417  ;;  %v521_v44 = vmul.f32 1.442695, %v503_v51 }
 0x145   :  { %v456_v59 = vrot.slane %v2123_v57, %v1921_v12  ;;  %v527_v45 = vmul.f32 1.442695, %v506_v52  ;;  %v460_v47 = vrot.slane %v2123_v57, %v2100_v28  ;;  %v529_v0 = vmul.f32 1.442695, %v507_v41 }
 0x146   :  { %1761 = vpow2.f32 %v517_v53  ;;  %v484_v1 = vrot.slane %v2123_v57, %v2115_v36  ;;  %v531_v8 = vmul.f32 1.442695, %v508_v63  ;;  %v523_v13 = vmul.f32 1.442695, %v504_v7 }
 0x147   :  { %1763 = vpow2.f32 %v519_v54  ;;  %v509_v61 = vsub.f32 %v2025_v40, %v456_v59  ;;  %v510_v50 = vsub.f32 %v2037_v46, %v460_v47  ;;  %v464_v40 = vrot.slane %v2123_v57, %v2103_v29 }
 0x148   :  { %1765 = vpow2.f32 %v521_v44  ;;  %v516_v5 = vsub.f32 %v306_v21, %v484_v1  ;;  %v440_v46 = vrot.slane %v415_v32, %v2140_v6  ;;  %v468_v19 = vrot.slane %v2123_v57, %v2126_v58 }
 0x149   :  { %1767 = vpow2.f32 %v527_v45  ;;  %v533_v2 = vmul.f32 1.442695, %v509_v61  ;;  %v535_v9 = vmul.f32 1.442695, %v510_v50  ;;  %v511_v15 = vsub.f32 %v2043_v49, %v464_v40 }
 0x14a   :  { %1769 = vpow2.f32 %v529_v0  ;;  %v547_v4 = vmul.f32 1.442695, %v516_v5  ;;  %v505_v17 = vsub.f32 %v2031_v43, %v440_v46  ;;  %v472_v23 = vrot.slane %v2123_v57, %v2140_v6 }
 0x14b   :  { %1771 = vpow2.f32 %v533_v2  ;;  %v537_v21 = vmul.f32 1.442695, %v511_v15  ;;  %v512_v24 = vsub.f32 %v2054_v55, %v468_v19  ;;  %v476_v26 = vrot.slane %v2123_v57, %v2106_v30 }
 0x14c   :  { %1773 = vpow2.f32 %v531_v8  ;;  %v525_v22 = vmul.f32 1.442695, %v505_v17  ;;  %v513_v27 = vsub.f32 %v2029_v42, %v472_v23  ;;  %v480_v33 = vrot.slane %v2123_v57, %v2109_v31 }
 0x14d   :  { %1775 = vpow2.f32 %v535_v9  ;;  %v539_v20 = vmul.f32 1.442695, %v512_v24  ;;  %v514_v34 = vsub.f32 %v2075_v3, %v476_v26 }
 0x14e   :  { %1777 = vpow2.f32 %v523_v13  ;;  %v541_v35 = vmul.f32 1.442695, %v513_v27  ;;  %v515_v42 = vsub.f32 %v2088_v18, %v480_v33 }
 0x14f   :  { %1779 = vpow2.f32 %v547_v4  ;;  %v543_v38 = vmul.f32 1.442695, %v514_v34 }
 0x150   :  { %1781 = vpow2.f32 %v537_v21  ;;  %v545_v48 = vmul.f32 1.442695, %v515_v42 }
 0x151   :  { %1783 = vpow2.f32 %v525_v22 }
 0x152   :  { %1785 = vpow2.f32 %v539_v20 }
 0x153   :  { %v2145_v14 = vpop.eup %1761  ;;  %1787 = vpow2.f32 %v541_v35 }
 0x154   :  { %v2149_v16 = vpop.eup %1763  ;;  %566 = vperm.xlu0 %1757, %v2145_v14   ;;  %1789 = vpow2.f32 %v543_v38 }
 0x155   :  { %569 = vperm.xlu1 %1758, %v2149_v16   ;;  %v2153_v56 = vpop.eup %1765  ;;  %1791 = vpow2.f32 %v545_v48 }
 0x156   :  { %v2158_v11 = vpop.eup %1767 }
 0x157   :  { %v2162_v49 = vpop.eup %1769 }
 0x158   :  { %581 = vperm.xlu0 %1757, %v2158_v11   ;;  %v2167_v43 = vpop.eup %1771 }
 0x159   :  { %572 = vperm.xlu1 %1758, %v2153_v56   ;;  %v2171_v25 = vpop.eup %1773 }
 0x15a   :  { %v2176_v32 = vpop.eup %1775 }
 0x15b   :  { %v2180_v55 = vpop.eup %1777 }
 0x15c   :  { %584 = vperm.xlu0 %1757, %v2162_v49   ;;  %v2185_v37 = vpop.eup %1779 }
 0x15d   :  { %590 = vperm.xlu1 %1758, %v2167_v43   ;;  %v2190_v39 = vpop.eup %1781 }
 0x15e   :  { %v2193_v51 = vpop.eup %1783 }
 0x15f   :  { %v2196_v3 = vpop.eup %1785 }
 0x160   :  { %587 = vperm.xlu0 %1757, %v2171_v25   ;;  %v2199_v52 = vpop.eup %1787 }
 0x161   :  { %593 = vperm.xlu1 %1758, %v2176_v32   ;;  %v2202_v18 = vpop.eup %1789 }
 0x162   :  { %v2205_v53 = vpop.eup %1791 }
 0x164   :  { %611 = vperm.xlu0 %1757, %v2185_v37  }
 0x165   :  { %575 = vperm.xlu1 %1758, %v2180_v55  }
 0x169   :  { %596 = vperm.xlu1 %1758, %v2190_v39  }
 0x16d   :  { %578 = vperm.xlu1 %1758, %v2193_v51  }
 0x171   :  { %599 = vperm.xlu1 %1758, %v2196_v3  }
 0x175   :  { %602 = vperm.xlu1 %1758, %v2199_v52  }
 0x179   :  { %605 = vperm.xlu1 %1758, %v2202_v18  }
 0x17d   :  { %608 = vperm.xlu1 %1758, %v2205_v53  }
 0x1cf   :  { %v567_v59 = vpop.permute.xlu0 %566 }
 0x1d0   :  { %v570_v54 = vpop.permute.xlu1 %569  ;;  %v616_v61 = vrot.slane %v567_v59, %v1915_v10 }
 0x1d1   :  { %v620_v62 = vrot.slane %v570_v54, %v1915_v10 }
 0x1d3   :  { %v582_v44 = vpop.permute.xlu0 %581  ;;  %v677_v50 = vsel %vm389_vm1, %v620_v62, %v616_v61 }
 0x1d4   :  { %v573_v57 = vpop.permute.xlu1 %572  ;;  %v636_v5 = vrot.slane %v582_v44, %v1915_v10 }
 0x1d5   :  { %v624_v0 = vrot.slane %v573_v57, %v1915_v10 }
 0x1d7   :  { %v585_v47 = vpop.permute.xlu0 %584  ;;  %v678_v7 = vsel %vm391_vm2, %v624_v0, %v677_v50 }
 0x1d8   :  { %v591_v60 = vpop.permute.xlu1 %590  ;;  %v640_v13 = vrot.slane %v585_v47, %v1915_v10 }
 0x1d9   :  { %v648_v27 = vrot.slane %v591_v60, %v1915_v10 }
 0x1db   :  { %v588_v8 = vpop.permute.xlu0 %587 }
 0x1dc   :  { %v594_v41 = vpop.permute.xlu1 %593  ;;  %v644_v15 = vrot.slane %v588_v8, %v1915_v10 }
 0x1dd   :  { %v652_v24 = vrot.slane %v594_v41, %v1915_v10 }
 0x1df   :  { %v684_v35 = vsel %vm389_vm1, %v652_v24, %v648_v27  ;;  %v612_v38 = vpop.permute.xlu0 %611 }
 0x1e0   :  { %v576_v45 = vpop.permute.xlu1 %575  ;;  %v676_v60 = vrot.slane %v612_v38, %v1915_v10 }
 0x1e1   :  { %v628_v1 = vrot.slane %v576_v45, %v1915_v10 }
 0x1e3   :  { %v679_v9 = vsel %vm393_vm3, %v628_v1, %v678_v7 }
 0x1e4   :  { %v597_v63 = vpop.permute.xlu1 %596 }
 0x1e5   :  { %v656_v26 = vrot.slane %v597_v63, %v1915_v10 }
 0x1e7   :  { %v685_v48 = vsel %vm391_vm2, %v656_v26, %v684_v35 }
 0x1e8   :  { %v579_v2 = vpop.permute.xlu1 %578 }
 0x1e9   :  { %v632_v40 = vrot.slane %v579_v2, %v1915_v10 }
 0x1eb   :  { %v680_v46 = vsel %vm395_vm4, %v632_v40, %v679_v9 }
 0x1ec   :  { %v600_v4 = vpop.permute.xlu1 %599  ;;  %v681_v17 = vsel %vm397_vm5, %v636_v5, %v680_v46 }
 0x1ed   :  { %v682_v19 = vsel %vm399_vm6, %v640_v13, %v681_v17  ;;  %v660_v20 = vrot.slane %v600_v4, %v1915_v10 }
 0x1ee   :  { %v683_v21 = vsel %vm401_vm7, %v644_v15, %v682_v19 }
 0x1ef   :  { %v693_v22 = vsel %vm412_vm8, %v683_v21, 0.0  ;;  %v686_v54 = vsel %vm393_vm3, %v660_v20, %v685_v48 }
 0x1f0   :  { %694 = vadd.xlane.f32.xlu1 %v693_v22  ;;  %v603_v23 = vpop.permute.xlu1 %602 }
 0x1f1   :  { %v664_v34 = vrot.slane %v603_v23, %v1915_v10 }
 0x1f3   :  { %v687_v59 = vsel %vm395_vm4, %v664_v34, %v686_v54 }
 0x1f4   :  { %v606_v33 = vpop.permute.xlu1 %605 }
 0x1f5   :  { %v668_v42 = vrot.slane %v606_v33, %v1915_v10 }
 0x1f7   :  { %v688_v44 = vsel %vm397_vm5, %v668_v42, %v687_v59 }
 0x1f8   :  { %v609_v57 = vpop.permute.xlu1 %608 }
 0x1f9   :  { %v672_v41 = vrot.slane %v609_v57, %v1915_v10 }
 0x1fb   :  { %v689_v45 = vsel %vm399_vm6, %v672_v41, %v688_v44 }
 0x1fc   :  { %v690_v47 = vsel %vm401_vm7, %v676_v60, %v689_v45  ;;  %v1055_v60 = vld [vmem:[%s2476_s4] sm:$0xff] }
 0x1fd   :  { %v696_v61 = vsel %vm412_vm8, %v690_v47, 0.0 }
 0x1fe   :  { %697 = vadd.xlane.f32.xlu0 %v696_v61  ;;  %v2311_v61 = vand.u32 4294901760, %v1055_v60 }
 0x279   :  { %v695_v62 = vpop.xlane.xlu1 %694 }
 0x27a   :  { %v708_v63 = vrot.slane %v695_v62, %v2100_v28  ;;  %v704_v0 = vrot.slane %v695_v62, %v1921_v12  ;;  %v712_v1 = vrot.slane %v695_v62, %v2103_v29  ;;  %v716_v40 = vrot.slane %v695_v62, %v2126_v58 }
 0x27b   :  { %v728_v4 = vrot.slane %v695_v62, %v2109_v31 }
 0x27c   :  { %1793 = vrcp.f32 %v708_v63 }
 0x27d   :  { %1795 = vrcp.f32 %v704_v0 }
 0x27e   :  { %1797 = vrcp.f32 %v712_v1  ;;  %v2321_v1 = vsub.f32 %v1055_v60, %v2311_v61 }
 0x287   :  { %v698_v10 = vpop.xlane.xlu0 %697 }
 0x288   :  { %v740_v50 = vrot.slane %v698_v10, %v2100_v28  ;;  %v736_v2 = vrot.slane %v698_v10, %v1921_v12  ;;  %v744_v7 = vrot.slane %v698_v10, %v2103_v29  ;;  %v748_v15 = vrot.slane %v698_v10, %v2126_v58 }
 0x289   :  { %v1794_v8 = vpop.eup %1793  ;;  %v720_v12 = vrot.slane %v695_v62, %v2140_v6  ;;  %v752_v29 = vrot.slane %v698_v10, %v2140_v6  ;;  %v732_v6 = vrot.slane %v695_v62, %v2115_v36 }
 0x28a   :  { %v1796_v5 = vpop.eup %1795  ;;  %v784_v9 = vmul.f32 %v1794_v8, %v2149_v16  ;;  %1799 = vrcp.f32 %v740_v50  ;;  %v724_v16 = vrot.slane %v695_v62, %v2106_v30 }
 0x28b   :  { %v1798_v13 = vpop.eup %1797  ;;  %v782_v46 = vmul.f32 %v1796_v5, %v2145_v14  ;;  %1801 = vrcp.f32 %v736_v2  ;;  %v756_v14 = vrot.slane %v698_v10, %v2106_v30  ;;  %v2328_v2 = vand.u32 4294901760, %v2321_v1  ;;  %v31_v5 = vld [vmem:[%s2473_s1 + $0x8] sm:$0xff] }
 0x28c   :  { %820 = vperm.xlu1 %1758, %v784_v9   ;;  %1803 = vrcp.f32 %v744_v7  ;;  %v786_v28 = vmul.f32 %v1798_v13, %v2153_v56  ;;  %v760_v56 = vrot.slane %v698_v10, %v2109_v31  ;;  %v30_v9 = vld [vmem:[%s2473_s1] sm:$0xff] }
 0x28d   :  { %815 = vperm.xlu0 %1757, %v782_v46   ;;  %1805 = vrcp.f32 %v716_v40  ;;  %v1210_v8 = vsub.f32 %v2321_v1, %v2328_v2 }
 0x28e   :  { %1807 = vrcp.f32 %v748_v15 }
 0x28f   :  { %1809 = vrcp.f32 %v720_v12  ;;  %v1211_v40 = vand.u32 4294901760, %v1210_v8 }
 0x290   :  { %825 = vperm.xlu1 %1758, %v786_v28   ;;  %1811 = vrcp.f32 %v752_v29  ;;  %v32_v28 = vld [vmem:[%s2473_s1 + $0x10] sm:$0xff] }
 0x291   :  { %1813 = vrcp.f32 %v724_v16 }
 0x292   :  { %1815 = vrcp.f32 %v756_v14 }
 0x293   :  { %1817 = vrcp.f32 %v728_v4 }
 0x294   :  { %1819 = vrcp.f32 %v760_v56  ;;  %v39_v56 = vld [vmem:[%s2473_s1 + $0x48] sm:$0xff] }
 0x295   :  { %1821 = vrcp.f32 %v732_v6  ;;  %v38_v6 = vld [vmem:[%s2473_s1 + $0x40] sm:$0xff] }
 0x297   :  { %v1800_v58 = vpop.eup %1799 }
 0x298   :  { %v1802_v17 = vpop.eup %1801  ;;  %v800_v19 = vmul.f32 %v1800_v58, %v2176_v32  ;;  %v764_v32 = vrot.slane %v698_v10, %v2115_v36 }
 0x299   :  { %v1804_v21 = vpop.eup %1803  ;;  %v798_v22 = vmul.f32 %v1802_v17, %v2167_v43 }
 0x29a   :  { %v1806_v23 = vpop.eup %1805  ;;  %860 = vperm.xlu1 %1758, %v800_v19   ;;  %v802_v30 = vmul.f32 %v1804_v21, %v2190_v39  ;;  %1823 = vrcp.f32 %v764_v32 }
 0x29b   :  { %855 = vperm.xlu0 %1757, %v798_v22   ;;  %v1808_v24 = vpop.eup %1807  ;;  %v788_v26 = vmul.f32 %v1806_v23, %v2180_v55 }
 0x29c   :  { %v1810_v27 = vpop.eup %1809  ;;  %v804_v31 = vmul.f32 %v1808_v24, %v2196_v3 }
 0x29d   :  { %v1812_v43 = vpop.eup %1811  ;;  %v790_v20 = vmul.f32 %v1810_v27, %v2193_v51 }
 0x29e   :  { %865 = vperm.xlu1 %1758, %v802_v30   ;;  %v1814_v33 = vpop.eup %1813  ;;  %v806_v39 = vmul.f32 %v1812_v43, %v2199_v52  ;;  %v1058_v52 = vld [vmem:[%s2476_s4 + $0x18] sm:$0xff] }
 0x29f   :  { %830 = vperm.xlu0 %1757, %v788_v26   ;;  %v1816_v34 = vpop.eup %1815  ;;  %v792_v55 = vmul.f32 %v1814_v33, %v2158_v11  ;;  %v33_v33 = vld [vmem:[%s2473_s1 + $0x18] sm:$0xff] }
 0x2a0   :  { %v1818_v35 = vpop.eup %1817  ;;  %v808_v36 = vmul.f32 %v1816_v34, %v2202_v18  ;;  %v2275_v18 = vand.u32 4294901760, %v1058_v52 }
 0x2a1   :  { %v1820_v42 = vpop.eup %1819  ;;  %v794_v3 = vmul.f32 %v1818_v35, %v2162_v49  ;;  %v1057_v49 = vld [vmem:[%s2476_s4 + $0x10] sm:$0xff] }
 0x2a2   :  { %870 = vperm.xlu1 %1758, %v804_v31   ;;  %v1822_v38 = vpop.eup %1821  ;;  %v810_v51 = vmul.f32 %v1820_v42, %v2205_v53  ;;  %v2281_v53 = vsub.f32 %v1058_v52, %v2275_v18  ;;  %1686 = vmatprep.subr.mxu0 %v2275_v18 }
 0x2a3   :  { %835 = vperm.xlu0 %1757, %v790_v20   ;;  %v796_v48 = vmul.f32 %v1822_v38, %v2171_v25  ;;  %v2283_v25 = vand.u32 4294901760, %v1057_v49  ;;  %1687 = vmatpush3.msra.mxu0 %v2275_v18  ;;  %v40_v20 = vld [vmem:[%s2473_s1 + $0x50] sm:$0xff] }
 0x2a4   :  { %v2291_v57 = vand.u32 4294901760, %v2281_v53 }
 0x2a5   :  { %v2294_v59 = vsub.f32 %v1057_v49, %v2283_v25  ;;  %1688 = vmatprep.subr.mxu0 %v2283_v25 }
 0x2a6   :  { %875 = vperm.xlu1 %1758, %v806_v39   ;;  %1689 = vmatpush3.msra.mxu0 %v2283_v25  ;;  %v1189_v44 = vsub.f32 %v2281_v53, %v2291_v57 }
 0x2a7   :  { %840 = vperm.xlu0 %1757, %v792_v55   ;;  %v1824_v54 = vpop.eup %1823  ;;  %v2306_v45 = vand.u32 4294901760, %v2294_v59 }
 0x2a8   :  { %v812_v11 = vmul.f32 %v1824_v54, %v2185_v37  ;;  %v1056_v37 = vld [vmem:[%s2476_s4 + $0x8] sm:$0xff]  ;;  %v1190_v62 = vand.u32 4294901760, %v1189_v44 }
 0x2a9   :  { %v2296_v41 = vand.u32 4294901760, %v1056_v37  ;;  %v1196_v63 = vsub.f32 %v2294_v59, %v2306_v45 }
 0x2aa   :  { %880 = vperm.xlu1 %1758, %v808_v36   ;;  %1697 = vmatprep.subr.mxu1 %v1190_v62 }
 0x2ab   :  { %845 = vperm.xlu0 %1757, %v794_v3   ;;  %v2309_v47 = vsub.f32 %v1056_v37, %v2296_v41  ;;  %1690 = vmatprep.subr.mxu0 %v2296_v41  ;;  %v1197_v10 = vand.u32 4294901760, %v1196_v63 }
 0x2ac   :  { %1691 = vmatpush3.msra.mxu0 %v2296_v41  ;;  %1698 = vmatpush3.msra.mxu1 %v1190_v62 }
 0x2ad   :  { %v2318_v0 = vand.u32 4294901760, %v2309_v47  ;;  %1692 = vmatprep.subr.mxu0 %v2311_v61  ;;  %1699 = vmatprep.subr.mxu1 %v1197_v10 }
 0x2ae   :  { %885 = vperm.xlu1 %1758, %v810_v51   ;;  %1693 = vmatpush3.msra.mxu0 %v2311_v61  ;;  %v41_v51 = vld [vmem:[%s2473_s1 + $0x58] sm:$0xff] }
 0x2af   :  { %850 = vperm.xlu0 %1757, %v796_v48   ;;  %v1203_v50 = vsub.f32 %v2309_v47, %v2318_v0  ;;  %1708 = vmatprep.subr.mxu0 %v2281_v53 }
 0x2b0   :  { %1700 = vmatpush3.msra.mxu1 %v1197_v10 }
 0x2b1   :  { %v1204_v7 = vand.u32 4294901760, %v1203_v50 }
 0x2b3   :  { %890 = vperm.xlu0 %1757, %v812_v11   ;;  %1701 = vmatprep.subr.mxu1 %v1204_v7  ;;  %v34_v11 = vld [vmem:[%s2473_s1 + $0x20] sm:$0xff] }
 0x2b4   :  { %1702 = vmatpush3.msra.mxu1 %v1204_v7  ;;  %v42_v7 = vld [vmem:[%s2473_s1 + $0x60] sm:$0xff] }
 0x2b5   :  { %1703 = vmatprep.subr.mxu1 %v1211_v40 }
 0x2b6   :  { %1704 = vmatpush3.msra.mxu1 %v1211_v40 }
 0x2b7   :  { %1719 = vmatprep.subr.mxu1 %v2275_v18 }
 0x307   :  { %v821_v13 = vpop.permute.xlu1 %820 }
 0x308   :  { %v816_v46 = vpop.permute.xlu0 %815  ;;  %v894_v15 = vmul.f32 %v821_v13, %v31_v5  ;;  %v35_v13 = vld [vmem:[%s2473_s1 + $0x28] sm:$0xff] }
 0x309   :  { %v893_v12 = vmul.f32 %v816_v46, %v30_v9 }
 0x30a   :  { %v916_v16 = vsel %vm258_vm0, %v894_v15, 0.0 }
 0x30b   :  { %v826_v29 = vpop.permute.xlu1 %825  ;;  %v909_v14 = vsel %vm258_vm0, %v893_v12, 0.0  ;;  %v917_v58 = vrot.slane %v916_v16, 4 }
 0x30c   :  { %v895_v4 = vmul.f32 %v826_v29, %v32_v28  ;;  %v910_v17 = vrot.slane %v909_v14, 4 }
 0x30d   :  { %v918_v21 = vadd.f32 %v917_v58, %v916_v16 }
 0x30e   :  { %v923_v19 = vsel %vm258_vm0, %v895_v4, 0.0  ;;  %v911_v22 = vadd.f32 %v910_v17, %v909_v14 }
 0x30f   :  { %v924_v30 = vrot.slane %v923_v19, 4  ;;  %v919_v27 = vrot.slane %v918_v21, 2 }
 0x310   :  { %v912_v31 = vrot.slane %v911_v22, 2 }
 0x311   :  { %v925_v35 = vadd.f32 %v924_v30, %v923_v19  ;;  %v920_v48 = vadd.f32 %v919_v27, %v918_v21 }
 0x312   :  { %v913_v54 = vadd.f32 %v912_v31, %v911_v22  ;;  %v36_v31 = vld [vmem:[%s2473_s1 + $0x30] sm:$0xff] }
 0x313   :  { %v926_v60 = vrot.slane %v925_v35, 2  ;;  %v921_v8 = vrot.slane %v920_v48, 1 }
 0x314   :  { %v914_v40 = vrot.slane %v913_v54, 1 }
 0x315   :  { %v861_v23 = vpop.permute.xlu1 %860  ;;  %v927_v28 = vadd.f32 %v926_v60, %v925_v35 }
 0x316   :  { %v902_v24 = vmul.f32 %v861_v23, %v39_v56  ;;  %v856_v26 = vpop.permute.xlu0 %855  ;;  %v922_v56 = vadd.f32 %v921_v8, %v920_v48  ;;  %v915_v21 = vadd.f32 %v914_v40, %v913_v54  ;;  %v43_v23 = vld [vmem:[%s2473_s1 + $0x68] sm:$0xff] }
 0x317   :  { %v901_v32 = vmul.f32 %v856_v26, %v38_v6 }
 0x318   :  { %v972_v43 = vsel %vm258_vm0, %v902_v24, 0.0  ;;  %v1037_v48 = vsel %vm389_vm1, %v922_v56, %v915_v21 }
 0x319   :  { %v973_v39 = vrot.slane %v972_v43, 4  ;;  %v965_v34 = vsel %vm258_vm0, %v901_v32, 0.0  ;;  %v866_v55 = vpop.permute.xlu1 %865 }
 0x31a   :  { %v831_v36 = vpop.permute.xlu0 %830  ;;  %v966_v42 = vrot.slane %v965_v34, 4  ;;  %v903_v3 = vmul.f32 %v866_v55, %v40_v20 }
 0x31b   :  { %v896_v38 = vmul.f32 %v831_v36, %v33_v33  ;;  %v974_v52 = vadd.f32 %v973_v39, %v972_v43  ;;  %v928_v43 = vrot.slane %v927_v28, 1 }
 0x31c   :  { %v967_v63 = vadd.f32 %v966_v42, %v965_v34  ;;  %v979_v10 = vsel %vm258_vm0, %v903_v3, 0.0 }
 0x31d   :  { %v930_v49 = vsel %vm258_vm0, %v896_v38, 0.0  ;;  %v871_v37 = vpop.permute.xlu1 %870  ;;  %v975_v46 = vrot.slane %v974_v52, 2  ;;  %v980_v29 = vrot.slane %v979_v10, 4 }
 0x31e   :  { %v904_v44 = vmul.f32 %v871_v37, %v41_v51  ;;  %v836_v62 = vpop.permute.xlu0 %835  ;;  %v931_v5 = vrot.slane %v930_v49, 4  ;;  %v968_v58 = vrot.slane %v967_v63, 2  ;;  %v44_v51 = vld [vmem:[%s2473_s1 + $0x70] sm:$0xff]  ;;  %v929_v37 = vadd.f32 %v928_v43, %v927_v28 }
 0x31f   :  { %v897_v50 = vmul.f32 %v836_v62, %v34_v11  ;;  %v976_v30 = vadd.f32 %v975_v46, %v974_v52  ;;  %v981_v20 = vadd.f32 %v980_v29, %v979_v10 }
 0x320   :  { %v986_v9 = vsel %vm258_vm0, %v904_v44, 0.0  ;;  %v932_v22 = vadd.f32 %v931_v5, %v930_v49  ;;  %v969_v34 = vadd.f32 %v968_v58, %v967_v63  ;;  %v37_v63 = vld [vmem:[%s2473_s1 + $0x38] sm:$0xff] }
 0x321   :  { %v937_v15 = vsel %vm258_vm0, %v897_v50, 0.0  ;;  %v876_v12 = vpop.permute.xlu1 %875  ;;  %v987_v17 = vrot.slane %v986_v9, 4  ;;  %v977_v54 = vrot.slane %v976_v30, 1  ;;  %v982_v60 = vrot.slane %v981_v20, 2 }
 0x322   :  { %v938_v16 = vrot.slane %v937_v15, 4  ;;  %v905_v14 = vmul.f32 %v876_v12, %v42_v7  ;;  %v841_v4 = vpop.permute.xlu0 %840  ;;  %v933_v36 = vrot.slane %v932_v22, 2  ;;  %v970_v50 = vrot.slane %v969_v34, 1 }
 0x323   :  { %v898_v19 = vmul.f32 %v841_v4, %v35_v13  ;;  %v988_v55 = vadd.f32 %v987_v17, %v986_v9  ;;  %v978_v12 = vadd.f32 %v977_v54, %v976_v30 }
 0x324   :  { %v993_v6 = vsel %vm258_vm0, %v905_v14, 0.0  ;;  %v939_v24 = vadd.f32 %v938_v16, %v937_v15  ;;  %v934_v5 = vadd.f32 %v933_v36, %v932_v22  ;;  %v45_v15 = vld [vmem:[%s2473_s1 + $0x78] sm:$0xff]  ;;  %v983_v14 = vadd.f32 %v982_v60, %v981_v20 }
 0x325   :  { %v994_v26 = vrot.slane %v993_v6, 4  ;;  %v944_v32 = vsel %vm258_vm0, %v898_v19, 0.0  ;;  %v881_v27 = vpop.permute.xlu1 %880  ;;  %v989_v7 = vrot.slane %v988_v55, 2  ;;  %v971_v36 = vadd.f32 %v970_v50, %v969_v34 }
 0x326   :  { %v945_v33 = vrot.slane %v944_v32, 4  ;;  %v846_v39 = vpop.permute.xlu0 %845  ;;  %v906_v35 = vmul.f32 %v881_v27, %v43_v23  ;;  %v940_v11 = vrot.slane %v939_v24, 2  ;;  %v935_v23 = vrot.slane %v934_v5, 1 }
 0x327   :  { %v995_v42 = vadd.f32 %v994_v26, %v993_v6  ;;  %v899_v38 = vmul.f32 %v846_v39, %v36_v31  ;;  %v990_v56 = vadd.f32 %v989_v7, %v988_v55 }
 0x328   :  { %v946_v3 = vadd.f32 %v945_v33, %v944_v32  ;;  %v1000_v52 = vsel %vm258_vm0, %v906_v35, 0.0  ;;  %v941_v28 = vadd.f32 %v940_v11, %v939_v24  ;;  %v984_v33 = vrot.slane %v983_v14, 1 }
 0x329   :  { %v886_v49 = vpop.permute.xlu1 %885  ;;  %v1001_v62 = vrot.slane %v1000_v52, 4  ;;  %v951_v8 = vsel %vm258_vm0, %v899_v38, 0.0  ;;  %v996_v9 = vrot.slane %v995_v42, 2 }
 0x32a   :  { %v947_v44 = vrot.slane %v946_v3, 2  ;;  %v851_v10 = vpop.permute.xlu0 %850  ;;  %v907_v40 = vmul.f32 %v886_v49, %v44_v51  ;;  %v952_v46 = vrot.slane %v951_v8, 4  ;;  %v942_v31 = vrot.slane %v941_v28, 1 }
 0x32b   :  { %v1002_v13 = vadd.f32 %v1001_v62, %v1000_v52  ;;  %v900_v16 = vmul.f32 %v851_v10, %v37_v63  ;;  %v997_v26 = vadd.f32 %v996_v9, %v995_v42  ;;  %v936_v51 = vadd.f32 %v935_v23, %v934_v5  ;;  %v27_v23 = vld [vmem:[%s2472_s0 + $0x8] sm:$0xff] }
 0x32c   :  { %v1007_v29 = vsel %vm258_vm0, %v907_v40, 0.0  ;;  %v948_v4 = vadd.f32 %v947_v44, %v946_v3  ;;  %v953_v17 = vadd.f32 %v952_v46, %v951_v8  ;;  %v991_v3 = vrot.slane %v990_v56, 1 }
 0x32d   :  { %v1003_v58 = vrot.slane %v1002_v13, 2  ;;  %v1008_v21 = vrot.slane %v1007_v29, 4  ;;  %v958_v22 = vsel %vm258_vm0, %v900_v16, 0.0  ;;  %v998_v54 = vrot.slane %v997_v26, 1 }
 0x32e   :  { %v891_v19 = vpop.permute.xlu0 %890  ;;  %v954_v32 = vrot.slane %v953_v17, 2  ;;  %v959_v27 = vrot.slane %v958_v22, 4  ;;  %v949_v20 = vrot.slane %v948_v4, 1  ;;  %v943_v42 = vadd.f32 %v942_v31, %v941_v28 }
 0x32f   :  { %v908_v6 = vmul.f32 %v891_v19, %v45_v15  ;;  %v1004_v30 = vadd.f32 %v1003_v58, %v1002_v13  ;;  %v1009_v24 = vadd.f32 %v1008_v21, %v1007_v29  ;;  %v1038_v62 = vsel %vm391_vm2, %v929_v37, %v1037_v48 }
 0x330   :  { %v955_v39 = vadd.f32 %v954_v32, %v953_v17  ;;  %v960_v35 = vadd.f32 %v959_v27, %v958_v22  ;;  %v985_v63 = vadd.f32 %v984_v33, %v983_v14  ;;  %v950_v10 = vadd.f32 %v949_v20, %v948_v4  ;;  %v26_v4 = vld [vmem:[%s2472_s0] sm:$0xff] }
 0x331   :  { %v1014_v43 = vsel %vm258_vm0, %v908_v6, 0.0  ;;  %v1010_v55 = vrot.slane %v1009_v24, 2  ;;  %v1005_v49 = vrot.slane %v1004_v30, 1  ;;  %v992_v8 = vadd.f32 %v991_v3, %v990_v56 }
 0x332   :  { %v1015_v38 = vrot.slane %v1014_v43, 4  ;;  %v956_v11 = vrot.slane %v955_v39, 1  ;;  %v961_v52 = vrot.slane %v960_v35, 2  ;;  %v1039_v50 = vsel %vm393_vm3, %v936_v51, %v1038_v62 }
 0x333   :  { %v1011_v60 = vadd.f32 %v1010_v55, %v1009_v24  ;;  %v999_v13 = vadd.f32 %v998_v54, %v997_v26  ;;  %v1044_v46 = vsel %vm389_vm1, %v978_v12, %v971_v36  ;;  %v1040_v15 = vsel %vm395_vm4, %v943_v42, %v1039_v50 }
 0x334   :  { %v1016_v44 = vadd.f32 %v1015_v38, %v1014_v43  ;;  %v962_v7 = vadd.f32 %v961_v52, %v960_v35  ;;  %v957_v40 = vadd.f32 %v956_v11, %v955_v39  ;;  %v1006_v28 = vadd.f32 %v1005_v49, %v1004_v30 }
 0x335   :  { %v1012_v9 = vrot.slane %v1011_v60, 1  ;;  %v1045_v16 = vsel %vm391_vm2, %v985_v63, %v1044_v46  ;;  %v1041_v48 = vsel %vm397_vm5, %v950_v10, %v1040_v15 }
 0x336   :  { %v1017_v34 = vrot.slane %v1016_v44, 2  ;;  %v963_v5 = vrot.slane %v962_v7, 1  ;;  %v1046_v58 = vsel %vm393_vm3, %v992_v8, %v1045_v16  ;;  %v1042_v17 = vsel %vm399_vm6, %v957_v40, %v1041_v48 }
 0x337   :  { %v1013_v37 = vadd.f32 %v1012_v9, %v1011_v60  ;;  %v1047_v12 = vsel %vm395_vm4, %v999_v13, %v1046_v58  ;;  %v1837_v9 = vld [vmem:[%s2475_s3 + $0x8] sm:$0xff] }
 0x338   :  { %v1018_v29 = vadd.f32 %v1017_v34, %v1016_v44  ;;  %v964_v14 = vadd.f32 %v963_v5, %v962_v7  ;;  %v1048_v21 = vsel %vm397_vm5, %v1006_v28, %v1047_v12  ;;  %v1838_v5 = vld [vmem:[%s2475_s3] sm:$0xff] }
 0x339   :  { %v1049_v26 = vsel %vm399_vm6, %v1013_v37, %v1048_v21 }
 0x33a   :  { %v1019_v19 = vrot.slane %v1018_v29, 1  ;;  %v1043_v56 = vsel %vm401_vm7, %v964_v14, %v1042_v17 }
 0x33b   :  { %v1053_v6 = vadd.f32 %v1043_v56, %v26_v4 }
 0x33c   :  { %v1020_v22 = vadd.f32 %v1019_v19, %v1018_v29 }
 0x33d   :  { %v1067_v32 = vsel %vm258_vm0, %v1053_v6, 0 }
 0x33e   :  { %v1050_v27 = vsel %vm401_vm7, %v1020_v22, %v1049_v26  ;;  %v1141_v31 = vand.u32 4294901760, %v1067_v32 }
 0x33f   :  { %v1054_v30 = vadd.f32 %v1050_v27, %v27_v23 }
 0x340   :  { %1705 = vmatprep.mubr.f32.mxu1 %v1141_v31  ;;  %v1142_v43 = vsub.f32 %v1067_v32, %v1141_v31 }
 0x341   :  { %v1070_v24 = vsel %vm258_vm0, %v1054_v30, 0 }
 0x342   :  { %v1151_v33 = vand.u32 4294901760, %v1070_v24  ;;  %v1143_v20 = vand.u32 4294901760, %v1142_v43 }
 0x344   :  { %v1152_v39 = vsub.f32 %v1070_v24, %v1151_v33  ;;  %1706 = vmatmul.mubr.f32.vlgmr.msra.gmra.mxu1 %v1151_v33  ;;  %v1144_v35 = vsub.f32 %v1142_v43, %v1143_v20 }
 0x345   :  { %1720 = vmatpush3.msra.mxu1 %v2275_v18  ;;  %1727 = vmatprep.mubr.f32.mxu1 %v1143_v20 }
 0x346   :  { %1721 = vmatprep.subr.mxu1 %v2283_v25  ;;  %v1153_v36 = vand.u32 4294901760, %v1152_v39  ;;  %v1145_v3 = vand.u32 4294901760, %v1144_v35 }
 0x347   :  { %1722 = vmatpush3.msra.mxu1 %v2283_v25 }
 0x348   :  { %1723 = vmatprep.subr.mxu1 %v2296_v41  ;;  %v1154_v55 = vsub.f32 %v1152_v39, %v1153_v36  ;;  %1694 = vmatprep.mubr.f32.mxu0 %v1145_v3 }
 0x349   :  { %1724 = vmatpush3.msra.mxu1 %v2296_v41 }
 0x34a   :  { %1725 = vmatprep.subr.mxu1 %v2311_v61  ;;  %v1155_v38 = vand.u32 4294901760, %v1154_v55 }
 0x34b   :  { %1726 = vmatpush3.msra.mxu1 %v2311_v61 }
 0x34c   :  { %1728 = vmatmul.mubr.f32.vlgmr.msra.gmra.mxu1 %v1153_v36  ;;  %1741 = vmatprep.subr.mxu1 %v2275_v18 }
 0x34d   :  { %1695 = vmatmul.mubr.f32.vlgmr.msra.gmra.mxu0 %v1155_v38  ;;  %1742 = vmatpush3.msra.mxu1 %v2275_v18 }
 0x34e   :  { %1709 = vmatpush3.msra.mxu0 %v2281_v53  ;;  %1749 = vmatprep.mubr.f32.mxu1 %v1141_v31  ;;  %v1647_v53 = vld [vmem:[%s2477_s5] ss:$0 sm:$0xff] }
 0x34f   :  { %1710 = vmatprep.subr.mxu0 %v2294_v59  ;;  %1716 = vmatprep.mubr.f32.mxu0 %v1142_v43 }
 0x350   :  { %1743 = vmatprep.subr.mxu1 %v2283_v25  ;;  %1711 = vmatpush3.msra.mxu0 %v2294_v59 }
 0x351   :  { %1744 = vmatpush3.msra.mxu1 %v2283_v25  ;;  %1712 = vmatprep.subr.mxu0 %v2309_v47 }
 0x352   :  { %1745 = vmatprep.subr.mxu1 %v2296_v41  ;;  %1713 = vmatpush3.msra.mxu0 %v2309_v47 }
 0x353   :  { %1746 = vmatpush3.msra.mxu1 %v2296_v41  ;;  %1714 = vmatprep.subr.mxu0 %v2321_v1 }
 0x354   :  { %1747 = vmatprep.subr.mxu1 %v2311_v61  ;;  %1715 = vmatpush3.msra.mxu0 %v2321_v1 }
 0x355   :  { %1748 = vmatpush3.msra.mxu1 %v2311_v61  ;;  %1717 = vmatmul.mubr.f32.vlgmr.msra.gmra.mxu0 %v1152_v39 }
 0x356   :  { %1730 = vmatprep.subr.mxu0 %v2291_v57  ;;  %1750 = vmatmul.mubr.f32.vlgmr.msra.gmra.mxu1 %v1151_v33 }
 0x357   :  { %1731 = vmatpush3.msra.mxu0 %v2291_v57  ;;  %1738 = vmatprep.mubr.f32.mxu0 %v1141_v31 }
 0x358   :  { %1732 = vmatprep.subr.mxu0 %v2306_v45 }
 0x359   :  { %1733 = vmatpush3.msra.mxu0 %v2306_v45 }
 0x35a   :  { %1734 = vmatprep.subr.mxu0 %v2318_v0 }
 0x35b   :  { %1735 = vmatpush3.msra.mxu0 %v2318_v0 }
 0x35c   :  { %1736 = vmatprep.subr.mxu0 %v2328_v2 }
 0x35d   :  { %1737 = vmatpush3.msra.mxu0 %v2328_v2 }
 0x35e   :  { %1739 = vmatmul.mubr.f32.vlgmr.msra.gmra.mxu0 %v1151_v33 }
 0x404   :  { %v1707_v25 = vpop.f32.mrf.mxu1 }
 0x406   :  { %v1248_v45 = vpop.f32.mrf.mxu1 }
 0x40c   :  { %v1729_v1 = vpop.f32.mrf.mxu1 }
 0x40d   :  { %v1696_v18 = vpop.f32.mrf.mxu0 }
 0x40e   :  { %v1158_v59 = vadd.f32 %v1696_v18, %v1647_v53  ;;  %v1418_v52 = vpop.f32.mrf.mxu1 }
 0x40f   :  { %v1147_v57 = vpop.f32.mrf.mxu0 }
 0x410   :  { %v1148_v41 = vadd.f32 %v1647_v53, %v1147_v57  ;;  %v1255_v61 = vadd.f32 %v1707_v25, %v1158_v59 }
 0x412   :  { %v1249_v54 = vadd.f32 %v1248_v45, %v1148_v41 }
 0x415   :  { %v1718_v47 = vpop.f32.mrf.mxu0 }
 0x416   :  { %v1342_v0 = vadd.f32 %v1718_v47, %v1255_v61  ;;  %v1751_v42 = vpop.f32.mrf.mxu1 }
 0x417   :  { %v1334_v51 = vpop.f32.mrf.mxu0 }
 0x418   :  { %v1335_v11 = vadd.f32 %v1334_v51, %v1249_v54  ;;  %v1427_v2 = vadd.f32 %v1729_v1, %v1342_v0  ;;  %v1590_v7 = vpop.f32.mrf.mxu1 }
 0x41a   :  { %v1419_v44 = vadd.f32 %v1418_v52, %v1335_v11 }
 0x41e   :  { %v1740_v49 = vpop.f32.mrf.mxu0 }
 0x41f   :  { %v1516_v60 = vadd.f32 %v1740_v49, %v1427_v2 }
 0x420   :  { %v1509_v62 = vpop.f32.mrf.mxu0 }
 0x421   :  { %v1597_v63 = vadd.f32 %v1751_v42, %v1516_v60  ;;  %v1510_v10 = vadd.f32 %v1509_v62, %v1419_v44 }
 0x423   :  { %1825 = vtanh.f32 %v1597_v63  ;;  %v1591_v8 = vadd.f32 %v1590_v7, %v1510_v10 }
 0x425   :  { %1827 = vtanh.f32 %v1591_v8 }
 0x430   :  { %v1826_v40 = vpop.eup %1825 }
 0x431   :  { %1603 = vst.msk [vmem:[#allocation2 + $0x8] sm:$0xff] %vm258_vm0, %v1826_v40  ;;  %v1605_v34 = vmul.f32 %v1837_v9, %v1826_v40 }
 0x432   :  { %v1828_v50 = vpop.eup %1827 }
 0x433   :  { %1602 = vst.msk [vmem:[#allocation2] sm:$0xff] %vm258_vm0, %v1828_v50  ;;  %v1609_v13 = vsel %vm258_vm0, %v1605_v34, 0.0  ;;  %v1604_v46 = vmul.f32 %v1838_v5, %v1828_v50 }
 0x434   :  { %1610 = vadd.xlane.f32.xlu0 %v1609_v13 }
 0x435   :  { %v1606_v15 = vsel %vm258_vm0, %v1604_v46, 0.0 }
 0x436   :  { %1607 = vadd.xlane.f32.xlu1 %v1606_v15 }
 0x437   :  { %1850 = shalt.err (!%p1847_p4)
}
 0x438   :  { %s1864_s2 = smov 128   ;;  %s1865_s14 = smov 8   ;;  %vm1624_vm9 = vcmask 7168  }
 0x439   :  { %1638 = dma.vmem_to_hbm [thread:$0]  %s1633_s12, 256, %s2478_s6, [#allocation3], %s1864_s2, %s1864_s2, %s1865_s14  }
 0x4bd   :  { %v1611_v28 = vpop.xlane.xlu0 %1610 }
 0x4be   :  { %v1649_v29 = vmul.f32 -1.442695, %v1611_v28 }
 0x4bf   :  { %v1608_v16 = vpop.xlane.xlu1 %1607 }
 0x4c0   :  { %1829 = vpow2.f32 %v1649_v29  ;;  %v1648_v48 = vmul.f32 -1.442695, %v1608_v16 }
 0x4c2   :  { %1831 = vpow2.f32 %v1648_v48 }
 0x4cd   :  { %v1830_v37 = vpop.eup %1829 }
 0x4ce   :  { %v1619_v14 = vadd.f32 1.0, %v1830_v37 }
 0x4cf   :  { %v1832_v4 = vpop.eup %1831 }
 0x4d0   :  { %1833 = vrcp.f32 %v1619_v14  ;;  %v1618_v58 = vadd.f32 1.0, %v1832_v4 }
 0x4d2   :  { %1835 = vrcp.f32 %v1618_v58 }
 0x4dd   :  { %v1834_v17 = vpop.eup %1833 }
 0x4de   :  { %1626 = vst.msk [vmem:[%s2479_s7 + $0x8] sm:$0xff] %vm1624_vm9, %v1834_v17 }
 0x4df   :  { %v1836_v19 = vpop.eup %1835 }
 0x4e0   :  { %1625 = vst.msk [vmem:[%s2479_s7] sm:$0xff] %vm1624_vm9, %v1836_v19 }
 0x4e1   :  { %1859 = dma.done.wait [#allocation3], 256  }
 0x4e2   :  { %1860 = vsyncadd [#allocation3], 4294967040 }
 0x4e3   :  { %1646 = vsyncpa [#allocation3], 1 }

// kernel: kgcn_forward.2
= control target key start
LH: loop header
LB: loop body
LE: loop exit
PB: predicated region body
PF: predicated region fallthrough
CT: control target
= control target key end

     0   :  { %v141_v0 = vlaneseq  ;;  %v4258_v1 = vmov 1966171168   ;;  %vm719_vm0 = vcmask 261120   ;;  %vm1106_vm1 = vcmask 1041409   ;;  %s6022_s3 = inlined_call_operand.vmem [shape: f32[48,32], index: 3, kind: input, shape index: {}]   ;;  %s6023_s2 = inlined_call_operand.vmem [shape: f32[384,32], index: 2, kind: input, shape index: {}]   ;;  %s6024_s4 = inlined_call_operand.vmem [shape: f32[32,32], index: 4, kind: input, shape index: {}]   ;;  %s6025_s1 = inlined_call_operand.vmem [shape: f32[384,32], index: 1, kind: input, shape index: {}]   ;;  %s6026_s0 = inlined_call_operand.vmem [shape: f32[48,32], index: 0, kind: input, shape index: {}]   ;;  %s6027_s5 = inlined_call_operand.vmem [shape: f32[1,32], index: 5, kind: input, shape index: {}]   ;;  %s6028_s6 = inlined_call_operand.vmem [shape: f32[48,32], index: 6, kind: output, shape index: {}]  }
   0x1   :  { %v139_v2 = vunpack.c.l.s4 %v4258_v1  ;;  %v30_v3 = vld [vmem:[%s6022_s3 + $0x8] sm:$0xff]  ;;  %v29_v5 = vld [vmem:[%s6022_s3] sm:$0xff]  ;;  %v4310_v10 = vld [vmem:[%s6022_s3 + $0x10] sm:$0xff]  ;;  %vm1108_vm2 = vcmask 1042434   ;;  %vm1110_vm3 = vcmask 1043459   ;;  %vm1112_vm4 = vcmask 1044484  }
   0x2   :  { %v4299_v4 = vshrl.u32 %v141_v0, 7  ;;  %v186_v7 = vcombine.high %v30_v3, %v30_v3  ;;  %v137_v8 = vcombine.high %v29_v5, %v29_v5  ;;  %v91_v17 = vld [vmem:[%s6023_s2 + $0x40] sm:$0xff]  ;;  %v84_v42 = vld [vmem:[%s6023_s2 + $0x8] sm:$0xff]  ;;  %v85_v49 = vld [vmem:[%s6023_s2 + $0x10] sm:$0xff]  ;;  %vm1114_vm5 = vcmask 1045509  }
   0x3   :  { %v140_v6 = vunpack.c.0.s8 %v139_v2  ;;  %v83_v22 = vld [vmem:[%s6023_s2] sm:$0xff]  ;;  %v92_v55 = vld [vmem:[%s6023_s2 + $0x48] sm:$0xff]  ;;  %v4388_v61 = vld [vmem:[%s6022_s3 + $0x18] sm:$0xff]  ;;  %vm1116_vm6 = vcmask 1046534   ;;  %vm1118_vm7 = vcmask 1047559   ;;  %vm1161_vm8 = vcmask 64512  }
   0x4   :  { %v4313_v11 = vsub.s32 0, %v4299_v4  ;;  %v87_v23 = vld [vmem:[%s6023_s2 + $0x20] sm:$0xff]  ;;  %v88_v1 = vld [vmem:[%s6023_s2 + $0x28] sm:$0xff] }
   0x5   :  { %v4305_v9 = vsub.s32 %v140_v6, %v4299_v4  ;;  %v95_v24 = vld [vmem:[%s6023_s2 + $0x60] sm:$0xff] }
   0x6   :  { %v99_v41 = vld [vmem:[%s6023_s2 + $0x80] sm:$0xff] }
   0x7   :  { %v193_v12 = vrot.slane %v30_v3, %v4305_v9  ;;  %v144_v13 = vrot.slane %v29_v5, %v4305_v9  ;;  %v151_v14 = vrot.slane %v137_v8, %v4305_v9  ;;  %v4319_v15 = vrot.slane %v186_v7, %v4305_v9  ;;  %v93_v5 = vld [vmem:[%s6023_s2 + $0x50] sm:$0xff] }
   0x8   :  { %v4323_v16 = vrot.slane %v4310_v10, %v4305_v9  ;;  %v291_v7 = vrot.slane %v4388_v61, %v4305_v9 }
   0x9   :  { %v209_v18 = vrot.slane %v193_v12, %v4305_v9  ;;  %v160_v19 = vrot.slane %v144_v13, %v4305_v9  ;;  %v4331_v20 = vrot.slane %v151_v14, %v4305_v9  ;;  %v4335_v21 = vrot.slane %v4319_v15, %v4305_v9 }
   0xa   :  { %v4348_v25 = vrot.slane %v4323_v16, %v4305_v9  ;;  %v152_v26 = vcombine.high %v144_v13, %v144_v13  ;;  %v201_v27 = vcombine.high %v193_v12, %v193_v12  ;;  %v153_v28 = vcombine.high %v151_v14, %v151_v14 }
   0xb   :  { %v466_v29 = vrot.slane %v209_v18, %v4313_v11  ;;  %v434_v30 = vrot.slane %v160_v19, %v4313_v11  ;;  %v450_v31 = vrot.slane %v4331_v20, %v4313_v11  ;;  %v482_v32 = vrot.slane %v4335_v21, %v4313_v11 }
   0xc   :  { %v498_v33 = vrot.slane %v4348_v25, %v4313_v11  ;;  %v174_v34 = vrot.slane %v152_v26, %v4305_v9  ;;  %v182_v35 = vcombine.high %v160_v19, %v160_v19  ;;  %v223_v36 = vrot.slane %v201_v27, %v4305_v9  ;;  %v94_v19 = vld [vmem:[%s6023_s2 + $0x58] sm:$0xff] }
   0xd   :  { %v679_v37 = vmul.f32 %v466_v29, %v91_v17  ;;  %v671_v38 = vmul.f32 %v434_v30, %v83_v22  ;;  %v675_v39 = vmul.f32 %v450_v31, %v87_v23  ;;  %v683_v40 = vmul.f32 %v482_v32, %v95_v24 }
   0xe   :  { %v438_v43 = vrot.slane %v174_v34, %v4313_v11  ;;  %v442_v46 = vrot.slane %v182_v35, %v4313_v11  ;;  %v687_v48 = vmul.f32 %v498_v33, %v99_v41  ;;  %v470_v50 = vrot.slane %v223_v36, %v4313_v11  ;;  %v100_v33 = vld [vmem:[%s6023_s2 + $0x88] sm:$0xff] }
   0xf   :  { %v744_v44 = vsel %vm719_vm0, %v679_v37, 0.0  ;;  %v720_v45 = vsel %vm719_vm0, %v671_v38, 0.0  ;;  %v732_v47 = vsel %vm719_vm0, %v675_v39, 0.0  ;;  %v756_v51 = vsel %vm719_vm0, %v683_v40, 0.0 }
  0x10   :  { %745 = vadd.xlane.f32.xlu1 %v744_v44  ;;  %721 = vadd.xlane.f32.xlu0 %v720_v45  ;;  %v672_v52 = vmul.f32 %v438_v43, %v84_v42  ;;  %v4377_v53 = vrot.slane %v153_v28, %v4305_v9  ;;  %v231_v54 = vcombine.high %v209_v18, %v209_v18  ;;  %v768_v57 = vsel %vm719_vm0, %v687_v48, 0.0  ;;  %v86_v18 = vld [vmem:[%s6023_s2 + $0x18] sm:$0xff]  ;;  %v89_v28 = vld [vmem:[%s6023_s2 + $0x30] sm:$0xff] }
  0x11   :  { %v673_v56 = vmul.f32 %v442_v46, %v85_v49  ;;  %v184_v59 = vcombine.high %v174_v34, %v174_v34  ;;  %v233_v60 = vcombine.high %v223_v36, %v223_v36  ;;  %v680_v63 = vmul.f32 %v470_v50, %v92_v55  ;;  %v101_v42 = vld [vmem:[%s6023_s2 + $0x90] sm:$0xff]  ;;  %v107_v46 = vld [vmem:[%s6023_s2 + $0xc0] sm:$0xff] }
  0x12   :  { %v454_v58 = vrot.slane %v4377_v53, %v4313_v11  ;;  %v723_v62 = vsel %vm719_vm0, %v672_v52, 0.0  ;;  %v474_v2 = vrot.slane %v231_v54, %v4313_v11  ;;  %v250_v3 = vcombine.high %v4323_v16, %v4323_v16  ;;  %v97_v55 = vld [vmem:[%s6023_s2 + $0x70] sm:$0xff] }
  0x13   :  { %v183_v6 = vcombine.high %v4331_v20, %v4331_v20  ;;  %v726_v8 = vsel %vm719_vm0, %v673_v56, 0.0  ;;  %v446_v13 = vrot.slane %v184_v59, %v4313_v11  ;;  %v478_v14 = vrot.slane %v233_v60, %v4313_v11  ;;  %v90_v56 = vld [vmem:[%s6023_s2 + $0x38] sm:$0xff] }
  0x14   :  { %733 = vadd.xlane.f32.xlu1 %v732_v47  ;;  %757 = vadd.xlane.f32.xlu0 %v756_v51  ;;  %v676_v12 = vmul.f32 %v454_v58, %v88_v1  ;;  %v747_v16 = vsel %vm719_vm0, %v680_v63, 0.0  ;;  %v681_v17 = vmul.f32 %v474_v2, %v93_v5  ;;  %v272_v20 = vrot.slane %v250_v3, %v4305_v9  ;;  %v108_v58 = vld [vmem:[%s6023_s2 + $0xc8] sm:$0xff] }
  0x15   :  { %v202_v22 = vcombine.high %v4319_v15, %v4319_v15  ;;  %v458_v23 = vrot.slane %v183_v6, %v4313_v11  ;;  %v674_v26 = vmul.f32 %v446_v13, %v86_v18  ;;  %v682_v27 = vmul.f32 %v478_v14, %v94_v19  ;;  %v4483_v1 = vld [vmem:[%s6022_s3 + $0x28] sm:$0xff]  ;;  %v33_v6 = vld [vmem:[%s6022_s3 + $0x20] sm:$0xff] }
  0x16   :  { %v735_v24 = vsel %vm719_vm0, %v676_v12, 0.0  ;;  %v280_v29 = vcombine.high %v4348_v25, %v4348_v25  ;;  %v750_v30 = vsel %vm719_vm0, %v681_v17, 0.0  ;;  %v502_v31 = vrot.slane %v272_v20, %v4313_v11  ;;  %v109_v17 = vld [vmem:[%s6023_s2 + $0xd0] sm:$0xff] }
  0x17   :  { %v4427_v15 = vrot.slane %v202_v22, %v4305_v9  ;;  %v299_v32 = vcombine.high %v291_v7, %v291_v7  ;;  %v307_v34 = vrot.slane %v291_v7, %v4305_v9  ;;  %v677_v35 = vmul.f32 %v458_v23, %v89_v28 }
  0x18   :  { %769 = vadd.xlane.f32.xlu1 %v768_v57  ;;  %724 = vadd.xlane.f32.xlu0 %v723_v62  ;;  %v235_v36 = vcombine.high %v4310_v10, %v4310_v10  ;;  %v729_v25 = vsel %vm719_vm0, %v674_v26, 0.0  ;;  %v506_v37 = vrot.slane %v280_v29, %v4313_v11  ;;  %v232_v38 = vcombine.high %v4335_v21, %v4335_v21  ;;  %v96_v21 = vld [vmem:[%s6023_s2 + $0x68] sm:$0xff]  ;;  %v102_v62 = vld [vmem:[%s6023_s2 + $0x98] sm:$0xff] }
  0x19   :  { %v185_v39 = vcombine.high %v4377_v53, %v4377_v53  ;;  %v753_v40 = vsel %vm719_vm0, %v682_v27, 0.0  ;;  %v688_v41 = vmul.f32 %v502_v31, %v100_v33  ;;  %v486_v10 = vrot.slane %v4427_v15, %v4313_v11  ;;  %v103_v27 = vld [vmem:[%s6023_s2 + $0xa0] sm:$0xff] }
  0x1a   :  { %v4448_v43 = vrot.slane %v299_v32, %v4305_v9  ;;  %v530_v44 = vrot.slane %v307_v34, %v4313_v11  ;;  %v282_v45 = vcombine.high %v272_v20, %v272_v20  ;;  %v249_v47 = vrot.slane %v235_v36, %v4305_v9  ;;  %v123_v33 = vld [vmem:[%s6023_s2 + $0x140] sm:$0xff] }
  0x1b   :  { %v738_v48 = vsel %vm719_vm0, %v677_v35, 0.0  ;;  %v689_v49 = vmul.f32 %v506_v37, %v101_v42  ;;  %v490_v50 = vrot.slane %v232_v38, %v4313_v11  ;;  %v462_v51 = vrot.slane %v185_v39, %v4313_v11  ;;  %v124_v42 = vld [vmem:[%s6023_s2 + $0x148] sm:$0xff] }
  0x1c   :  { %727 = vadd.xlane.f32.xlu1 %v726_v8  ;;  %748 = vadd.xlane.f32.xlu0 %v747_v16  ;;  %v771_v52 = vsel %vm719_vm0, %v688_v41, 0.0  ;;  %v684_v53 = vmul.f32 %v486_v10, %v96_v21  ;;  %v534_v54 = vrot.slane %v4448_v43, %v4313_v11  ;;  %v329_v57 = vcombine.high %v307_v34, %v307_v34  ;;  %v98_v34 = vld [vmem:[%s6023_s2 + $0x78] sm:$0xff]  ;;  %v125_v10 = vld [vmem:[%s6023_s2 + $0x150] sm:$0xff] }
  0x1d   :  { %v695_v59 = vmul.f32 %v530_v44, %v107_v46  ;;  %v510_v60 = vrot.slane %v282_v45, %v4313_v11  ;;  %v4478_v63 = vrot.slane %v249_v47, %v4305_v9  ;;  %v774_v2 = vsel %vm719_vm0, %v689_v49, 0.0  ;;  %v110_v21 = vld [vmem:[%s6023_s2 + $0xd8] sm:$0xff] }
  0x1e   :  { %v685_v3 = vmul.f32 %v490_v50, %v97_v55  ;;  %v678_v5 = vmul.f32 %v462_v51, %v90_v56  ;;  %v284_v7 = vcombine.high %v4388_v61, %v4388_v61  ;;  %v759_v8 = vsel %vm719_vm0, %v684_v53, 0.0 }
  0x1f   :  { %v696_v12 = vmul.f32 %v534_v54, %v108_v58  ;;  %v538_v13 = vrot.slane %v329_v57, %v4313_v11  ;;  %v234_v14 = vcombine.high %v4427_v15, %v4427_v15  ;;  %v792_v16 = vsel %vm719_vm0, %v695_v59, 0.0 }
  0x20   :  { %736 = vadd.xlane.f32.xlu1 %v735_v24  ;;  %751 = vadd.xlane.f32.xlu0 %v750_v30  ;;  %v690_v18 = vmul.f32 %v510_v60, %v102_v62  ;;  %v389_v19 = vrot.slane %v4483_v1, %v4305_v9  ;;  %v514_v61 = vrot.slane %v4478_v63, %v4313_v11  ;;  %v762_v24 = vsel %vm719_vm0, %v685_v3, 0.0 }
  0x21   :  { %v251_v20 = vcombine.high %v249_v47, %v249_v47  ;;  %v331_v22 = vcombine.high %v4448_v43, %v4448_v43  ;;  %v340_v23 = vrot.slane %v33_v6, %v4305_v9  ;;  %v741_v26 = vsel %vm719_vm0, %v678_v5, 0.0 }
  0x22   :  { %v397_v28 = vcombine.high %v389_v19, %v389_v19  ;;  %v405_v29 = vrot.slane %v389_v19, %v4305_v9  ;;  %v795_v30 = vsel %vm719_vm0, %v696_v12, 0.0  ;;  %v697_v31 = vmul.f32 %v538_v13, %v109_v17  ;;  %v115_v17 = vld [vmem:[%s6023_s2 + $0x100] sm:$0xff]  ;;  %v120_v19 = vld [vmem:[%s6023_s2 + $0x128] sm:$0xff] }
  0x23   :  { %v494_v15 = vrot.slane %v234_v14, %v4313_v11  ;;  %v4515_v32 = vrot.slane %v284_v7, %v4305_v9  ;;  %v333_v37 = vcombine.high %v33_v6, %v33_v6  ;;  %v691_v38 = vmul.f32 %v514_v61, %v103_v27 }
  0x24   :  { %730 = vadd.xlane.f32.xlu1 %v729_v25  ;;  %754 = vadd.xlane.f32.xlu0 %v753_v40  ;;  %v419_v35 = vrot.slane %v397_v28, %v4305_v9  ;;  %v594_v36 = vrot.slane %v405_v29, %v4313_v11  ;;  %v427_v25 = vcombine.high %v405_v29, %v405_v29  ;;  %v777_v43 = vsel %vm719_vm0, %v690_v18, 0.0 }
  0x25   :  { %v4526_v39 = vrot.slane %v251_v20, %v4305_v9  ;;  %v542_v40 = vrot.slane %v331_v22, %v4313_v11  ;;  %v4530_v41 = vrot.slane %v340_v23, %v4305_v9  ;;  %v798_v47 = vsel %vm719_vm0, %v697_v31, 0.0  ;;  %v121_v20 = vld [vmem:[%s6023_s2 + $0x130] sm:$0xff] }
  0x26   :  { %v598_v44 = vrot.slane %v419_v35, %v4313_v11  ;;  %v4543_v45 = vmul.f32 %v594_v36, %v123_v33  ;;  %v602_v46 = vrot.slane %v427_v25, %v4313_v11  ;;  %v4549_v49 = vrot.slane %v4515_v32, %v4305_v9 }
  0x27   :  { %v281_v50 = vcombine.high %v4478_v63, %v4478_v63  ;;  %v348_v51 = vcombine.high %v340_v23, %v340_v23  ;;  %v347_v54 = vrot.slane %v333_v37, %v4305_v9  ;;  %v518_v55 = vrot.slane %v4526_v39, %v4313_v11  ;;  %v122_v37 = vld [vmem:[%s6023_s2 + $0x138] sm:$0xff] }
  0x28   :  { %739 = vadd.xlane.f32.xlu1 %v738_v48  ;;  %772 = vadd.xlane.f32.xlu0 %v771_v52  ;;  %v686_v48 = vmul.f32 %v494_v15, %v98_v34  ;;  %v4553_v52 = vmul.f32 %v598_v44, %v124_v42  ;;  %v4555_v53 = vmul.f32 %v602_v46, %v125_v10  ;;  %v780_v59 = vsel %vm719_vm0, %v691_v38, 0.0  ;;  %v129_v46 = vld [vmem:[%s6023_s2 + $0x170] sm:$0xff] }
  0x29   :  { %v698_v56 = vmul.f32 %v542_v40, %v110_v21  ;;  %v429_v57 = vcombine.high %v419_v35, %v419_v35  ;;  %v382_v58 = vcombine.high %v4483_v1, %v4483_v1  ;;  %v562_v60 = vrot.slane %v4530_v41, %v4313_v11  ;;  %v119_v1 = vld [vmem:[%s6023_s2 + $0x120] sm:$0xff] }
  0x2a   :  { %v363_v62 = vrot.slane %v347_v54, %v4305_v9  ;;  %v349_v63 = vcombine.high %v347_v54, %v347_v54  ;;  %v546_v3 = vrot.slane %v4549_v49, %v4313_v11  ;;  %v522_v5 = vrot.slane %v281_v50, %v4313_v11  ;;  %v105_v50 = vld [vmem:[%s6023_s2 + $0xb0] sm:$0xff] }
  0x2b   :  { %v606_v6 = vrot.slane %v429_v57, %v4313_v11  ;;  %v396_v7 = vrot.slane %v382_v58, %v4305_v9  ;;  %v4581_v12 = vrot.slane %v348_v51, %v4305_v9  ;;  %v378_v18 = vcombine.high %v4530_v41, %v4530_v41  ;;  %v116_v57 = vld [vmem:[%s6023_s2 + $0x108] sm:$0xff] }
  0x2c   :  { %775 = vadd.xlane.f32.xlu1 %v774_v2  ;;  %760 = vadd.xlane.f32.xlu0 %v759_v8  ;;  %v126_v2 = vld [vmem:[%s6023_s2 + $0x158] sm:$0xff]  ;;  %v104_v8 = vld [vmem:[%s6023_s2 + $0xa8] sm:$0xff]  ;;  %v578_v13 = vrot.slane %v363_v62, %v4313_v11  ;;  %v377_v14 = vrot.slane %v349_v63, %v4305_v9  ;;  %v300_v15 = vcombine.high %v4515_v32, %v4515_v32 }
  0x2d   :  { %v4593_v61 = vmul.f32 %v606_v6, %v126_v2  ;;  %v412_v22 = vrot.slane %v396_v7, %v4305_v9  ;;  %v398_v23 = vcombine.high %v396_v7, %v396_v7  ;;  %v692_v31 = vmul.f32 %v518_v55, %v104_v8  ;;  %v128_v32 = vld [vmem:[%s6023_s2 + $0x168] sm:$0xff]  ;;  %v117_v7 = vld [vmem:[%s6023_s2 + $0x110] sm:$0xff] }
  0x2e   :  { %v4603_v27 = vmul.f32 %v578_v13, %v119_v1  ;;  %v582_v28 = vrot.slane %v377_v14, %v4313_v11  ;;  %v381_v34 = vcombine.high %v377_v14, %v377_v14  ;;  %v703_v35 = vmul.f32 %v562_v60, %v115_v17  ;;  %v112_v8 = vld [vmem:[%s6023_s2 + $0xe8] sm:$0xff] }
  0x2f   :  { %v610_v33 = vrot.slane %v412_v22, %v4313_v11  ;;  %v426_v38 = vrot.slane %v398_v23, %v4305_v9  ;;  %v428_v10 = vcombine.high %v412_v22, %v412_v22  ;;  %v566_v21 = vrot.slane %v4581_v12, %v4313_v11 }
  0x30   :  { %796 = vadd.xlane.f32.xlu1 %v795_v30  ;;  %793 = vadd.xlane.f32.xlu0 %v792_v16  ;;  %v379_v16 = vcombine.high %v363_v62, %v363_v62  ;;  %v127_v30 = vld [vmem:[%s6023_s2 + $0x160] sm:$0xff]  ;;  %v4613_v36 = vmul.f32 %v582_v28, %v120_v19  ;;  %v590_v42 = vrot.slane %v381_v34, %v4313_v11  ;;  %v816_v2 = vsel %vm719_vm0, %v703_v35, 0.0 }
  0x31   :  { %v4621_v41 = vmul.f32 %v610_v33, %v127_v30  ;;  %v614_v44 = vrot.slane %v426_v38, %v4313_v11  ;;  %v328_v51 = vrot.slane %v300_v15, %v4305_v9  ;;  %v618_v55 = vrot.slane %v428_v10, %v4313_v11  ;;  %v118_v15 = vld [vmem:[%s6023_s2 + $0x118] sm:$0xff] }
  0x32   :  { %v586_v29 = vrot.slane %v379_v16, %v4313_v11  ;;  %v4639_v54 = vmul.f32 %v590_v42, %v122_v37  ;;  %v693_v9 = vmul.f32 %v522_v5, %v105_v50  ;;  %v570_v62 = vrot.slane %v378_v18, %v4313_v11 }
  0x33   :  { %v4648_v58 = vmul.f32 %v614_v44, %v128_v32  ;;  %v4651_v60 = vmul.f32 %v618_v55, %v129_v46  ;;  %v704_v1 = vmul.f32 %v566_v21, %v116_v57  ;;  %v550_v6 = vrot.slane %v328_v51, %v4313_v11 }
  0x34   :  { %763 = vadd.xlane.f32.xlu1 %v762_v24  ;;  %742 = vadd.xlane.f32.xlu0 %v741_v26  ;;  %v765_v24 = vsel %vm719_vm0, %v686_v48, 0.0  ;;  %v111_v26 = vld [vmem:[%s6023_s2 + $0xe0] sm:$0xff]  ;;  %v4615_v25 = vmul.f32 %v586_v29, %v121_v20  ;;  %v783_v48 = vsel %vm719_vm0, %v692_v31, 0.0  ;;  %v786_v5 = vsel %vm719_vm0, %v693_v9, 0.0 }
  0x35   :  { %v699_v40 = vmul.f32 %v546_v3, %v111_v26  ;;  %v330_v13 = vcombine.high %v4549_v49, %v4549_v49  ;;  %v819_v14 = vsel %vm719_vm0, %v704_v1, 0.0  ;;  %v705_v16 = vmul.f32 %v570_v62, %v117_v7  ;;  %v113_v49 = vld [vmem:[%s6023_s2 + $0xf0] sm:$0xff] }
  0x36   :  { %v700_v17 = vmul.f32 %v550_v6, %v112_v8  ;;  %v283_v18 = vcombine.high %v4526_v39, %v4526_v39  ;;  %v380_v20 = vcombine.high %v4581_v12, %v4581_v12  ;;  %v106_v39 = vld [vmem:[%s6023_s2 + $0xb8] sm:$0xff]  ;;  %v843_v12 = vsel %vm719_vm0, %v4553_v52, 0.0 }
  0x37   :  { %v804_v3 = vsel %vm719_vm0, %v699_v40, 0.0  ;;  %v554_v19 = vrot.slane %v330_v13, %v4313_v11  ;;  %v822_v22 = vsel %vm719_vm0, %v705_v16, 0.0  ;;  %v840_v29 = vsel %vm719_vm0, %v4543_v45, 0.0  ;;  %v114_v52 = vld [vmem:[%s6023_s2 + $0xf8] sm:$0xff] }
  0x38   :  { %799 = vadd.xlane.f32.xlu1 %v798_v47  ;;  %778 = vadd.xlane.f32.xlu0 %v777_v43  ;;  %v801_v43 = vsel %vm719_vm0, %v698_v56, 0.0  ;;  %v430_v47 = vcombine.high %v426_v38, %v426_v38  ;;  %v130_v56 = vld [vmem:[%s6023_s2 + $0x178] sm:$0xff]  ;;  %v807_v23 = vsel %vm719_vm0, %v700_v17, 0.0  ;;  %v574_v28 = vrot.slane %v380_v20, %v4313_v11 }
  0x39   :  { %v701_v26 = vmul.f32 %v554_v19, %v113_v49  ;;  %v332_v31 = vcombine.high %v328_v51, %v328_v51  ;;  %v846_v45 = vsel %vm719_vm0, %v4555_v53, 0.0  ;;  %v828_v42 = vsel %vm719_vm0, %v4603_v27, 0.0 }
  0x3a   :  { %v706_v35 = vmul.f32 %v574_v28, %v118_v15  ;;  %v831_v10 = vsel %vm719_vm0, %v4613_v36, 0.0  ;;  %v834_v53 = vsel %vm719_vm0, %v4615_v25, 0.0  ;;  %v852_v21 = vsel %vm719_vm0, %v4621_v41, 0.0 }
  0x3b   :  { %v810_v33 = vsel %vm719_vm0, %v701_v26, 0.0  ;;  %v558_v37 = vrot.slane %v332_v31, %v4313_v11  ;;  %v837_v27 = vsel %vm719_vm0, %v4639_v54, 0.0  ;;  %v855_v44 = vsel %vm719_vm0, %v4648_v58, 0.0 }
  0x3c   :  { %781 = vadd.xlane.f32.xlu1 %v780_v59  ;;  %766 = vadd.xlane.f32.xlu0 %v765_v24  ;;  %v622_v59 = vrot.slane %v430_v47, %v4313_v11  ;;  %v526_v24 = vrot.slane %v283_v18, %v4313_v11  ;;  %v825_v38 = vsel %vm719_vm0, %v706_v35, 0.0  ;;  %v913_v57 = vand.u32 127, %v141_v0 }
  0x3d   :  { %v702_v40 = vmul.f32 %v558_v37, %v114_v52 }
  0x3e   :  { %v4654_v63 = vmul.f32 %v622_v59, %v130_v56  ;;  %v694_v30 = vmul.f32 %v526_v24, %v106_v39 }
  0x3f   :  { %v813_v32 = vsel %vm719_vm0, %v702_v40, 0.0 }
  0x40   :  { %784 = vadd.xlane.f32.xlu1 %v783_v48  ;;  %802 = vadd.xlane.f32.xlu0 %v801_v43  ;;  %v789_v34 = vsel %vm719_vm0, %v694_v30, 0.0  ;;  %v849_v43 = vsel %vm719_vm0, %v4593_v61, 0.0  ;;  %v858_v61 = vsel %vm719_vm0, %v4651_v60, 0.0  ;;  %v861_v36 = vsel %vm719_vm0, %v4654_v63, 0.0 }
  0x41   :  { %v4745_v60 = vsub.s32 %v913_v57, %v4299_v4 }
  0x43   :  { %6056 = vst [vmem:[#allocation2_spill] sm:$0xff] %v4745_v60 }
  0x44   :  { %817 = vadd.xlane.f32.xlu1 %v816_v2  ;;  %805 = vadd.xlane.f32.xlu0 %v804_v3 }
  0x48   :  { %787 = vadd.xlane.f32.xlu1 %v786_v5  ;;  %820 = vadd.xlane.f32.xlu0 %v819_v14 }
  0x4c   :  { %823 = vadd.xlane.f32.xlu1 %v822_v22  ;;  %808 = vadd.xlane.f32.xlu0 %v807_v23 }
  0x50   :  { %844 = vadd.xlane.f32.xlu1 %v843_v12  ;;  %841 = vadd.xlane.f32.xlu0 %v840_v29 }
  0x54   :  { %811 = vadd.xlane.f32.xlu1 %v810_v33  ;;  %790 = vadd.xlane.f32.xlu0 %v789_v34 }
  0x58   :  { %847 = vadd.xlane.f32.xlu1 %v846_v45  ;;  %826 = vadd.xlane.f32.xlu0 %v825_v38 }
  0x5c   :  { %829 = vadd.xlane.f32.xlu1 %v828_v42  ;;  %814 = vadd.xlane.f32.xlu0 %v813_v32 }
  0x60   :  { %832 = vadd.xlane.f32.xlu1 %v831_v10  ;;  %850 = vadd.xlane.f32.xlu0 %v849_v43 }
  0x64   :  { %835 = vadd.xlane.f32.xlu1 %v834_v53  ;;  %853 = vadd.xlane.f32.xlu0 %v852_v21 }
  0x68   :  { %838 = vadd.xlane.f32.xlu1 %v837_v27  ;;  %856 = vadd.xlane.f32.xlu0 %v855_v44 }
  0x6c   :  { %859 = vadd.xlane.f32.xlu0 %v858_v61  ;;  %862 = vadd.xlane.f32.xlu1 %v861_v36 }
  0x99   :  { %v4719_v25 = vpop.xlane.xlu1 %745  ;;  %v4721_v41 = vpop.xlane.xlu0 %721 }
  0x9a   :  { %v917_v0 = vrot.slane %v4721_v41, %v4745_v60  ;;  %v949_v39 = vrot.slane %v4719_v25, %v4745_v60 }
  0x9d   :  { %v4723_v46 = vpop.xlane.xlu1 %733  ;;  %v4725_v47 = vpop.xlane.xlu0 %757 }
  0x9e   :  { %v933_v13 = vrot.slane %v4723_v46, %v4745_v60  ;;  %v965_v52 = vrot.slane %v4725_v47, %v4745_v60 }
  0xa1   :  { %v4727_v48 = vpop.xlane.xlu1 %769  ;;  %v4729_v50 = vpop.xlane.xlu0 %724 }
  0xa2   :  { %v921_v9 = vrot.slane %v4729_v50, %v4745_v60 }
  0xa4   :  { %v1107_v1 = vsel %vm1106_vm1, %v921_v9, %v917_v0 }
  0xa5   :  { %v4731_v51 = vpop.xlane.xlu1 %727  ;;  %v4733_v54 = vpop.xlane.xlu0 %748 }
  0xa6   :  { %v925_v62 = vrot.slane %v4731_v51, %v4745_v60  ;;  %v953_v20 = vrot.slane %v4733_v54, %v4745_v60 }
  0xa8   :  { %v1109_v6 = vsel %vm1108_vm2, %v925_v62, %v1107_v1  ;;  %v1120_v29 = vsel %vm1106_vm1, %v953_v20, %v949_v39 }
  0xa9   :  { %v4735_v55 = vpop.xlane.xlu1 %736  ;;  %v4737_v56 = vpop.xlane.xlu0 %751 }
  0xaa   :  { %v937_v14 = vrot.slane %v4735_v55, %v4745_v60  ;;  %v957_v23 = vrot.slane %v4737_v56, %v4745_v60 }
  0xac   :  { %v1121_v31 = vsel %vm1108_vm2, %v957_v23, %v1120_v29 }
  0xad   :  { %v4740_v58 = vpop.xlane.xlu1 %730  ;;  %v4742_v59 = vpop.xlane.xlu0 %754 }
  0xae   :  { %v929_v3 = vrot.slane %v4740_v58, %v4745_v60  ;;  %v961_v26 = vrot.slane %v4742_v59, %v4745_v60 }
  0xb0   :  { %v1111_v5 = vsel %vm1110_vm3, %v929_v3, %v1109_v6  ;;  %v1122_v35 = vsel %vm1110_vm3, %v961_v26, %v1121_v31  ;;  %v981_v6 = vrot.slane %v4727_v48, %v4745_v60 }
  0xb1   :  { %v4751_v63 = vpop.xlane.xlu1 %739  ;;  %v4753_v2 = vpop.xlane.xlu0 %772  ;;  %v1113_v18 = vsel %vm1112_vm4, %v933_v13, %v1111_v5  ;;  %v1123_v42 = vsel %vm1112_vm4, %v965_v52, %v1122_v35 }
  0xb2   :  { %v941_v19 = vrot.slane %v4751_v63, %v4745_v60  ;;  %v1115_v22 = vsel %vm1114_vm5, %v937_v14, %v1113_v18  ;;  %v985_v3 = vrot.slane %v4753_v2, %v4745_v60 }
  0xb4   :  { %v1117_v12 = vsel %vm1116_vm6, %v941_v19, %v1115_v22  ;;  %v1127_v19 = vsel %vm1106_vm1, %v985_v3, %v981_v6  ;;  %v4259_v6 = vmov 0  }
  0xb5   :  { %v4761_v7 = vpop.xlane.xlu1 %775  ;;  %v4763_v8 = vpop.xlane.xlu0 %760  ;;  %4035 = vset.pattern.permute.xlu1 %v4259_v6  ;;  %4034 = vset.pattern.permute.xlu0 %v4259_v6 }
  0xb6   :  { %v969_v37 = vrot.slane %v4763_v8, %v4745_v60  ;;  %v989_v1 = vrot.slane %v4761_v7, %v4745_v60 }
  0xb8   :  { %v1124_v10 = vsel %vm1114_vm5, %v969_v37, %v1123_v42  ;;  %v1128_v22 = vsel %vm1108_vm2, %v989_v1, %v1127_v19 }
  0xb9   :  { %v4770_v16 = vpop.xlane.xlu1 %796  ;;  %v4772_v17 = vpop.xlane.xlu0 %793 }
  0xba   :  { %v1017_v29 = vrot.slane %v4770_v16, %v4745_v60 }
  0xbd   :  { %v4782_v49 = vpop.xlane.xlu1 %763  ;;  %v4784_v24 = vpop.xlane.xlu0 %742 }
  0xbe   :  { %v945_v28 = vrot.slane %v4784_v24, %v4745_v60  ;;  %v973_v45 = vrot.slane %v4782_v49, %v4745_v60 }
  0xc0   :  { %v1119_v30 = vsel %vm1118_vm7, %v945_v28, %v1117_v12  ;;  %v1125_v43 = vsel %vm1116_vm6, %v973_v45, %v1124_v10 }
  0xc1   :  { %v4796_v15 = vpop.xlane.xlu1 %799  ;;  %v4798_v33 = vpop.xlane.xlu0 %778  ;;  %v1162_v34 = vsel %vm1161_vm8, %v1119_v30, -inf  ;;  %v1013_v30 = vrot.slane %v4772_v17, %v4745_v60 }
  0xc2   :  { %1163 = vmax.xlane.f32.xlu0 %v1162_v34  ;;  %v993_v5 = vrot.slane %v4798_v33, %v4745_v60  ;;  %v1021_v35 = vrot.slane %v4796_v15, %v4745_v60 }
  0xc4   :  { %v1129_v39 = vsel %vm1110_vm3, %v993_v5, %v1128_v22 }
  0xc5   :  { %v4808_v38 = vpop.xlane.xlu1 %781  ;;  %v4810_v40 = vpop.xlane.xlu0 %766 }
  0xc6   :  { %v977_v32 = vrot.slane %v4810_v40, %v4745_v60  ;;  %v997_v13 = vrot.slane %v4808_v38, %v4745_v60 }
  0xc8   :  { %v1126_v53 = vsel %vm1118_vm7, %v977_v32, %v1125_v43  ;;  %v1130_v26 = vsel %vm1112_vm4, %v997_v13, %v1129_v39 }
  0xc9   :  { %v4818_v21 = vpop.xlane.xlu1 %784  ;;  %v4820_v27 = vpop.xlane.xlu0 %802  ;;  %v1165_v44 = vsel %vm1161_vm8, %v1126_v53, -inf  ;;  %v1134_v53 = vsel %vm1106_vm1, %v1017_v29, %v1013_v30 }
  0xca   :  { %1166 = vmax.xlane.f32.xlu1 %v1165_v44  ;;  %v1001_v20 = vrot.slane %v4818_v21, %v4745_v60  ;;  %v1025_v52 = vrot.slane %v4820_v27, %v4745_v60  ;;  %v1135_v3 = vsel %vm1108_vm2, %v1021_v35, %v1134_v53 }
  0xcc   :  { %v1131_v34 = vsel %vm1114_vm5, %v1001_v20, %v1130_v26  ;;  %v1136_v5 = vsel %vm1110_vm3, %v1025_v52, %v1135_v3 }
  0xcd   :  { %v4823_v61 = vpop.xlane.xlu1 %817  ;;  %v4825_v36 = vpop.xlane.xlu0 %805 }
  0xce   :  { %v1029_v42 = vrot.slane %v4825_v36, %v4745_v60  ;;  %v1045_v26 = vrot.slane %v4823_v61, %v4745_v60 }
  0xd0   :  { %v1137_v13 = vsel %vm1112_vm4, %v1029_v42, %v1136_v5 }
  0xd1   :  { %v4827_v57 = vpop.xlane.xlu1 %787  ;;  %v4829_v9 = vpop.xlane.xlu0 %820 }
  0xd2   :  { %v1005_v23 = vrot.slane %v4827_v57, %v4745_v60  ;;  %v1049_v29 = vrot.slane %v4829_v9, %v4745_v60 }
  0xd4   :  { %v1132_v37 = vsel %vm1116_vm6, %v1005_v23, %v1131_v34  ;;  %v1141_v52 = vsel %vm1106_vm1, %v1049_v29, %v1045_v26 }
  0xd5   :  { %v4831_v62 = vpop.xlane.xlu1 %823  ;;  %v4833_v0 = vpop.xlane.xlu0 %808 }
  0xd6   :  { %v1033_v44 = vrot.slane %v4833_v0, %v4745_v60 }
  0xd8   :  { %v1138_v23 = vsel %vm1114_vm5, %v1033_v44, %v1137_v13 }
  0xd9   :  { %v4845_v14 = vpop.xlane.xlu1 %844  ;;  %v4847_v18 = vpop.xlane.xlu0 %841 }
  0xda   :  { %v1077_v6 = vrot.slane %v4847_v18, %v4745_v60 }
  0xdd   :  { %v4857_v28 = vpop.xlane.xlu1 %811  ;;  %v4859_v12 = vpop.xlane.xlu0 %790 }
  0xde   :  { %v1009_v31 = vrot.slane %v4859_v12, %v4745_v60  ;;  %v1037_v1 = vrot.slane %v4857_v28, %v4745_v60 }
  0xe0   :  { %v1133_v45 = vsel %vm1118_vm7, %v1009_v31, %v1132_v37  ;;  %v1139_v39 = vsel %vm1116_vm6, %v1037_v1, %v1138_v23  ;;  %v1053_v37 = vrot.slane %v4831_v62, %v4745_v60  ;;  %v1081_v1 = vrot.slane %v4845_v14, %v4745_v60 }
  0xe1   :  { %v4876_v32 = vpop.xlane.xlu1 %847  ;;  %v4878_v10 = vpop.xlane.xlu0 %826  ;;  %v1168_v43 = vsel %vm1161_vm8, %v1133_v45, -inf }
  0xe2   :  { %1169 = vmax.xlane.f32.xlu0 %v1168_v43  ;;  %v1057_v45 = vrot.slane %v4878_v10, %v4745_v60  ;;  %v1142_v3 = vsel %vm1108_vm2, %v1053_v37, %v1141_v52  ;;  %v1085_v13 = vrot.slane %v4876_v32, %v4745_v60  ;;  %v1148_v52 = vsel %vm1106_vm1, %v1081_v1, %v1077_v6 }
  0xe5   :  { %v4889_v19 = vpop.xlane.xlu1 %829  ;;  %v4891_v20 = vpop.xlane.xlu0 %814 }
  0xe6   :  { %v1041_v22 = vrot.slane %v4891_v20, %v4745_v60  ;;  %v1061_v42 = vrot.slane %v4889_v19, %v4745_v60 }
  0xe8   :  { %v1140_v30 = vsel %vm1118_vm7, %v1041_v22, %v1139_v39  ;;  %v1143_v22 = vsel %vm1110_vm3, %v1057_v45, %v1142_v3  ;;  %v1149_v3 = vsel %vm1108_vm2, %v1085_v13, %v1148_v52 }
  0xe9   :  { %v4902_v31 = vpop.xlane.xlu1 %832  ;;  %v4904_v34 = vpop.xlane.xlu0 %850  ;;  %v1171_v35 = vsel %vm1161_vm8, %v1140_v30, -inf  ;;  %v1144_v23 = vsel %vm1112_vm4, %v1061_v42, %v1143_v22 }
  0xea   :  { %6057 = vst [vmem:[#allocation3_spill] sm:$0xff] %v4904_v34  ;;  %1172 = vmax.xlane.f32.xlu1 %v1171_v35  ;;  %v1065_v44 = vrot.slane %v4902_v31, %v4745_v60  ;;  %v1089_v39 = vrot.slane %v4904_v34, %v4745_v60 }
  0xec   :  { %v1145_v37 = vsel %vm1114_vm5, %v1065_v44, %v1144_v23 }
  0xed   :  { %v4914_v43 = vpop.xlane.xlu1 %835  ;;  %v4916_v53 = vpop.xlane.xlu0 %853 }
  0xee   :  { %6058 = vst [vmem:[#allocation4_spill] sm:$0xff] %v4914_v43  ;;  %6059 = vst [vmem:[#allocation5_spill] sm:$0xff] %v4916_v53  ;;  %v1069_v5 = vrot.slane %v4914_v43, %v4745_v60  ;;  %v1093_v30 = vrot.slane %v4916_v53, %v4745_v60  ;;  %v1150_v43 = vsel %vm1110_vm3, %v1089_v39, %v1149_v3 }
  0xf0   :  { %v1146_v42 = vsel %vm1116_vm6, %v1069_v5, %v1145_v37  ;;  %v1151_v44 = vsel %vm1112_vm4, %v1093_v30, %v1150_v43  ;;  %v4967_v43 = vsub.s32 2, %v4299_v4  ;;  %v4970_v30 = vsub.s32 5, %v4299_v4 }
  0xf1   :  { %v4933_v26 = vpop.xlane.xlu1 %838  ;;  %v4935_v29 = vpop.xlane.xlu0 %856 }
  0xf2   :  { %6060 = vst [vmem:[#allocation6_spill] sm:$0xff] %v4933_v26  ;;  %v1073_v35 = vrot.slane %v4933_v26, %v4745_v60  ;;  %v1097_v45 = vrot.slane %v4935_v29, %v4745_v60 }
  0xf4   :  { %v1147_v22 = vsel %vm1118_vm7, %v1073_v35, %v1146_v42  ;;  %v1152_v5 = vsel %vm1114_vm5, %v1097_v45, %v1151_v44  ;;  %v4964_v35 = vsub.s32 1, %v4299_v4 }
  0xf5   :  { %v4949_v34 = vpop.xlane.xlu0 %859  ;;  %v4951_v53 = vpop.xlane.xlu1 %862  ;;  %v1174_v26 = vsel %vm1161_vm8, %v1147_v22, -inf }
  0xf6   :  { %v1101_v1 = vrot.slane %v4949_v34, %v4745_v60  ;;  %v1105_v6 = vrot.slane %v4951_v53, %v4745_v60  ;;  %1175 = vmax.xlane.f32.xlu0 %v1174_v26 }
  0xf8   :  { %v1153_v13 = vsel %vm1116_vm6, %v1101_v1, %v1152_v5 }
  0xf9   :  { %v1154_v23 = vsel %vm1118_vm7, %v1105_v6, %v1153_v13 }
  0xfa   :  { %v1177_v39 = vsel %vm1161_vm8, %v1154_v23, -inf  ;;  %v4987_v23 = vsub.s32 3, %v4299_v4 }
  0xfb   :  { %1178 = vmax.xlane.f32.xlu1 %v1177_v39 }
 0x14b   :  { %v4972_v37 = vpop.xlane.xlu0 %1163 }
 0x14c   :  { %v1189_v26 = vrot.slane %v4972_v37, %v4313_v11  ;;  %v1193_v52 = vrot.slane %v4972_v37, %v4964_v35  ;;  %v1197_v45 = vrot.slane %v4972_v37, %v4967_v43  ;;  %v1209_v42 = vrot.slane %v4972_v37, %v4970_v30 }
 0x14e   :  { %v1426_v3 = vsub.f32 %v4721_v41, %v1189_v26  ;;  %v1427_v22 = vsub.f32 %v4729_v50, %v1193_v52  ;;  %v1428_v44 = vsub.f32 %v4731_v51, %v1197_v45  ;;  %v1431_v1 = vsub.f32 %v4735_v55, %v1209_v42 }
 0x14f   :  { %v1201_v55 = vrot.slane %v4972_v37, %v4987_v23  ;;  %v5000_v45 = vsub.s32 4, %v4299_v4 }
 0x150   :  { %v1474_v6 = vmul.f32 1.442695, %v1426_v3  ;;  %v1476_v5 = vmul.f32 1.442695, %v1427_v22  ;;  %v1478_v13 = vmul.f32 1.442695, %v1428_v44 }
 0x151   :  { %v1484_v39 = vmul.f32 1.442695, %v1431_v1  ;;  %v1429_v42 = vsub.f32 %v4740_v58, %v1201_v55 }
 0x152   :  { %4042 = vpow2.f32 %v1474_v6 }
 0x153   :  { %4044 = vpow2.f32 %v1476_v5  ;;  %v4989_v60 = vpop.xlane.xlu1 %1166  ;;  %v1480_v1 = vmul.f32 1.442695, %v1429_v42 }
 0x154   :  { %v1221_v41 = vrot.slane %v4989_v60, %v4313_v11  ;;  %v1225_v50 = vrot.slane %v4989_v60, %v4964_v35  ;;  %4046 = vpow2.f32 %v1478_v13  ;;  %v1229_v3 = vrot.slane %v4989_v60, %v4967_v43 }
 0x155   :  { %4048 = vpow2.f32 %v1484_v39  ;;  %v1233_v13 = vrot.slane %v4989_v60, %v4987_v23 }
 0x156   :  { %v1434_v51 = vsub.f32 %v4719_v25, %v1221_v41  ;;  %v1435_v26 = vsub.f32 %v4733_v54, %v1225_v50  ;;  %v1205_v25 = vrot.slane %v4972_v37, %v5000_v45  ;;  %v1436_v6 = vsub.f32 %v4737_v56, %v1229_v3 }
 0x157   :  { %v5024_v56 = vsub.s32 6, %v4299_v4 }
 0x158   :  { %v1490_v52 = vmul.f32 1.442695, %v1434_v51  ;;  %v1492_v22 = vmul.f32 1.442695, %v1435_v26  ;;  %v1430_v5 = vsub.f32 %v4723_v46, %v1205_v25  ;;  %v1494_v39 = vmul.f32 1.442695, %v1436_v6 }
 0x159   :  { %v1237_v51 = vrot.slane %v4989_v60, %v5000_v45  ;;  %v1437_v46 = vsub.f32 %v4742_v59, %v1233_v13  ;;  %v1213_v26 = vrot.slane %v4972_v37, %v5024_v56 }
 0x15a   :  { %4050 = vpow2.f32 %v1490_v52  ;;  %v1482_v50 = vmul.f32 1.442695, %v1430_v5  ;;  %v1241_v5 = vrot.slane %v4989_v60, %v4970_v30 }
 0x15b   :  { %4052 = vpow2.f32 %v1492_v22  ;;  %v1438_v52 = vsub.f32 %v4725_v47, %v1237_v51  ;;  %v1496_v42 = vmul.f32 1.442695, %v1437_v46  ;;  %v5055_v46 = vsub.s32 7, %v4299_v4 }
 0x15c   :  { %4054 = vpow2.f32 %v1480_v1  ;;  %v1432_v1 = vsub.f32 %v4751_v63, %v1213_v26 }
 0x15d   :  { %4056 = vpow2.f32 %v1494_v39  ;;  %v1498_v13 = vmul.f32 1.442695, %v1438_v52  ;;  %v1217_v4 = vrot.slane %v4972_v37, %v5055_v46 }
 0x15e   :  { %4058 = vpow2.f32 %v1482_v50  ;;  %v1486_v63 = vmul.f32 1.442695, %v1432_v1 }
 0x15f   :  { %v5005_v44 = vpop.eup %4042  ;;  %4060 = vpow2.f32 %v1496_v42 }
 0x160   :  { %v5010_v54 = vpop.eup %4044  ;;  %1619 = vperm.xlu0 %4034, %v5005_v44  }
 0x161   :  { %1622 = vperm.xlu1 %4035, %v5010_v54   ;;  %v5014_v58 = vpop.eup %4046 }
 0x162   :  { %v5019_v41 = vpop.eup %4048 }
 0x164   :  { %1634 = vperm.xlu0 %4034, %v5019_v41  }
 0x165   :  { %1625 = vperm.xlu1 %4035, %v5014_v58  }
 0x167   :  { %v5029_v55 = vpop.eup %4050 }
 0x168   :  { %v5037_v22 = vpop.eup %4052 }
 0x169   :  { %1643 = vperm.xlu1 %4035, %v5029_v55   ;;  %v5051_v50 = vpop.eup %4054 }
 0x16a   :  { %v5061_v52 = vpop.eup %4056 }
 0x16b   :  { %v5035_v3 = vpop.xlane.xlu0 %1169 }
 0x16c   :  { %v1253_v25 = vrot.slane %v5035_v3, %v4313_v11  ;;  %v1257_v59 = vrot.slane %v5035_v3, %v4964_v35  ;;  %v1261_v6 = vrot.slane %v5035_v3, %v4967_v43 }
 0x16d   :  { %1646 = vperm.xlu1 %4035, %v5037_v22  }
 0x16e   :  { %v1442_v47 = vsub.f32 %v4727_v48, %v1253_v25  ;;  %v1443_v39 = vsub.f32 %v4753_v2, %v1257_v59  ;;  %v1444_v26 = vsub.f32 %v4761_v7, %v1261_v6  ;;  %v1439_v48 = vsub.f32 %v4763_v8, %v1241_v5  ;;  %v5074_v5 = vpop.eup %4058 }
 0x16f   :  { %v1245_v7 = vrot.slane %v4989_v60, %v5024_v56 }
 0x170   :  { %v1506_v51 = vmul.f32 1.442695, %v1442_v47  ;;  %v1508_v25 = vmul.f32 1.442695, %v1443_v39  ;;  %v1510_v8 = vmul.f32 1.442695, %v1444_v26  ;;  %v5083_v26 = vpop.eup %4060 }
 0x171   :  { %1628 = vperm.xlu1 %4035, %v5051_v50   ;;  %v1500_v1 = vmul.f32 1.442695, %v1439_v48 }
 0x172   :  { %4062 = vpow2.f32 %v1506_v51  ;;  %v1433_v51 = vsub.f32 %v4784_v24, %v1217_v4  ;;  %v1249_v24 = vrot.slane %v4989_v60, %v5055_v46 }
 0x173   :  { %4064 = vpow2.f32 %v1498_v13  ;;  %v5059_v42 = vpop.xlane.xlu1 %1172  ;;  %v1440_v13 = vsub.f32 %v4782_v49, %v1245_v7  ;;  %v1269_v49 = vrot.slane %v5035_v3, %v5000_v45 }
 0x174   :  { %v1285_v2 = vrot.slane %v5059_v42, %v4313_v11  ;;  %v1289_v59 = vrot.slane %v5059_v42, %v4964_v35  ;;  %4066 = vpow2.f32 %v1486_v63  ;;  %v1293_v37 = vrot.slane %v5059_v42, %v4967_v43 }
 0x175   :  { %1649 = vperm.xlu1 %4035, %v5061_v52   ;;  %4068 = vpow2.f32 %v1508_v25  ;;  %v1265_v63 = vrot.slane %v5035_v3, %v4987_v23  ;;  %v1446_v7 = vsub.f32 %v4808_v38, %v1269_v49  ;;  %v1441_v60 = vsub.f32 %v4810_v40, %v1249_v24 }
 0x176   :  { %v1450_v6 = vsub.f32 %v4772_v17, %v1285_v2  ;;  %v1451_v47 = vsub.f32 %v4770_v16, %v1289_v59  ;;  %4070 = vpow2.f32 %v1510_v8  ;;  %v1502_v16 = vmul.f32 1.442695, %v1440_v13 }
 0x177   :  { %4072 = vpow2.f32 %v1500_v1  ;;  %v1452_v48 = vsub.f32 %v4796_v15, %v1293_v37  ;;  %v1488_v2 = vmul.f32 1.442695, %v1433_v51  ;;  %v1445_v59 = vsub.f32 %v4798_v33, %v1265_v63 }
 0x178   :  { %v1524_v39 = vmul.f32 1.442695, %v1451_v47  ;;  %v1522_v17 = vmul.f32 1.442695, %v1450_v6  ;;  %v1273_v15 = vrot.slane %v5035_v3, %v4970_v30  ;;  %v1297_v6 = vrot.slane %v5059_v42, %v4987_v23 }
 0x179   :  { %1631 = vperm.xlu1 %4035, %v5074_v5   ;;  %v1526_v8 = vmul.f32 1.442695, %v1452_v48  ;;  %v1512_v33 = vmul.f32 1.442695, %v1445_v59  ;;  %v1514_v37 = vmul.f32 1.442695, %v1446_v7  ;;  %v1301_v63 = vrot.slane %v5059_v42, %v5000_v45 }
 0x17a   :  { %4074 = vpow2.f32 %v1524_v39  ;;  %v1447_v38 = vsub.f32 %v4818_v21, %v1273_v15  ;;  %v1504_v51 = vmul.f32 1.442695, %v1441_v60  ;;  %v1277_v21 = vrot.slane %v5035_v3, %v5024_v56 }
 0x17b   :  { %4076 = vpow2.f32 %v1522_v17  ;;  %v1453_v17 = vsub.f32 %v4820_v27, %v1297_v6  ;;  %v1454_v24 = vsub.f32 %v4825_v36, %v1301_v63  ;;  %v1305_v36 = vrot.slane %v5059_v42, %v4970_v30 }
 0x17c   :  { %4078 = vpow2.f32 %v1502_v16  ;;  %v1516_v49 = vmul.f32 1.442695, %v1447_v38  ;;  %v1448_v7 = vsub.f32 %v4827_v57, %v1277_v21 }
 0x17d   :  { %1652 = vperm.xlu1 %4035, %v5083_v26   ;;  %4080 = vpow2.f32 %v1488_v2  ;;  %v1528_v59 = vmul.f32 1.442695, %v1453_v17  ;;  %v1455_v17 = vsub.f32 %v4833_v0, %v1305_v36  ;;  %v1281_v0 = vrot.slane %v5035_v3, %v5055_v46 }
 0x17e   :  { %4082 = vpow2.f32 %v1526_v8  ;;  %v1518_v57 = vmul.f32 1.442695, %v1448_v7 }
 0x17f   :  { %v5089_v25 = vpop.eup %4062  ;;  %v5106_v47 = vpop.xlane.xlu0 %1175  ;;  %4084 = vpow2.f32 %v1512_v33  ;;  %v1530_v33 = vmul.f32 1.442695, %v1454_v24  ;;  %v1449_v3 = vsub.f32 %v4859_v12, %v1281_v0 }
 0x180   :  { %v5094_v4 = vpop.eup %4064  ;;  %1667 = vperm.xlu0 %4034, %v5089_v25   ;;  %v1317_v39 = vrot.slane %v5106_v47, %v4313_v11  ;;  %4086 = vpow2.f32 %v1514_v37  ;;  %v1321_v27 = vrot.slane %v5106_v47, %v4964_v35 }
 0x181   :  { %1655 = vperm.xlu1 %4035, %v5094_v4   ;;  %v5101_v1 = vpop.eup %4066  ;;  %4088 = vpow2.f32 %v1504_v51  ;;  %v1520_v12 = vmul.f32 1.442695, %v1449_v3 }
 0x182   :  { %v5108_v13 = vpop.eup %4068  ;;  %v1458_v48 = vsub.f32 %v4823_v61, %v1317_v39  ;;  %4090 = vpow2.f32 %v1516_v49  ;;  %v1325_v61 = vrot.slane %v5106_v47, %v4967_v43  ;;  %v1459_v6 = vsub.f32 %v4829_v9, %v1321_v27 }
 0x183   :  { %v5115_v40 = vpop.eup %4070  ;;  %4092 = vpow2.f32 %v1528_v59  ;;  %v1532_v27 = vmul.f32 1.442695, %v1455_v17 }
 0x184   :  { %1637 = vperm.xlu0 %4034, %v5101_v1   ;;  %v5120_v16 = vpop.eup %4072  ;;  %v1538_v8 = vmul.f32 1.442695, %v1458_v48  ;;  %v5144_v38 = vpop.xlane.xlu1 %1178  ;;  %v1460_v39 = vsub.f32 %v4831_v62, %v1325_v61  ;;  %v1540_v9 = vmul.f32 1.442695, %v1459_v6  ;;  %v1309_v62 = vrot.slane %v5059_v42, %v5024_v56 }
 0x185   :  { %1670 = vperm.xlu1 %4035, %v5108_v13   ;;  %v1353_v51 = vrot.slane %v5144_v38, %v4964_v35  ;;  %v1349_v21 = vrot.slane %v5144_v38, %v4313_v11  ;;  %v1365_v3 = vrot.slane %v5144_v38, %v5000_v45 }
 0x186   :  { %4094 = vpow2.f32 %v1538_v8  ;;  %v1542_v48 = vmul.f32 1.442695, %v1460_v39  ;;  %v1456_v8 = vsub.f32 %v4857_v28, %v1309_v62  ;;  %v1333_v39 = vrot.slane %v5106_v47, %v5000_v45 }
 0x187   :  { %v5127_v2 = vpop.eup %4074  ;;  %4096 = vpow2.f32 %v1530_v33  ;;  %v1467_v24 = vsub.f32 %v4845_v14, %v1353_v51  ;;  %v1466_v7 = vsub.f32 %v4847_v18, %v1349_v21  ;;  %v1357_v14 = vrot.slane %v5144_v38, %v4967_v43 }
 0x188   :  { %1673 = vperm.xlu0 %4034, %v5115_v40   ;;  %v5132_v15 = vpop.eup %4076  ;;  %4098 = vpow2.f32 %v1518_v57  ;;  %v1329_v18 = vrot.slane %v5106_v47, %v4987_v23  ;;  %v1534_v28 = vmul.f32 1.442695, %v1456_v8  ;;  %v1341_v8 = vrot.slane %v5106_v47, %v5024_v56 }
 0x189   :  { %1658 = vperm.xlu1 %4035, %v5120_v16   ;;  %v5139_v60 = vpop.eup %4078  ;;  %4100 = vpow2.f32 %v1540_v9  ;;  %v1556_v36 = vmul.f32 1.442695, %v1467_v24  ;;  %v1554_v6 = vmul.f32 1.442695, %v1466_v7  ;;  %v1468_v51 = vsub.f32 %v4876_v32, %v1357_v14 }
 0x18a   :  { %v5146_v37 = vpop.eup %4080  ;;  %4102 = vpow2.f32 %v1542_v48  ;;  %v1313_v9 = vrot.slane %v5059_v42, %v5055_v46  ;;  %v1461_v21 = vsub.f32 %v4878_v10, %v1329_v18  ;;  %v1337_v32 = vrot.slane %v5106_v47, %v4970_v30  ;;  %v6065_v18 = vld [vmem:[#allocation3_spill] sm:$0xff] }
 0x18b   :  { %v5153_v63 = vpop.eup %4082  ;;  %4104 = vpow2.f32 %v1532_v27  ;;  %v1462_v48 = vsub.f32 %v4889_v19, %v1333_v39  ;;  %v1558_v24 = vmul.f32 1.442695, %v1468_v51  ;;  %v1361_v27 = vrot.slane %v5144_v38, %v4987_v23  ;;  %v6067_v39 = vld [vmem:[#allocation4_spill] sm:$0xff] }
 0x18c   :  { %1694 = vperm.xlu0 %4034, %v5127_v2   ;;  %v5158_v49 = vpop.eup %4084  ;;  %4106 = vpow2.f32 %v1556_v36  ;;  %v1457_v42 = vsub.f32 %v4891_v20, %v1313_v9  ;;  %v1544_v10 = vmul.f32 1.442695, %v1461_v21  ;;  %v1463_v19 = vsub.f32 %v4902_v31, %v1337_v32  ;;  %v6069_v32 = vld [vmem:[#allocation5_spill] sm:$0xff] }
 0x18d   :  { %1691 = vperm.xlu1 %4035, %v5132_v15   ;;  %v5165_v59 = vpop.eup %4086  ;;  %4108 = vpow2.f32 %v1554_v6  ;;  %v1546_v14 = vmul.f32 1.442695, %v1462_v48  ;;  %v1469_v6 = vsub.f32 %v6065_v18, %v1361_v27  ;;  %v1345_v31 = vrot.slane %v5106_v47, %v5055_v46  ;;  %v6071_v47 = vld [vmem:[#allocation6_spill] sm:$0xff] }
 0x18e   :  { %v5170_v61 = vpop.eup %4088  ;;  %4110 = vpow2.f32 %v1534_v28  ;;  %v1536_v20 = vmul.f32 1.442695, %v1457_v42  ;;  %v1464_v51 = vsub.f32 %v6067_v39, %v1341_v8  ;;  %v1369_v21 = vrot.slane %v5144_v38, %v4970_v30 }
 0x18f   :  { %v5177_v33 = vpop.eup %4090  ;;  %4112 = vpow2.f32 %v1520_v12  ;;  %v1548_v12 = vmul.f32 1.442695, %v1463_v19  ;;  %v1470_v48 = vsub.f32 %v6069_v32, %v1365_v3  ;;  %v1377_v8 = vrot.slane %v5144_v38, %v5055_v46 }
 0x190   :  { %1661 = vperm.xlu0 %4034, %v5139_v60   ;;  %v5182_v57 = vpop.eup %4092  ;;  %4114 = vpow2.f32 %v1558_v24  ;;  %v1560_v24 = vmul.f32 1.442695, %v1469_v6  ;;  %v1550_v27 = vmul.f32 1.442695, %v1464_v51 }
 0x191   :  { %1640 = vperm.xlu1 %4035, %v5146_v37   ;;  %4116 = vpow2.f32 %v1544_v10  ;;  %v1465_v10 = vsub.f32 %v6071_v47, %v1345_v31  ;;  %v1562_v3 = vmul.f32 1.442695, %v1470_v48  ;;  %v1473_v31 = vsub.f32 %v4951_v53, %v1377_v8 }
 0x192   :  { %4118 = vpow2.f32 %v1546_v14  ;;  %v1373_v14 = vrot.slane %v5144_v38, %v5024_v56 }
 0x193   :  { %v5189_v17 = vpop.eup %4094  ;;  %4120 = vpow2.f32 %v1536_v20  ;;  %v1471_v20 = vsub.f32 %v4935_v29, %v1369_v21  ;;  %v1552_v6 = vmul.f32 1.442695, %v1465_v10  ;;  %v1568_v29 = vmul.f32 1.442695, %v1473_v31 }
 0x194   :  { %1697 = vperm.xlu0 %4034, %v5153_v63   ;;  %6061 = vst [vmem:[#allocation7_spill] sm:$0xff] %v5189_v17  ;;  %v5194_v62 = vpop.eup %4096  ;;  %4122 = vpow2.f32 %v1548_v12  ;;  %v1472_v51 = vsub.f32 %v4949_v34, %v1373_v14 }
 0x195   :  { %1676 = vperm.xlu1 %4035, %v5158_v49   ;;  %v5201_v0 = vpop.eup %4098  ;;  %4124 = vpow2.f32 %v1560_v24  ;;  %v1564_v38 = vmul.f32 1.442695, %v1471_v20 }
 0x196   :  { %6062 = vst [vmem:[#allocation8_spill] sm:$0xff] %v5201_v0  ;;  %v5206_v7 = vpop.eup %4100  ;;  %4126 = vpow2.f32 %v1550_v27  ;;  %v1566_v32 = vmul.f32 1.442695, %v1472_v51 }
 0x197   :  { %6063 = vst [vmem:[#allocation9_spill] sm:$0xff] %v5206_v7  ;;  %v5213_v36 = vpop.eup %4102  ;;  %4128 = vpow2.f32 %v1562_v3 }
 0x198   :  { %1679 = vperm.xlu0 %4034, %v5165_v59   ;;  %6064 = vst [vmem:[#allocation10_spill] sm:$0xff] %v5213_v36  ;;  %v5218_v28 = vpop.eup %4104  ;;  %4130 = vpow2.f32 %v1552_v6 }
 0x199   :  { %1664 = vperm.xlu1 %4035, %v5170_v61   ;;  %6066 = vst [vmem:[#allocation3_spill] sm:$0xff] %v5218_v28  ;;  %v5225_v9 = vpop.eup %4106  ;;  %4132 = vpow2.f32 %v1564_v38 }
 0x19a   :  { %6068 = vst [vmem:[#allocation4_spill] sm:$0xff] %v5225_v9  ;;  %v5230_v42 = vpop.eup %4108  ;;  %4134 = vpow2.f32 %v1568_v29 }
 0x19b   :  { %6070 = vst [vmem:[#allocation5_spill] sm:$0xff] %v5230_v42  ;;  %v5237_v19 = vpop.eup %4110  ;;  %4136 = vpow2.f32 %v1566_v32 }
 0x19c   :  { %1682 = vperm.xlu0 %4034, %v5177_v33   ;;  %6072 = vst [vmem:[#allocation6_spill] sm:$0xff] %v5237_v19  ;;  %v5242_v18 = vpop.eup %4112 }
 0x19d   :  { %1700 = vperm.xlu1 %4035, %v5182_v57   ;;  %6073 = vst [vmem:[#allocation11_spill] sm:$0xff] %v5242_v18  ;;  %v5247_v39 = vpop.eup %4114 }
 0x19e   :  { %6074 = vst [vmem:[#allocation12_spill] sm:$0xff] %v5247_v39  ;;  %v5250_v12 = vpop.eup %4116 }
 0x19f   :  { %6075 = vst [vmem:[#allocation13_spill] sm:$0xff] %v5250_v12  ;;  %v5254_v21 = vpop.eup %4118 }
 0x1a0   :  { %1715 = vperm.xlu0 %4034, %v5189_v17   ;;  %6076 = vst [vmem:[#allocation14_spill] sm:$0xff] %v5254_v21  ;;  %v5256_v48 = vpop.eup %4120 }
 0x1a1   :  { %1703 = vperm.xlu1 %4035, %v5194_v62   ;;  %6077 = vst [vmem:[#allocation15_spill] sm:$0xff] %v5256_v48  ;;  %v5260_v34 = vpop.eup %4122 }
 0x1a2   :  { %6078 = vst [vmem:[#allocation16_spill] sm:$0xff] %v5260_v34  ;;  %v5262_v53 = vpop.eup %4124 }
 0x1a3   :  { %6079 = vst [vmem:[#allocation17_spill] sm:$0xff] %v5262_v53  ;;  %v5266_v24 = vpop.eup %4126 }
 0x1a4   :  { %1685 = vperm.xlu0 %4034, %v5201_v0   ;;  %6080 = vst [vmem:[#allocation18_spill] sm:$0xff] %v5266_v24  ;;  %v5268_v47 = vpop.eup %4128 }
 0x1a5   :  { %1718 = vperm.xlu1 %4035, %v5206_v7   ;;  %6081 = vst [vmem:[#allocation19_spill] sm:$0xff] %v5268_v47  ;;  %v5272_v10 = vpop.eup %4130 }
 0x1a6   :  { %6082 = vst [vmem:[#allocation20_spill] sm:$0xff] %v5272_v10  ;;  %v5274_v27 = vpop.eup %4132 }
 0x1a7   :  { %6083 = vst [vmem:[#allocation21_spill] sm:$0xff] %v5274_v27  ;;  %v5278_v8 = vpop.eup %4134 }
 0x1a8   :  { %1721 = vperm.xlu0 %4034, %v5213_v36   ;;  %6084 = vst [vmem:[#allocation22_spill] sm:$0xff] %v5278_v8  ;;  %v5280_v14 = vpop.eup %4136 }
 0x1a9   :  { %1706 = vperm.xlu1 %4035, %v5218_v28   ;;  %6085 = vst [vmem:[#allocation23_spill] sm:$0xff] %v5280_v14 }
 0x1ac   :  { %1742 = vperm.xlu0 %4034, %v5225_v9  }
 0x1ad   :  { %1739 = vperm.xlu1 %4035, %v5230_v42  }
 0x1b0   :  { %1709 = vperm.xlu0 %4034, %v5237_v19  }
 0x1b1   :  { %1688 = vperm.xlu1 %4035, %v5242_v18  }
 0x1b4   :  { %1745 = vperm.xlu0 %4034, %v5247_v39  }
 0x1b5   :  { %1724 = vperm.xlu1 %4035, %v5250_v12  }
 0x1b8   :  { %1727 = vperm.xlu0 %4034, %v5254_v21   ;;  %v6086_v21 = vld [vmem:[#allocation2_spill] sm:$0xff] }
 0x1b9   :  { %1712 = vperm.xlu1 %4035, %v5256_v48  }
 0x1bc   :  { %1730 = vperm.xlu0 %4034, %v5260_v34  }
 0x1bd   :  { %1748 = vperm.xlu1 %4035, %v5262_v53  }
 0x1c0   :  { %1733 = vperm.xlu0 %4034, %v5266_v24  }
 0x1c1   :  { %1751 = vperm.xlu1 %4035, %v5268_v47  }
 0x1c4   :  { %1736 = vperm.xlu0 %4034, %v5272_v10  }
 0x1c5   :  { %1754 = vperm.xlu1 %4035, %v5274_v27  }
 0x1c8   :  { %1760 = vperm.xlu0 %4034, %v5278_v8  }
 0x1c9   :  { %1757 = vperm.xlu1 %4035, %v5280_v14  }
 0x1db   :  { %v1620_v29 = vpop.permute.xlu0 %1619 }
 0x1dc   :  { %v1623_v20 = vpop.permute.xlu1 %1622  ;;  %v1765_v8 = vrot.slane %v1620_v29, %v6086_v21 }
 0x1dd   :  { %v1769_v48 = vrot.slane %v1623_v20, %v6086_v21 }
 0x1df   :  { %v1635_v24 = vpop.permute.xlu0 %1634  ;;  %v1954_v9 = vsel %vm1106_vm1, %v1769_v48, %v1765_v8 }
 0x1e0   :  { %v1626_v3 = vpop.permute.xlu1 %1625 }
 0x1e1   :  { %v1773_v39 = vrot.slane %v1626_v3, %v6086_v21  ;;  %v1785_v3 = vrot.slane %v1635_v24, %v6086_v21 }
 0x1e3   :  { %v1955_v36 = vsel %vm1108_vm2, %v1773_v39, %v1954_v9 }
 0x1e4   :  { %v1644_v6 = vpop.permute.xlu1 %1643 }
 0x1e8   :  { %v1647_v31 = vpop.permute.xlu1 %1646 }
 0x1ec   :  { %v1629_v51 = vpop.permute.xlu1 %1628 }
 0x1ed   :  { %v1777_v19 = vrot.slane %v1629_v51, %v6086_v21 }
 0x1ef   :  { %v1956_v20 = vsel %vm1110_vm3, %v1777_v19, %v1955_v36  ;;  %v1797_v36 = vrot.slane %v1644_v6, %v6086_v21 }
 0x1f0   :  { %v1650_v38 = vpop.permute.xlu1 %1649 }
 0x1f1   :  { %v1805_v9 = vrot.slane %v1650_v38, %v6086_v21 }
 0x1f4   :  { %v1632_v32 = vpop.permute.xlu1 %1631 }
 0x1f5   :  { %v1781_v18 = vrot.slane %v1632_v32, %v6086_v21  ;;  %v1801_v32 = vrot.slane %v1647_v31, %v6086_v21 }
 0x1f7   :  { %v1957_v29 = vsel %vm1112_vm4, %v1781_v18, %v1956_v20 }
 0x1f8   :  { %v1653_v10 = vpop.permute.xlu1 %1652  ;;  %v1958_v8 = vsel %vm1114_vm5, %v1785_v3, %v1957_v29 }
 0x1f9   :  { %v1809_v19 = vrot.slane %v1653_v10, %v6086_v21 }
 0x1fb   :  { %v5284_v47 = vpop.permute.xlu0 %1667 }
 0x1fc   :  { %v1656_v27 = vpop.permute.xlu1 %1655 }
 0x1fd   :  { %v1813_v24 = vrot.slane %v1656_v27, %v6086_v21 }
 0x1ff   :  { %v1638_v34 = vpop.permute.xlu0 %1637 }
 0x200   :  { %v1671_v53 = vpop.permute.xlu1 %1670  ;;  %v1789_v0 = vrot.slane %v1638_v34, %v6086_v21 }
 0x202   :  { %v1959_v39 = vsel %vm1116_vm6, %v1789_v0, %v1958_v8 }
 0x203   :  { %v1674_v14 = vpop.permute.xlu0 %1673 }
 0x204   :  { %v1659_v12 = vpop.permute.xlu1 %1658 }
 0x205   :  { %v1817_v29 = vrot.slane %v1659_v12, %v6086_v21 }
 0x207   :  { %v5292_v42 = vpop.permute.xlu0 %1694 }
 0x208   :  { %v5295_v28 = vpop.permute.xlu1 %1691 }
 0x209   :  { %v1861_v17 = vrot.slane %v5295_v28, %v6086_v21 }
 0x20b   :  { %v1662_v7 = vpop.permute.xlu0 %1661 }
 0x20c   :  { %v1641_v51 = vpop.permute.xlu1 %1640  ;;  %v1821_v0 = vrot.slane %v1662_v7, %v6086_v21 }
 0x20d   :  { %v1793_v48 = vrot.slane %v1641_v51, %v6086_v21  ;;  %v1961_v51 = vsel %vm1106_vm1, %v1801_v32, %v1797_v36 }
 0x20e   :  { %v1962_v38 = vsel %vm1108_vm2, %v1805_v9, %v1961_v51 }
 0x20f   :  { %v1698_v18 = vpop.permute.xlu0 %1697  ;;  %v1960_v34 = vsel %vm1118_vm7, %v1793_v48, %v1959_v39  ;;  %v1963_v6 = vsel %vm1110_vm3, %v1809_v19, %v1962_v38  ;;  %v1833_v38 = vrot.slane %v1671_v53, %v6086_v21 }
 0x210   :  { %v1677_v20 = vpop.permute.xlu1 %1676  ;;  %v2002_v31 = vsel %vm1161_vm8, %v1960_v34, 0.0  ;;  %v1964_v3 = vsel %vm1112_vm4, %v1813_v24, %v1963_v6 }
 0x211   :  { %2003 = vadd.xlane.f32.xlu1 %v2002_v31  ;;  %v1965_v27 = vsel %vm1114_vm5, %v1817_v29, %v1964_v3  ;;  %v1837_v29 = vrot.slane %v1674_v14, %v6086_v21  ;;  %v1841_v6 = vrot.slane %v1677_v20, %v6086_v21 }
 0x212   :  { %v1966_v39 = vsel %vm1116_vm6, %v1821_v0, %v1965_v27  ;;  %v1829_v0 = vrot.slane %v5284_v47, %v6086_v21 }
 0x213   :  { %v1680_v10 = vpop.permute.xlu0 %1679 }
 0x214   :  { %v1665_v48 = vpop.permute.xlu1 %1664 }
 0x215   :  { %v1825_v8 = vrot.slane %v1665_v48, %v6086_v21  ;;  %v1845_v48 = vrot.slane %v1680_v10, %v6086_v21  ;;  %v1865_v10 = vrot.slane %v5292_v42, %v6086_v21 }
 0x217   :  { %v1683_v32 = vpop.permute.xlu0 %1682  ;;  %v1967_v12 = vsel %vm1118_vm7, %v1825_v8, %v1966_v39  ;;  %v1968_v8 = vsel %vm1106_vm1, %v1833_v38, %v1829_v0  ;;  %v1975_v42 = vsel %vm1106_vm1, %v1865_v10, %v1861_v17 }
 0x218   :  { %v1701_v36 = vpop.permute.xlu1 %1700  ;;  %v2005_v9 = vsel %vm1161_vm8, %v1967_v12, 0.0  ;;  %v1849_v39 = vrot.slane %v1683_v32, %v6086_v21  ;;  %v1969_v12 = vsel %vm1108_vm2, %v1837_v29, %v1968_v8  ;;  %v1869_v29 = vrot.slane %v1698_v18, %v6086_v21 }
 0x219   :  { %2006 = vadd.xlane.f32.xlu0 %v2005_v9  ;;  %v1970_v14 = vsel %vm1110_vm3, %v1841_v6, %v1969_v12  ;;  %v1873_v0 = vrot.slane %v1701_v36, %v6086_v21 }
 0x21a   :  { %v1971_v47 = vsel %vm1112_vm4, %v1845_v48, %v1970_v14  ;;  %v1976_v14 = vsel %vm1108_vm2, %v1869_v29, %v1975_v42 }
 0x21b   :  { %v1716_v7 = vpop.permute.xlu0 %1715  ;;  %v1972_v38 = vsel %vm1114_vm5, %v1849_v39, %v1971_v47 }
 0x21c   :  { %v1704_v34 = vpop.permute.xlu1 %1703 }
 0x21d   :  { %v1877_v8 = vrot.slane %v1704_v34, %v6086_v21 }
 0x21f   :  { %v1686_v19 = vpop.permute.xlu0 %1685 }
 0x220   :  { %v1719_v31 = vpop.permute.xlu1 %1718  ;;  %v1853_v53 = vrot.slane %v1686_v19, %v6086_v21 }
 0x221   :  { %v1897_v10 = vrot.slane %v1719_v31, %v6086_v21 }
 0x222   :  { %v1973_v19 = vsel %vm1116_vm6, %v1853_v53, %v1972_v38  ;;  %v1977_v53 = vsel %vm1110_vm3, %v1873_v0, %v1976_v14  ;;  %v1893_v0 = vrot.slane %v1716_v7, %v6086_v21 }
 0x223   :  { %v1722_v51 = vpop.permute.xlu0 %1721  ;;  %v1978_v47 = vsel %vm1112_vm4, %v1877_v8, %v1977_v53 }
 0x224   :  { %v1707_v24 = vpop.permute.xlu1 %1706  ;;  %v1982_v42 = vsel %vm1106_vm1, %v1897_v10, %v1893_v0 }
 0x225   :  { %v1881_v39 = vrot.slane %v1707_v24, %v6086_v21 }
 0x227   :  { %v5327_v3 = vpop.permute.xlu0 %1742  ;;  %v1979_v34 = vsel %vm1114_vm5, %v1881_v39, %v1978_v47 }
 0x228   :  { %v5330_v27 = vpop.permute.xlu1 %1739  ;;  %v1929_v7 = vrot.slane %v5327_v3, %v6086_v21 }
 0x22b   :  { %v1710_v9 = vpop.permute.xlu0 %1709 }
 0x22c   :  { %v1689_v20 = vpop.permute.xlu1 %1688  ;;  %v1885_v18 = vrot.slane %v1710_v9, %v6086_v21 }
 0x22d   :  { %v1857_v32 = vrot.slane %v1689_v20, %v6086_v21 }
 0x22f   :  { %v1746_v6 = vpop.permute.xlu0 %1745  ;;  %v1974_v48 = vsel %vm1118_vm7, %v1857_v32, %v1973_v19  ;;  %v1980_v32 = vsel %vm1116_vm6, %v1885_v18, %v1979_v34  ;;  %v1901_v19 = vrot.slane %v1722_v51, %v6086_v21  ;;  %v1925_v51 = vrot.slane %v5330_v27, %v6086_v21 }
 0x230   :  { %v1725_v12 = vpop.permute.xlu1 %1724  ;;  %v2008_v28 = vsel %vm1161_vm8, %v1974_v48, 0.0  ;;  %v1933_v53 = vrot.slane %v1746_v6, %v6086_v21 }
 0x231   :  { %2009 = vadd.xlane.f32.xlu0 %v2008_v28  ;;  %v1905_v48 = vrot.slane %v1725_v12, %v6086_v21  ;;  %v1983_v31 = vsel %vm1108_vm2, %v1901_v19, %v1982_v42  ;;  %v1989_v3 = vsel %vm1106_vm1, %v1929_v7, %v1925_v51 }
 0x232   :  { %v1990_v10 = vsel %vm1108_vm2, %v1933_v53, %v1989_v3 }
 0x233   :  { %v1728_v36 = vpop.permute.xlu0 %1727  ;;  %v1984_v12 = vsel %vm1110_vm3, %v1905_v48, %v1983_v31 }
 0x234   :  { %v1713_v20 = vpop.permute.xlu1 %1712  ;;  %v1909_v8 = vrot.slane %v1728_v36, %v6086_v21 }
 0x235   :  { %v1889_v38 = vrot.slane %v1713_v20, %v6086_v21 }
 0x236   :  { %v1985_v36 = vsel %vm1112_vm4, %v1909_v8, %v1984_v12 }
 0x237   :  { %v1731_v17 = vpop.permute.xlu0 %1730  ;;  %v1981_v24 = vsel %vm1118_vm7, %v1889_v38, %v1980_v32 }
 0x238   :  { %v1749_v29 = vpop.permute.xlu1 %1748  ;;  %v2011_v9 = vsel %vm1161_vm8, %v1981_v24, 0.0  ;;  %v1913_v39 = vrot.slane %v1731_v17, %v6086_v21 }
 0x239   :  { %2012 = vadd.xlane.f32.xlu1 %v2011_v9  ;;  %v1937_v20 = vrot.slane %v1749_v29, %v6086_v21 }
 0x23a   :  { %v1986_v34 = vsel %vm1114_vm5, %v1913_v39, %v1985_v36 }
 0x23b   :  { %v1734_v28 = vpop.permute.xlu0 %1733  ;;  %v1991_v19 = vsel %vm1110_vm3, %v1937_v20, %v1990_v10 }
 0x23c   :  { %v1752_v14 = vpop.permute.xlu1 %1751  ;;  %v1917_v18 = vrot.slane %v1734_v28, %v6086_v21 }
 0x23d   :  { %v1941_v17 = vrot.slane %v1752_v14, %v6086_v21 }
 0x23e   :  { %v1987_v27 = vsel %vm1116_vm6, %v1917_v18, %v1986_v34 }
 0x23f   :  { %v1737_v47 = vpop.permute.xlu0 %1736  ;;  %v1992_v8 = vsel %vm1112_vm4, %v1941_v17, %v1991_v19 }
 0x240   :  { %v1755_v38 = vpop.permute.xlu1 %1754  ;;  %v1921_v32 = vrot.slane %v1737_v47, %v6086_v21 }
 0x241   :  { %v1945_v24 = vrot.slane %v1755_v38, %v6086_v21 }
 0x242   :  { %v1988_v6 = vsel %vm1118_vm7, %v1921_v32, %v1987_v27 }
 0x243   :  { %v1761_v9 = vpop.permute.xlu0 %1760  ;;  %v2014_v29 = vsel %vm1161_vm8, %v1988_v6, 0.0  ;;  %v1993_v42 = vsel %vm1114_vm5, %v1945_v24, %v1992_v8 }
 0x244   :  { %v1758_v0 = vpop.permute.xlu1 %1757  ;;  %v1953_v48 = vrot.slane %v1761_v9, %v6086_v21  ;;  %2015 = vadd.xlane.f32.xlu0 %v2014_v29 }
 0x245   :  { %v1949_v28 = vrot.slane %v1758_v0, %v6086_v21 }
 0x247   :  { %v1994_v39 = vsel %vm1116_vm6, %v1949_v28, %v1993_v42 }
 0x248   :  { %v1995_v14 = vsel %vm1118_vm7, %v1953_v48, %v1994_v39 }
 0x249   :  { %v2017_v31 = vsel %vm1161_vm8, %v1995_v14, 0.0 }
 0x24a   :  { %2018 = vadd.xlane.f32.xlu1 %v2017_v31 }
 0x29a   :  { %v5395_v18 = vpop.xlane.xlu1 %2003 }
 0x29b   :  { %v2029_v51 = vrot.slane %v5395_v18, %v4313_v11  ;;  %v2033_v7 = vrot.slane %v5395_v18, %v4964_v35  ;;  %v2037_v21 = vrot.slane %v5395_v18, %v4967_v43  ;;  %v2041_v53 = vrot.slane %v5395_v18, %v4987_v23 }
 0x29c   :  { %v2045_v34 = vrot.slane %v5395_v18, %v5000_v45  ;;  %v2049_v27 = vrot.slane %v5395_v18, %v4970_v30  ;;  %v2053_v14 = vrot.slane %v5395_v18, %v5024_v56 }
 0x29d   :  { %4138 = vrcp.f32 %v2029_v51 }
 0x29e   :  { %4140 = vrcp.f32 %v2033_v7 }
 0x29f   :  { %4142 = vrcp.f32 %v2037_v21 }
 0x2a2   :  { %v5403_v12 = vpop.xlane.xlu0 %2006 }
 0x2a3   :  { %v2061_v36 = vrot.slane %v5403_v12, %v4313_v11  ;;  %v2065_v47 = vrot.slane %v5403_v12, %v4964_v35  ;;  %v2069_v20 = vrot.slane %v5403_v12, %v4967_v43  ;;  %v2073_v38 = vrot.slane %v5403_v12, %v4987_v23 }
 0x2a4   :  { %v2077_v24 = vrot.slane %v5403_v12, %v5000_v45 }
 0x2a5   :  { %4144 = vrcp.f32 %v2061_v36 }
 0x2a6   :  { %4146 = vrcp.f32 %v2065_v47 }
 0x2a7   :  { %4148 = vrcp.f32 %v2041_v53 }
 0x2a8   :  { %4150 = vrcp.f32 %v2069_v20  ;;  %v2057_v20 = vrot.slane %v5395_v18, %v5055_v46  ;;  %v2089_v18 = vrot.slane %v5403_v12, %v5055_v46 }
 0x2a9   :  { %4152 = vrcp.f32 %v2045_v34 }
 0x2aa   :  { %v4139_v32 = vpop.eup %4138  ;;  %4154 = vrcp.f32 %v2073_v38 }
 0x2ab   :  { %v4141_v17 = vpop.eup %4140  ;;  %v2267_v3 = vmul.f32 %v4139_v32, %v5005_v44  ;;  %4156 = vrcp.f32 %v2049_v27 }
 0x2ac   :  { %v2269_v6 = vmul.f32 %v4141_v17, %v5010_v54  ;;  %v4143_v10 = vpop.eup %4142  ;;  %4158 = vrcp.f32 %v2077_v24 }
 0x2ad   :  { %2364 = vperm.xlu0 %4034, %v2267_v3   ;;  %v2271_v9 = vmul.f32 %v4143_v10, %v5014_v58 }
 0x2ae   :  { %2369 = vperm.xlu1 %4035, %v2269_v6  }
 0x2b2   :  { %v4145_v29 = vpop.eup %4144  ;;  %2374 = vperm.xlu1 %4035, %v2271_v9  }
 0x2b3   :  { %v4147_v19 = vpop.eup %4146  ;;  %v2283_v0 = vmul.f32 %v4145_v29, %v5029_v55 }
 0x2b4   :  { %v4149_v48 = vpop.eup %4148  ;;  %v2285_v44 = vmul.f32 %v4147_v19, %v5037_v22 }
 0x2b5   :  { %v4151_v8 = vpop.eup %4150  ;;  %2404 = vperm.xlu0 %4034, %v2283_v0   ;;  %v2273_v54 = vmul.f32 %v4149_v48, %v5051_v50 }
 0x2b6   :  { %2409 = vperm.xlu1 %4035, %v2285_v44   ;;  %v4153_v28 = vpop.eup %4152  ;;  %v2287_v42 = vmul.f32 %v4151_v8, %v5061_v52  ;;  %v2081_v52 = vrot.slane %v5403_v12, %v4970_v30 }
 0x2b7   :  { %v4155_v39 = vpop.eup %4154  ;;  %v2275_v31 = vmul.f32 %v4153_v28, %v5074_v5 }
 0x2b8   :  { %v4157_v50 = vpop.eup %4156  ;;  %v2289_v51 = vmul.f32 %v4155_v39, %v5083_v26 }
 0x2b9   :  { %2379 = vperm.xlu0 %4034, %v2273_v54   ;;  %v4159_v7 = vpop.eup %4158  ;;  %v2277_v53 = vmul.f32 %v4157_v50, %v5019_v41  ;;  %v2085_v41 = vrot.slane %v5403_v12, %v5024_v56 }
 0x2ba   :  { %2414 = vperm.xlu1 %4035, %v2287_v42   ;;  %v5428_v58 = vpop.xlane.xlu0 %2009  ;;  %v2291_v5 = vmul.f32 %v4159_v7, %v5094_v4 }
 0x2bb   :  { %v2093_v55 = vrot.slane %v5428_v58, %v4313_v11  ;;  %v2097_v22 = vrot.slane %v5428_v58, %v4964_v35  ;;  %v2101_v21 = vrot.slane %v5428_v58, %v4967_v43  ;;  %v2105_v4 = vrot.slane %v5428_v58, %v4987_v23 }
 0x2bc   :  { %v2109_v6 = vrot.slane %v5428_v58, %v5000_v45  ;;  %v2117_v39 = vrot.slane %v5428_v58, %v5024_v56 }
 0x2bd   :  { %4160 = vrcp.f32 %v2093_v55  ;;  %2384 = vperm.xlu0 %4034, %v2275_v31  }
 0x2be   :  { %4162 = vrcp.f32 %v2097_v22  ;;  %2419 = vperm.xlu1 %4035, %v2289_v51  }
 0x2bf   :  { %4164 = vrcp.f32 %v2053_v14 }
 0x2c0   :  { %4166 = vrcp.f32 %v2081_v52 }
 0x2c1   :  { %2389 = vperm.xlu0 %4034, %v2277_v53   ;;  %4168 = vrcp.f32 %v2101_v21 }
 0x2c2   :  { %2424 = vperm.xlu1 %4035, %v2291_v5   ;;  %v5444_v36 = vpop.xlane.xlu1 %2012 }
 0x2c3   :  { %v2125_v26 = vrot.slane %v5444_v36, %v4313_v11  ;;  %v2129_v47 = vrot.slane %v5444_v36, %v4964_v35  ;;  %v2133_v32 = vrot.slane %v5444_v36, %v4967_v43 }
 0x2c5   :  { %4170 = vrcp.f32 %v2125_v26 }
 0x2c6   :  { %4172 = vrcp.f32 %v2129_v47 }
 0x2c7   :  { %4174 = vrcp.f32 %v2057_v20 }
 0x2c8   :  { %4176 = vrcp.f32 %v2085_v41 }
 0x2c9   :  { %4178 = vrcp.f32 %v2105_v4  ;;  %v2153_v4 = vrot.slane %v5444_v36, %v5055_v46 }
 0x2ca   :  { %v4161_v34 = vpop.eup %4160  ;;  %4180 = vrcp.f32 %v2133_v32  ;;  %v3090_v32 = vld [vmem:[%s6024_s4 + $0x10] sm:$0xff] }
 0x2cb   :  { %v4163_v38 = vpop.eup %4162  ;;  %v2299_v17 = vmul.f32 %v4161_v34, %v5089_v25  ;;  %4182 = vrcp.f32 %v2089_v18  ;;  %v2137_v25 = vrot.slane %v5444_v36, %v4987_v23  ;;  %v6087_v34 = vld [vmem:[#allocation7_spill] sm:$0xff]  ;;  %v5526_v18 = vand.u32 4294901760, %v3090_v32 }
 0x2cc   :  { %v4165_v27 = vpop.eup %4164  ;;  %v2301_v3 = vmul.f32 %v4163_v38, %v5108_v13  ;;  %v2113_v13 = vrot.slane %v5428_v58, %v4970_v30  ;;  %4184 = vrcp.f32 %v2109_v6 }
 0x2cd   :  { %v4167_v24 = vpop.eup %4166  ;;  %2444 = vperm.xlu0 %4034, %v2299_v17   ;;  %v2279_v10 = vmul.f32 %v4165_v27, %v5101_v1  ;;  %v2141_v1 = vrot.slane %v5444_v36, %v5000_v45  ;;  %4186 = vrcp.f32 %v2137_v25  ;;  %v5474_v44 = vpop.xlane.xlu0 %2015  ;;  %v6088_v27 = vld [vmem:[#allocation9_spill] sm:$0xff]  ;;  %v5535_v6 = vsub.f32 %v3090_v32, %v5526_v18 }
 0x2ce   :  { %2449 = vperm.xlu1 %4035, %v2301_v3   ;;  %v4169_v9 = vpop.eup %4168  ;;  %v2293_v29 = vmul.f32 %v4167_v24, %v5120_v16  ;;  %4188 = vrcp.f32 %v2113_v13  ;;  %v2157_v16 = vrot.slane %v5474_v44, %v4313_v11  ;;  %v2173_v24 = vrot.slane %v5474_v44, %v5000_v45  ;;  %v3088_v13 = vld [vmem:[%s6024_s4] sm:$0xff] }
 0x2cf   :  { %v2303_v0 = vmul.f32 %v4169_v9, %v5115_v40  ;;  %4190 = vrcp.f32 %v2141_v1  ;;  %v2161_v40 = vrot.slane %v5474_v44, %v4964_v35  ;;  %v6089_v9 = vld [vmem:[#allocation8_spill] sm:$0xff] }
 0x2d0   :  { %4192 = vrcp.f32 %v2157_v16  ;;  %v5556_v16 = vand.u32 4294901760, %v3088_v13 }
 0x2d1   :  { %2394 = vperm.xlu0 %4034, %v2279_v10   ;;  %4194 = vrcp.f32 %v2161_v40  ;;  %v3089_v10 = vld [vmem:[%s6024_s4 + $0x8] sm:$0xff] }
 0x2d2   :  { %v4171_v12 = vpop.eup %4170  ;;  %2429 = vperm.xlu1 %4035, %v2293_v29   ;;  %4196 = vrcp.f32 %v2117_v39 }
 0x2d3   :  { %v2315_v19 = vmul.f32 %v4171_v12, %v5132_v15  ;;  %v4173_v48 = vpop.eup %4172  ;;  %v5488_v50 = vpop.xlane.xlu1 %2018  ;;  %v5544_v12 = vand.u32 4294901760, %v3089_v10 }
 0x2d4   :  { %v4175_v8 = vpop.eup %4174  ;;  %v2317_v54 = vmul.f32 %v4173_v48, %v5127_v2  ;;  %v2145_v2 = vrot.slane %v5444_v36, %v4970_v30  ;;  %v6090_v48 = vld [vmem:[#allocation3_spill] sm:$0xff]  ;;  %v2205_v39 = vrot.slane %v5488_v50, %v5000_v45 }
 0x2d5   :  { %2454 = vperm.xlu0 %4034, %v2303_v0   ;;  %v4177_v28 = vpop.eup %4176  ;;  %v2281_v15 = vmul.f32 %v4175_v8, %v5146_v37  ;;  %v2165_v37 = vrot.slane %v5474_v44, %v4967_v43  ;;  %v2201_v0 = vrot.slane %v5488_v50, %v4987_v23  ;;  %v5554_v8 = vand.u32 4294901760, %v5535_v6 }
 0x2d6   :  { %2484 = vperm.xlu1 %4035, %v2315_v19   ;;  %v4179_v42 = vpop.eup %4178  ;;  %v2295_v14 = vmul.f32 %v4177_v28, %v5139_v60  ;;  %4198 = vrcp.f32 %v2145_v2  ;;  %v2189_v60 = vrot.slane %v5488_v50, %v4313_v11  ;;  %v2149_v11 = vrot.slane %v5444_v36, %v5024_v56 }
 0x2d7   :  { %v4181_v55 = vpop.eup %4180  ;;  %v2305_v22 = vmul.f32 %v4179_v42, %v5158_v49  ;;  %4200 = vrcp.f32 %v2165_v37  ;;  %v2193_v49 = vrot.slane %v5488_v50, %v4964_v35  ;;  %v2169_v35 = vrot.slane %v5474_v44, %v4987_v23 }
 0x2d8   :  { %v4183_v31 = vpop.eup %4182  ;;  %v2319_v52 = vmul.f32 %v4181_v55, %v5153_v63  ;;  %v2121_v63 = vrot.slane %v5428_v58, %v5055_v46  ;;  %4202 = vrcp.f32 %v2189_v60  ;;  %v5559_v40 = vsub.f32 %v3089_v10, %v5544_v12 }
 0x2d9   :  { %2489 = vperm.xlu0 %4034, %v2317_v54   ;;  %v4185_v51 = vpop.eup %4184  ;;  %v2297_v7 = vmul.f32 %v4183_v31, %v5170_v61  ;;  %4204 = vrcp.f32 %v2193_v49  ;;  %v3281_v23 = vsub.f32 %v5535_v6, %v5554_v8  ;;  %v5567_v42 = vsub.f32 %v3088_v13, %v5556_v16  ;;  %v6092_v31 = vld [vmem:[#allocation5_spill] sm:$0xff]  ;;  %v6093_v49 = vld [vmem:[#allocation4_spill] sm:$0xff] }
 0x2da   :  { %2399 = vperm.xlu1 %4035, %v2281_v15   ;;  %v4187_v21 = vpop.eup %4186  ;;  %v2307_v53 = vmul.f32 %v4185_v51, %v5165_v59  ;;  %4206 = vrcp.f32 %v2121_v63  ;;  %v2177_v15 = vrot.slane %v5474_v44, %v4970_v30  ;;  %v5574_v2 = vand.u32 4294901760, %v5559_v40  ;;  %v6101_v13 = vld [vmem:[#allocation16_spill] sm:$0xff] }
 0x2db   :  { %v4189_v5 = vpop.eup %4188  ;;  %v2321_v26 = vmul.f32 %v4187_v21, %v5182_v57  ;;  %v3091_v57 = vld [vmem:[%s6024_s4 + $0x18] sm:$0xff]  ;;  %4208 = vrcp.f32 %v2149_v11  ;;  %v5579_v51 = vand.u32 4294901760, %v5567_v42  ;;  %v2181_v21 = vrot.slane %v5474_v44, %v5024_v56 }
 0x2dc   :  { %v4191_v47 = vpop.eup %4190  ;;  %v2309_v61 = vmul.f32 %v4189_v5, %v5177_v33  ;;  %v5511_v41 = vand.u32 4294901760, %v3091_v57  ;;  %v2197_v33 = vrot.slane %v5488_v50, %v4967_v43  ;;  %4210 = vrcp.f32 %v2169_v35 }
 0x2dd   :  { %2434 = vperm.xlu0 %4034, %v2295_v14   ;;  %v4193_v20 = vpop.eup %4192  ;;  %v2323_v59 = vmul.f32 %v4191_v47, %v5194_v62  ;;  %4212 = vrcp.f32 %v2153_v4  ;;  %v6091_v14 = vld [vmem:[#allocation10_spill] sm:$0xff]  ;;  %v3288_v60 = vsub.f32 %v5559_v40, %v5574_v2  ;;  %v6094_v47 = vld [vmem:[#allocation11_spill] sm:$0xff] }
 0x2de   :  { %2459 = vperm.xlu1 %4035, %v2305_v22   ;;  %v4195_v58 = vpop.eup %4194  ;;  %v2331_v38 = vmul.f32 %v4193_v20, %v6087_v34  ;;  %v5519_v62 = vsub.f32 %v3091_v57, %v5511_v41  ;;  %3930 = vmatprep.subr.mxu0 %v5511_v41  ;;  %4214 = vrcp.f32 %v2197_v33  ;;  %v6095_v57 = vld [vmem:[#allocation6_spill] sm:$0xff]  ;;  %v6096_v33 = vld [vmem:[#allocation13_spill] sm:$0xff] }
 0x2df   :  { %v4197_v17 = vpop.eup %4196  ;;  %v2333_v36 = vmul.f32 %v4195_v58, %v6088_v27  ;;  %3931 = vmatpush3.msra.mxu0 %v5511_v41  ;;  %4216 = vrcp.f32 %v2173_v24  ;;  %v3289_v5 = vand.u32 4294901760, %v3288_v60  ;;  %v6098_v27 = vld [vmem:[#allocation15_spill] sm:$0xff]  ;;  %v35_v60 = vld [vmem:[%s6025_s1] sm:$0xff] }
 0x2e0   :  { %v5530_v3 = vand.u32 4294901760, %v5519_v62  ;;  %3932 = vmatprep.subr.mxu0 %v5526_v18  ;;  %v2311_v25 = vmul.f32 %v4197_v17, %v6089_v9  ;;  %4218 = vrcp.f32 %v2201_v0  ;;  %v6100_v9 = vld [vmem:[#allocation17_spill] sm:$0xff] }
 0x2e1   :  { %2494 = vperm.xlu0 %4034, %v2319_v52   ;;  %3933 = vmatpush3.msra.mxu0 %v5526_v18  ;;  %v3282_v52 = vand.u32 4294901760, %v3281_v23  ;;  %4220 = vrcp.f32 %v2177_v15  ;;  %v6104_v15 = vld [vmem:[#allocation21_spill] sm:$0xff] }
 0x2e2   :  { %2439 = vperm.xlu1 %4035, %v2297_v7   ;;  %v3274_v29 = vsub.f32 %v5519_v62, %v5530_v3  ;;  %3934 = vmatprep.subr.mxu0 %v5544_v12  ;;  %v3295_v7 = vsub.f32 %v5567_v42, %v5579_v51  ;;  %4222 = vrcp.f32 %v2205_v39 }
 0x2e3   :  { %v4199_v43 = vpop.eup %4198  ;;  %3935 = vmatpush3.msra.mxu0 %v5544_v12  ;;  %4224 = vrcp.f32 %v2181_v21 }
 0x2e4   :  { %v4201_v19 = vpop.eup %4200  ;;  %v2325_v1 = vmul.f32 %v4199_v43, %v6090_v48  ;;  %v3275_v28 = vand.u32 4294901760, %v3274_v29  ;;  %3936 = vmatprep.subr.mxu0 %v5556_v16 }
 0x2e5   :  { %2464 = vperm.xlu0 %4034, %v2307_v53   ;;  %v4203_v54 = vpop.eup %4202  ;;  %v2335_v55 = vmul.f32 %v4201_v19, %v6091_v14  ;;  %3937 = vmatpush3.msra.mxu0 %v5556_v16  ;;  %v6102_v19 = vld [vmem:[#allocation19_spill] sm:$0xff]  ;;  %v6105_v14 = vld [vmem:[#allocation20_spill] sm:$0xff] }
 0x2e6   :  { %2499 = vperm.xlu1 %4035, %v2321_v26   ;;  %3947 = vmatprep.subr.mxu1 %v3275_v28  ;;  %v4205_v22 = vpop.eup %4204  ;;  %v2347_v37 = vmul.f32 %v4203_v54, %v6092_v31  ;;  %v2209_v26 = vrot.slane %v5488_v50, %v4970_v30  ;;  %v2213_v30 = vrot.slane %v5488_v50, %v5024_v56  ;;  %v6099_v56 = vld [vmem:[#allocation14_spill] sm:$0xff]  ;;  %v6106_v31 = vld [vmem:[#allocation23_spill] sm:$0xff] }
 0x2e7   :  { %3948 = vmatpush3.msra.mxu1 %v3275_v28  ;;  %v4207_v45 = vpop.eup %4206  ;;  %3964 = vmatprep.subr.mxu0 %v5519_v62  ;;  %v2349_v53 = vmul.f32 %v4205_v22, %v6093_v49 }
 0x2e8   :  { %3949 = vmatprep.subr.mxu1 %v3282_v52  ;;  %v4209_v63 = vpop.eup %4208  ;;  %v2313_v11 = vmul.f32 %v4207_v45, %v6094_v47  ;;  %4226 = vrcp.f32 %v2209_v26 }
 0x2e9   :  { %2469 = vperm.xlu0 %4034, %v2309_v61   ;;  %3950 = vmatpush3.msra.mxu1 %v3282_v52  ;;  %v3296_v61 = vand.u32 4294901760, %v3295_v7  ;;  %v4211_v20 = vpop.eup %4210  ;;  %v2327_v58 = vmul.f32 %v4209_v63, %v6095_v57  ;;  %v6107_v52 = vld [vmem:[#allocation22_spill] sm:$0xff]  ;;  %v36_v7 = vld [vmem:[%s6025_s1 + $0x8] sm:$0xff]  ;;  %v37_v63 = vld [vmem:[%s6025_s1 + $0x10] sm:$0xff] }
 0x2ea   :  { %2504 = vperm.xlu1 %4035, %v2323_v59   ;;  %3951 = vmatprep.subr.mxu1 %v3289_v5  ;;  %v4213_v35 = vpop.eup %4212  ;;  %v2185_v59 = vrot.slane %v5474_v44, %v5055_v46  ;;  %v2337_v34 = vmul.f32 %v4211_v20, %v6096_v33  ;;  %v2217_v44 = vrot.slane %v5488_v50, %v5055_v46 }
 0x2eb   :  { %3952 = vmatpush3.msra.mxu1 %v3289_v5  ;;  %v4215_v4 = vpop.eup %4214 }
 0x2ec   :  { %3953 = vmatprep.subr.mxu1 %v3296_v61  ;;  %4228 = vrcp.f32 %v2185_v59  ;;  %v4217_v17 = vpop.eup %4216 }
 0x2ed   :  { %2524 = vperm.xlu0 %4034, %v2331_v38   ;;  %3954 = vmatpush3.msra.mxu1 %v3296_v61  ;;  %v6097_v38 = vld [vmem:[#allocation12_spill] sm:$0xff]  ;;  %4230 = vrcp.f32 %v2213_v30  ;;  %v4219_v43 = vpop.eup %4218  ;;  %v2339_v24 = vmul.f32 %v4217_v17, %v6099_v56 }
 0x2ee   :  { %2529 = vperm.xlu1 %4035, %v2333_v36   ;;  %3981 = vmatprep.subr.mxu1 %v5511_v41  ;;  %v2351_v32 = vmul.f32 %v4215_v4, %v6097_v38  ;;  %v2329_v36 = vmul.f32 %v4213_v35, %v6098_v27  ;;  %4232 = vrcp.f32 %v2217_v44  ;;  %v4221_v10 = vpop.eup %4220  ;;  %v44_v35 = vld [vmem:[%s6025_s1 + $0x48] sm:$0xff]  ;;  %v45_v38 = vld [vmem:[%s6025_s1 + $0x50] sm:$0xff] }
 0x2ef   :  { %v4223_v29 = vpop.eup %4222  ;;  %v2341_v46 = vmul.f32 %v4221_v10, %v6101_v13 }
 0x2f0   :  { %v4225_v50 = vpop.eup %4224  ;;  %v2355_v0 = vmul.f32 %v4223_v29, %v6102_v19 }
 0x2f1   :  { %2474 = vperm.xlu0 %4034, %v2311_v25   ;;  %v2353_v25 = vmul.f32 %v4219_v43, %v6100_v9 }
 0x2f2   :  { %2509 = vperm.xlu1 %4035, %v2325_v1   ;;  %v6103_v1 = vld [vmem:[#allocation18_spill] sm:$0xff] }
 0x2f3   :  { %v2343_v54 = vmul.f32 %v4225_v50, %v6103_v1  ;;  %v39_v50 = vld [vmem:[%s6025_s1 + $0x20] sm:$0xff] }
 0x2f5   :  { %2534 = vperm.xlu0 %4034, %v2335_v55   ;;  %v4227_v48 = vpop.eup %4226 }
 0x2f6   :  { %2564 = vperm.xlu1 %4035, %v2347_v37   ;;  %v2357_v23 = vmul.f32 %v4227_v48, %v6104_v15 }
 0x2f9   :  { %2569 = vperm.xlu0 %4034, %v2349_v53   ;;  %v4229_v28 = vpop.eup %4228 }
 0x2fa   :  { %2479 = vperm.xlu1 %4035, %v2313_v11   ;;  %v4231_v39 = vpop.eup %4230  ;;  %v2345_v55 = vmul.f32 %v4229_v28, %v6105_v14  ;;  %v43_v11 = vld [vmem:[%s6025_s1 + $0x40] sm:$0xff] }
 0x2fb   :  { %v4233_v22 = vpop.eup %4232  ;;  %v2359_v37 = vmul.f32 %v4231_v39, %v6106_v31  ;;  %v47_v14 = vld [vmem:[%s6025_s1 + $0x60] sm:$0xff] }
 0x2fc   :  { %v2361_v45 = vmul.f32 %v4233_v22, %v6107_v52 }
 0x2fd   :  { %2514 = vperm.xlu0 %4034, %v2327_v58  }
 0x2fe   :  { %2539 = vperm.xlu1 %4035, %v2337_v34   ;;  %v38_v34 = vld [vmem:[%s6025_s1 + $0x18] sm:$0xff] }
 0x301   :  { %2574 = vperm.xlu0 %4034, %v2351_v32  }
 0x302   :  { %2519 = vperm.xlu1 %4035, %v2329_v36  }
 0x305   :  { %2544 = vperm.xlu0 %4034, %v2339_v24  }
 0x306   :  { %2579 = vperm.xlu1 %4035, %v2353_v25   ;;  %v46_v25 = vld [vmem:[%s6025_s1 + $0x58] sm:$0xff] }
 0x309   :  { %2549 = vperm.xlu0 %4034, %v2341_v46  }
 0x30a   :  { %2584 = vperm.xlu1 %4035, %v2355_v0  }
 0x30d   :  { %2554 = vperm.xlu0 %4034, %v2343_v54  }
 0x30e   :  { %2589 = vperm.xlu1 %4035, %v2357_v23  }
 0x311   :  { %2559 = vperm.xlu0 %4034, %v2345_v55  }
 0x312   :  { %2594 = vperm.xlu1 %4035, %v2359_v37   ;;  %v40_v37 = vld [vmem:[%s6025_s1 + $0x28] sm:$0xff] }
 0x315   :  { %2599 = vperm.xlu0 %4034, %v2361_v45  }
 0x328   :  { %v2365_v21 = vpop.permute.xlu0 %2364 }
 0x329   :  { %v2370_v49 = vpop.permute.xlu1 %2369  ;;  %v2602_v53 = vmul.f32 %v2365_v21, %v35_v60 }
 0x32a   :  { %v2603_v5 = vmul.f32 %v2370_v49, %v36_v7 }
 0x32b   :  { %v2650_v47 = vsel %vm719_vm0, %v2602_v53, 0.0 }
 0x32c   :  { %v2657_v61 = vsel %vm719_vm0, %v2603_v5, 0.0  ;;  %v2651_v57 = vrot.slane %v2650_v47, 4 }
 0x32d   :  { %v2375_v26 = vpop.permute.xlu1 %2374  ;;  %v2658_v30 = vrot.slane %v2657_v61, 4 }
 0x32e   :  { %v2604_v20 = vmul.f32 %v2375_v26, %v37_v63  ;;  %v2652_v17 = vadd.f32 %v2651_v57, %v2650_v47 }
 0x32f   :  { %v2659_v56 = vadd.f32 %v2658_v30, %v2657_v61 }
 0x330   :  { %v2405_v59 = vpop.permute.xlu0 %2404  ;;  %v2664_v44 = vsel %vm719_vm0, %v2604_v20, 0.0  ;;  %v2653_v19 = vrot.slane %v2652_v17, 2 }
 0x331   :  { %v2410_v58 = vpop.permute.xlu1 %2409  ;;  %v2610_v4 = vmul.f32 %v2405_v59, %v43_v11  ;;  %v2665_v24 = vrot.slane %v2664_v44, 4  ;;  %v2660_v1 = vrot.slane %v2659_v56, 2 }
 0x332   :  { %v2611_v33 = vmul.f32 %v2410_v58, %v44_v35  ;;  %v2654_v52 = vadd.f32 %v2653_v19, %v2652_v17 }
 0x333   :  { %v2706_v27 = vsel %vm719_vm0, %v2610_v4, 0.0  ;;  %v2666_v54 = vadd.f32 %v2665_v24, %v2664_v44  ;;  %v2661_v7 = vadd.f32 %v2660_v1, %v2659_v56  ;;  %v51_v24 = vld [vmem:[%s6025_s1 + $0x80] sm:$0xff] }
 0x334   :  { %v2380_v32 = vpop.permute.xlu0 %2379  ;;  %v2713_v10 = vsel %vm719_vm0, %v2611_v33, 0.0  ;;  %v2707_v29 = vrot.slane %v2706_v27, 4  ;;  %v2655_v61 = vrot.slane %v2654_v52, 1 }
 0x335   :  { %v2415_v36 = vpop.permute.xlu1 %2414  ;;  %v2605_v43 = vmul.f32 %v2380_v32, %v38_v34  ;;  %v2714_v0 = vrot.slane %v2713_v10, 4  ;;  %v2667_v21 = vrot.slane %v2666_v54, 2  ;;  %v2662_v59 = vrot.slane %v2661_v7, 1 }
 0x336   :  { %v2612_v9 = vmul.f32 %v2415_v36, %v45_v38  ;;  %v2708_v55 = vadd.f32 %v2707_v29, %v2706_v27  ;;  %v2656_v36 = vadd.f32 %v2655_v61, %v2654_v52  ;;  %v52_v29 = vld [vmem:[%s6025_s1 + $0x88] sm:$0xff] }
 0x337   :  { %v2671_v13 = vsel %vm719_vm0, %v2605_v43, 0.0  ;;  %v2715_v45 = vadd.f32 %v2714_v0, %v2713_v10  ;;  %v2668_v30 = vadd.f32 %v2667_v21, %v2666_v54  ;;  %v2663_v27 = vadd.f32 %v2662_v59, %v2661_v7 }
 0x338   :  { %v2385_v46 = vpop.permute.xlu0 %2384  ;;  %v2720_v15 = vsel %vm719_vm0, %v2612_v9, 0.0  ;;  %v2672_v23 = vrot.slane %v2671_v13, 4  ;;  %v2709_v11 = vrot.slane %v2708_v55, 2 }
 0x339   :  { %v2420_v48 = vpop.permute.xlu1 %2419  ;;  %v2606_v39 = vmul.f32 %v2385_v46, %v39_v50  ;;  %v2721_v49 = vrot.slane %v2720_v15, 4  ;;  %v2716_v20 = vrot.slane %v2715_v45, 2  ;;  %v2669_v10 = vrot.slane %v2668_v30, 1 }
 0x33a   :  { %v2613_v28 = vmul.f32 %v2420_v48, %v46_v25  ;;  %v2673_v5 = vadd.f32 %v2672_v23, %v2671_v13  ;;  %v2710_v44 = vadd.f32 %v2709_v11, %v2708_v55  ;;  %v3034_v54 = vsel %vm1106_vm1, %v2663_v27, %v2656_v36 }
 0x33b   :  { %v2678_v26 = vsel %vm719_vm0, %v2606_v39, 0.0  ;;  %v2722_v57 = vadd.f32 %v2721_v49, %v2720_v15  ;;  %v2717_v32 = vadd.f32 %v2716_v20, %v2715_v45  ;;  %v41_v39 = vld [vmem:[%s6025_s1 + $0x30] sm:$0xff] }
 0x33c   :  { %v2727_v22 = vsel %vm719_vm0, %v2613_v28, 0.0  ;;  %v2390_v31 = vpop.permute.xlu0 %2389  ;;  %v2679_v58 = vrot.slane %v2678_v26, 4  ;;  %v2674_v33 = vrot.slane %v2673_v5, 2  ;;  %v2711_v13 = vrot.slane %v2710_v44, 1 }
 0x33d   :  { %v2425_v60 = vpop.permute.xlu1 %2424  ;;  %v2728_v63 = vrot.slane %v2727_v22, 4  ;;  %v2607_v47 = vmul.f32 %v2390_v31, %v40_v37  ;;  %v2723_v43 = vrot.slane %v2722_v57, 2  ;;  %v2718_v19 = vrot.slane %v2717_v32, 1  ;;  %v48_v37 = vld [vmem:[%s6025_s1 + $0x68] sm:$0xff] }
 0x33e   :  { %v2614_v53 = vmul.f32 %v2425_v60, %v47_v14  ;;  %v2680_v56 = vadd.f32 %v2679_v58, %v2678_v26  ;;  %v2675_v9 = vadd.f32 %v2674_v33, %v2673_v5  ;;  %v2670_v14 = vadd.f32 %v2669_v10, %v2668_v30  ;;  %v59_v30 = vld [vmem:[%s6025_s1 + $0xc0] sm:$0xff] }
 0x33f   :  { %v2685_v4 = vsel %vm719_vm0, %v2607_v47, 0.0  ;;  %v2729_v34 = vadd.f32 %v2728_v63, %v2727_v22  ;;  %v2724_v28 = vadd.f32 %v2723_v43, %v2722_v57  ;;  %v2712_v52 = vadd.f32 %v2711_v13, %v2710_v44 }
 0x340   :  { %v2734_v35 = vsel %vm719_vm0, %v2614_v53, 0.0  ;;  %v2686_v17 = vrot.slane %v2685_v4, 4  ;;  %v2681_v15 = vrot.slane %v2680_v56, 2  ;;  %v2676_v55 = vrot.slane %v2675_v9, 1 }
 0x341   :  { %v2735_v38 = vrot.slane %v2734_v35, 4  ;;  %v2730_v25 = vrot.slane %v2729_v34, 2  ;;  %v2719_v49 = vadd.f32 %v2718_v19, %v2717_v32  ;;  %v2725_v47 = vrot.slane %v2724_v28, 1 }
 0x342   :  { %v2687_v0 = vadd.f32 %v2686_v17, %v2685_v4  ;;  %v2682_v11 = vadd.f32 %v2681_v15, %v2680_v56  ;;  %v2677_v59 = vadd.f32 %v2676_v55, %v2675_v9 }
 0x343   :  { %v2736_v46 = vadd.f32 %v2735_v38, %v2734_v35  ;;  %v2731_v22 = vadd.f32 %v2730_v25, %v2729_v34  ;;  %v53_v35 = vld [vmem:[%s6025_s1 + $0x90] sm:$0xff]  ;;  %v3041_v13 = vsel %vm1106_vm1, %v2719_v49, %v2712_v52 }
 0x344   :  { %v2688_v53 = vrot.slane %v2687_v0, 2  ;;  %v2683_v10 = vrot.slane %v2682_v11, 1 }
 0x345   :  { %v2737_v45 = vrot.slane %v2736_v46, 2  ;;  %v2732_v57 = vrot.slane %v2731_v22, 1 }
 0x346   :  { %v2689_v17 = vadd.f32 %v2688_v53, %v2687_v0  ;;  %v42_v0 = vld [vmem:[%s6025_s1 + $0x38] sm:$0xff] }
 0x347   :  { %v2738_v33 = vadd.f32 %v2737_v45, %v2736_v46  ;;  %v2726_v46 = vadd.f32 %v2725_v47, %v2724_v28  ;;  %v2684_v28 = vadd.f32 %v2683_v10, %v2682_v11  ;;  %v49_v11 = vld [vmem:[%s6025_s1 + $0x70] sm:$0xff] }
 0x348   :  { %v2445_v50 = vpop.permute.xlu0 %2444  ;;  %v2690_v55 = vrot.slane %v2689_v17, 1 }
 0x349   :  { %v2450_v48 = vpop.permute.xlu1 %2449  ;;  %v2618_v1 = vmul.f32 %v2445_v50, %v51_v24  ;;  %v3035_v24 = vsel %vm1108_vm2, %v2670_v14, %v3034_v54  ;;  %v2739_v14 = vrot.slane %v2738_v33, 1 }
 0x34a   :  { %v2619_v23 = vmul.f32 %v2450_v48, %v52_v29  ;;  %v60_v29 = vld [vmem:[%s6025_s1 + $0xc8] sm:$0xff]  ;;  %v3036_v48 = vsel %vm1110_vm3, %v2677_v59, %v3035_v24  ;;  %v2691_v59 = vadd.f32 %v2690_v55, %v2689_v17  ;;  %v55_v55 = vld [vmem:[%s6025_s1 + $0xa0] sm:$0xff] }
 0x34b   :  { %v2762_v31 = vsel %vm719_vm0, %v2618_v1, 0.0 }
 0x34c   :  { %v2769_v60 = vsel %vm719_vm0, %v2619_v23, 0.0  ;;  %v2763_v7 = vrot.slane %v2762_v31, 4  ;;  %v2395_v21 = vpop.permute.xlu0 %2394 }
 0x34d   :  { %v2770_v5 = vrot.slane %v2769_v60, 4  ;;  %v2430_v63 = vpop.permute.xlu1 %2429  ;;  %v2608_v26 = vmul.f32 %v2395_v21, %v41_v39  ;;  %v2733_v39 = vadd.f32 %v2732_v57, %v2731_v22 }
 0x34e   :  { %v2764_v61 = vadd.f32 %v2763_v7, %v2762_v31  ;;  %v2615_v20 = vmul.f32 %v2430_v63, %v48_v37  ;;  %v3042_v7 = vsel %vm1108_vm2, %v2726_v46, %v3041_v13 }
 0x34f   :  { %v2771_v58 = vadd.f32 %v2770_v5, %v2769_v60  ;;  %v2692_v4 = vsel %vm719_vm0, %v2608_v26, 0.0  ;;  %v54_v5 = vld [vmem:[%s6025_s1 + $0x98] sm:$0xff] }
 0x350   :  { %v2765_v34 = vrot.slane %v2764_v61, 2  ;;  %v2741_v44 = vsel %vm719_vm0, %v2615_v20, 0.0  ;;  %v2693_v38 = vrot.slane %v2692_v4, 4  ;;  %v2455_v32 = vpop.permute.xlu0 %2454  ;;  %v3043_v20 = vsel %vm1110_vm3, %v2733_v39, %v3042_v7 }
 0x351   :  { %v2772_v27 = vrot.slane %v2771_v58, 2  ;;  %v2742_v36 = vrot.slane %v2741_v44, 4  ;;  %v2485_v43 = vpop.permute.xlu1 %2484  ;;  %v2620_v56 = vmul.f32 %v2455_v32, %v53_v35  ;;  %v2740_v35 = vadd.f32 %v2739_v14, %v2738_v33  ;;  %v62_v14 = vld [vmem:[%s6025_s1 + $0xd8] sm:$0xff] }
 0x352   :  { %v2694_v9 = vadd.f32 %v2693_v38, %v2692_v4  ;;  %v2626_v25 = vmul.f32 %v2485_v43, %v59_v30  ;;  %v2766_v50 = vadd.f32 %v2765_v34, %v2764_v61  ;;  %v3037_v4 = vsel %vm1112_vm4, %v2684_v28, %v3036_v48  ;;  %v50_v43 = vld [vmem:[%s6025_s1 + $0x78] sm:$0xff] }
 0x353   :  { %v2776_v19 = vsel %vm719_vm0, %v2620_v56, 0.0  ;;  %v2773_v1 = vadd.f32 %v2772_v27, %v2771_v58  ;;  %v2743_v54 = vadd.f32 %v2742_v36, %v2741_v44 }
 0x354   :  { %v2818_v15 = vsel %vm719_vm0, %v2626_v25, 0.0  ;;  %v2490_v23 = vpop.permute.xlu0 %2489  ;;  %v2695_v52 = vrot.slane %v2694_v9, 2  ;;  %v2777_v45 = vrot.slane %v2776_v19, 4  ;;  %v2767_v21 = vrot.slane %v2766_v50, 1 }
 0x355   :  { %v2400_v31 = vpop.permute.xlu1 %2399  ;;  %v2627_v37 = vmul.f32 %v2490_v23, %v60_v29  ;;  %v2819_v49 = vrot.slane %v2818_v15, 4  ;;  %v2774_v63 = vrot.slane %v2773_v1, 1  ;;  %v2744_v22 = vrot.slane %v2743_v54, 2 }
 0x356   :  { %v2609_v60 = vmul.f32 %v2400_v31, %v42_v0  ;;  %v2696_v30 = vadd.f32 %v2695_v52, %v2694_v9  ;;  %v2778_v34 = vadd.f32 %v2777_v45, %v2776_v19  ;;  %v2768_v24 = vadd.f32 %v2767_v21, %v2766_v50  ;;  %v61_v19 = vld [vmem:[%s6025_s1 + $0xd0] sm:$0xff] }
 0x357   :  { %v2825_v53 = vsel %vm719_vm0, %v2627_v37, 0.0  ;;  %v2820_v38 = vadd.f32 %v2819_v49, %v2818_v15  ;;  %v2775_v56 = vadd.f32 %v2774_v63, %v2773_v1  ;;  %v2745_v10 = vadd.f32 %v2744_v22, %v2743_v54 }
 0x358   :  { %v2699_v26 = vsel %vm719_vm0, %v2609_v60, 0.0  ;;  %v2826_v47 = vrot.slane %v2825_v53, 4  ;;  %v2435_v61 = vpop.permute.xlu0 %2434  ;;  %v5707_v25 = vsel %vm1112_vm4, %v2740_v35, %v3043_v20  ;;  %v5710_v9 = vsel %vm1114_vm5, %v2691_v59, %v3037_v4  ;;  %v63_v35 = vld [vmem:[%s6025_s1 + $0xe0] sm:$0xff]  ;;  %v56_v59 = vld [vmem:[%s6025_s1 + $0xa8] sm:$0xff] }
 0x359   :  { %v2700_v57 = vrot.slane %v2699_v26, 4  ;;  %v2460_v58 = vpop.permute.xlu1 %2459  ;;  %v2616_v36 = vmul.f32 %v2435_v61, %v49_v11  ;;  %v2697_v0 = vrot.slane %v2696_v30, 1  ;;  %v2779_v48 = vrot.slane %v2778_v34, 2 }
 0x35a   :  { %v2621_v44 = vmul.f32 %v2460_v58, %v54_v5  ;;  %v2827_v27 = vadd.f32 %v2826_v47, %v2825_v53  ;;  %v2821_v54 = vrot.slane %v2820_v38, 2  ;;  %v5723_v31 = vsel %vm1106_vm1, %v2775_v56, %v2768_v24 }
 0x35b   :  { %v2701_v32 = vadd.f32 %v2700_v57, %v2699_v26  ;;  %v2748_v50 = vsel %vm719_vm0, %v2616_v36, 0.0  ;;  %v2746_v37 = vrot.slane %v2745_v10, 1  ;;  %v2698_v5 = vadd.f32 %v2697_v0, %v2696_v30 }
 0x35c   :  { %v2783_v33 = vsel %vm719_vm0, %v2621_v44, 0.0  ;;  %v2495_v17 = vpop.permute.xlu0 %2494  ;;  %v2828_v15 = vrot.slane %v2827_v27, 2  ;;  %v2749_v39 = vrot.slane %v2748_v50, 4  ;;  %v2822_v47 = vadd.f32 %v2821_v54, %v2820_v38 }
 0x35d   :  { %v2702_v29 = vrot.slane %v2701_v32, 2  ;;  %v2784_v13 = vrot.slane %v2783_v33, 4  ;;  %v2440_v46 = vpop.permute.xlu1 %2439  ;;  %v2628_v52 = vmul.f32 %v2495_v17, %v61_v19  ;;  %v2780_v61 = vadd.f32 %v2779_v48, %v2778_v34 }
 0x35e   :  { %v2617_v1 = vmul.f32 %v2440_v46, %v50_v43  ;;  %v2750_v21 = vadd.f32 %v2749_v39, %v2748_v50  ;;  %v2829_v11 = vadd.f32 %v2828_v15, %v2827_v27  ;;  %v2747_v17 = vadd.f32 %v2746_v37, %v2745_v10 }
 0x35f   :  { %v2785_v23 = vadd.f32 %v2784_v13, %v2783_v33  ;;  %v2703_v60 = vadd.f32 %v2702_v29, %v2701_v32  ;;  %v2832_v63 = vsel %vm719_vm0, %v2628_v52, 0.0  ;;  %v2781_v29 = vrot.slane %v2780_v61, 1 }
 0x360   :  { %v2755_v28 = vsel %vm719_vm0, %v2617_v1, 0.0  ;;  %v2465_v45 = vpop.permute.xlu0 %2464  ;;  %v2751_v20 = vrot.slane %v2750_v21, 2  ;;  %v2833_v58 = vrot.slane %v2832_v63, 4  ;;  %v2830_v13 = vrot.slane %v2829_v11, 1  ;;  %v68_v1 = vld [vmem:[%s6025_s1 + $0x108] sm:$0xff] }
 0x361   :  { %v2786_v7 = vrot.slane %v2785_v23, 2  ;;  %v2756_v49 = vrot.slane %v2755_v28, 4  ;;  %v2500_v53 = vpop.permute.xlu1 %2499  ;;  %v2622_v26 = vmul.f32 %v2465_v45, %v55_v55  ;;  %v2704_v32 = vrot.slane %v2703_v60, 1  ;;  %v67_v45 = vld [vmem:[%s6025_s1 + $0x100] sm:$0xff] }
 0x362   :  { %v2629_v22 = vmul.f32 %v2500_v53, %v62_v14  ;;  %v2752_v38 = vadd.f32 %v2751_v20, %v2750_v21  ;;  %v2834_v43 = vadd.f32 %v2833_v58, %v2832_v63  ;;  %v2823_v15 = vrot.slane %v2822_v47, 1  ;;  %v23_v20 = vld [vmem:[%s6026_s0] sm:$0xff] }
 0x363   :  { %v2787_v57 = vadd.f32 %v2786_v7, %v2785_v23  ;;  %v2790_v30 = vsel %vm719_vm0, %v2622_v26, 0.0  ;;  %v2757_v34 = vadd.f32 %v2756_v49, %v2755_v28  ;;  %v2705_v23 = vadd.f32 %v2704_v32, %v2703_v60 }
 0x364   :  { %v2839_v4 = vsel %vm719_vm0, %v2629_v22, 0.0  ;;  %v2470_v44 = vpop.permute.xlu0 %2469  ;;  %v2791_v56 = vrot.slane %v2790_v30, 4  ;;  %v2835_v14 = vrot.slane %v2834_v43, 2  ;;  %v2753_v10 = vrot.slane %v2752_v38, 1 }
 0x365   :  { %v2840_v27 = vrot.slane %v2839_v4, 4  ;;  %v2505_v36 = vpop.permute.xlu1 %2504  ;;  %v2623_v33 = vmul.f32 %v2470_v44, %v56_v59  ;;  %v2788_v19 = vrot.slane %v2787_v57, 1  ;;  %v2758_v39 = vrot.slane %v2757_v34, 2 }
 0x366   :  { %v2630_v24 = vmul.f32 %v2505_v36, %v63_v35  ;;  %v2792_v0 = vadd.f32 %v2791_v56, %v2790_v30  ;;  %v3039_v7 = vsel %vm1116_vm6, %v2698_v5, %v5710_v9  ;;  %v2782_v21 = vadd.f32 %v2781_v29, %v2780_v61 }
 0x367   :  { %v2841_v46 = vadd.f32 %v2840_v27, %v2839_v4  ;;  %v2797_v50 = vsel %vm719_vm0, %v2623_v33, 0.0  ;;  %v2831_v63 = vadd.f32 %v2830_v13, %v2829_v11  ;;  %v2789_v22 = vadd.f32 %v2788_v19, %v2787_v57  ;;  %v69_v19 = vld [vmem:[%s6025_s1 + $0x110] sm:$0xff] }
 0x368   :  { %v2846_v48 = vsel %vm719_vm0, %v2630_v24, 0.0  ;;  %v2525_v54 = vpop.permute.xlu0 %2524  ;;  %v2798_v52 = vrot.slane %v2797_v50, 4  ;;  %v2793_v49 = vrot.slane %v2792_v0, 2  ;;  %v2759_v59 = vadd.f32 %v2758_v39, %v2757_v34 }
 0x369   :  { %v2530_v55 = vpop.permute.xlu1 %2529  ;;  %v2842_v37 = vrot.slane %v2841_v46, 2  ;;  %v2847_v28 = vrot.slane %v2846_v48, 4  ;;  %v2836_v58 = vadd.f32 %v2835_v14, %v2834_v43  ;;  %v2634_v4 = vmul.f32 %v2525_v54, %v67_v45 }
 0x36a   :  { %v2635_v53 = vmul.f32 %v2530_v55, %v68_v1  ;;  %v2799_v26 = vadd.f32 %v2798_v52, %v2797_v50  ;;  %v3040_v30 = vsel %vm1118_vm7, %v2705_v23, %v3039_v7  ;;  %v3045_v9 = vsel %vm1114_vm5, %v2747_v17, %v5707_v25  ;;  %v64_v25 = vld [vmem:[%s6025_s1 + $0xe8] sm:$0xff] }
 0x36b   :  { %v2848_v60 = vadd.f32 %v2847_v28, %v2846_v48  ;;  %v2824_v5 = vadd.f32 %v2823_v15, %v2822_v47  ;;  %v2754_v61 = vadd.f32 %v2753_v10, %v2752_v38  ;;  %v2843_v11 = vadd.f32 %v2842_v37, %v2841_v46  ;;  %v57_v47 = vld [vmem:[%s6025_s1 + $0xb0] sm:$0xff]  ;;  %v75_v46 = vld [vmem:[%s6025_s1 + $0x140] sm:$0xff] }
 0x36c   :  { %v2475_v35 = vpop.permute.xlu0 %2474  ;;  %v2794_v57 = vadd.f32 %v2793_v49, %v2792_v0  ;;  %v2881_v32 = vsel %vm719_vm0, %v2635_v53, 0.0  ;;  %v2874_v27 = vsel %vm719_vm0, %v2634_v4, 0.0  ;;  %v3082_v36 = vadd.f32 %v3040_v30, %v23_v20 }
 0x36d   :  { %v2510_v44 = vpop.permute.xlu1 %2509  ;;  %v3049_v34 = vsel %vm1108_vm2, %v2782_v21, %v5723_v31  ;;  %v3055_v43 = vsel %vm1106_vm1, %v2831_v63, %v2824_v5  ;;  %v2849_v56 = vrot.slane %v2848_v60, 2  ;;  %v2800_v24 = vrot.slane %v2799_v26, 2  ;;  %v58_v5 = vld [vmem:[%s6025_s1 + $0xb8] sm:$0xff] }
 0x36e   :  { %v3050_v33 = vsel %vm1110_vm3, %v2789_v22, %v3049_v34  ;;  %v2760_v17 = vrot.slane %v2759_v59, 1  ;;  %v2837_v29 = vrot.slane %v2836_v58, 1  ;;  %v3100_v13 = vsel %vm719_vm0, %v3082_v36, 0 }
 0x36f   :  { %v3046_v0 = vsel %vm1116_vm6, %v2754_v61, %v3045_v9  ;;  %v2882_v48 = vrot.slane %v2881_v32, 4  ;;  %v2875_v50 = vrot.slane %v2874_v27, 4  ;;  %v5771_v1 = vand.u32 4294901760, %v3100_v13 }
 0x370   :  { %v2535_v38 = vpop.permute.xlu0 %2534  ;;  %v2844_v54 = vrot.slane %v2843_v11, 1  ;;  %v2795_v15 = vrot.slane %v2794_v57, 1  ;;  %v2631_v23 = vmul.f32 %v2510_v44, %v64_v25  ;;  %v2624_v39 = vmul.f32 %v2475_v35, %v57_v47 }
 0x371   :  { %v2565_v31 = vpop.permute.xlu1 %2564  ;;  %v2850_v14 = vadd.f32 %v2849_v56, %v2848_v60  ;;  %v2801_v55 = vadd.f32 %v2800_v24, %v2799_v26  ;;  %3955 = vmatprep.mubr.f32.mxu1 %v5771_v1  ;;  %v2636_v37 = vmul.f32 %v2535_v38, %v69_v19  ;;  %v2761_v52 = vadd.f32 %v2760_v17, %v2759_v59 }
 0x372   :  { %v2642_v10 = vmul.f32 %v2565_v31, %v75_v46  ;;  %v2838_v45 = vadd.f32 %v2837_v29, %v2836_v58  ;;  %v2853_v7 = vsel %vm719_vm0, %v2631_v23, 0.0  ;;  %v2804_v21 = vsel %vm719_vm0, %v2624_v39, 0.0  ;;  %v24_v58 = vld [vmem:[%s6026_s0 + $0x8] sm:$0xff] }
 0x373   :  { %v2883_v53 = vadd.f32 %v2882_v48, %v2881_v32  ;;  %v2876_v63 = vadd.f32 %v2875_v50, %v2874_v27  ;;  %v2854_v22 = vrot.slane %v2853_v7, 4  ;;  %v2805_v20 = vrot.slane %v2804_v21, 4 }
 0x374   :  { %v2570_v28 = vpop.permute.xlu0 %2569  ;;  %v2845_v4 = vadd.f32 %v2844_v54, %v2843_v11  ;;  %v2796_v35 = vadd.f32 %v2795_v15, %v2794_v57  ;;  %v2930_v60 = vsel %vm719_vm0, %v2642_v10, 0.0  ;;  %v2888_v26 = vsel %vm719_vm0, %v2636_v37, 0.0  ;;  %v70_v10 = vld [vmem:[%s6025_s1 + $0x118] sm:$0xff]  ;;  %v65_v37 = vld [vmem:[%s6025_s1 + $0xf0] sm:$0xff] }
 0x375   :  { %v2480_v49 = vpop.permute.xlu1 %2479  ;;  %v2851_v30 = vrot.slane %v2850_v14, 1  ;;  %v2802_v44 = vrot.slane %v2801_v55, 1  ;;  %v2855_v9 = vadd.f32 %v2854_v22, %v2853_v7  ;;  %v2889_v59 = vrot.slane %v2888_v26, 4 }
 0x376   :  { %v3056_v11 = vsel %vm1108_vm2, %v2838_v45, %v3055_v43  ;;  %v2806_v57 = vadd.f32 %v2805_v20, %v2804_v21  ;;  %v5786_v32 = vsub.f32 %v3100_v13, %v5771_v1  ;;  %v3047_v27 = vsel %vm1118_vm7, %v2761_v52, %v3046_v0  ;;  %v76_v13 = vld [vmem:[%s6025_s1 + $0x148] sm:$0xff] }
 0x377   :  { %v2884_v34 = vrot.slane %v2883_v53, 2  ;;  %v2877_v56 = vrot.slane %v2876_v63, 2  ;;  %v2856_v24 = vrot.slane %v2855_v9, 2  ;;  %v2931_v25 = vrot.slane %v2930_v60, 4 }
 0x378   :  { %v2515_v61 = vpop.permute.xlu0 %2514  ;;  %v3057_v47 = vsel %vm1110_vm3, %v2845_v4, %v3056_v11  ;;  %v3188_v38 = vand.u32 4294901760, %v5786_v32  ;;  %v3083_v17 = vadd.f32 %v3047_v27, %v24_v58  ;;  %v2625_v29 = vmul.f32 %v2480_v49, %v58_v5 }
 0x379   :  { %v2540_v36 = vpop.permute.xlu1 %2539  ;;  %v3051_v31 = vsel %vm1112_vm4, %v2796_v35, %v3050_v33  ;;  %v2852_v43 = vadd.f32 %v2851_v30, %v2850_v14  ;;  %v2803_v46 = vadd.f32 %v2802_v44, %v2801_v55  ;;  %v2890_v19 = vadd.f32 %v2889_v59, %v2888_v26  ;;  %v66_v44 = vld [vmem:[%s6025_s1 + $0xf8] sm:$0xff] }
 0x37a   :  { %v2807_v48 = vrot.slane %v2806_v57, 2  ;;  %v3189_v50 = vsub.f32 %v5786_v32, %v3188_v38  ;;  %v3103_v54 = vsel %vm719_vm0, %v3083_v17, 0  ;;  %v2811_v15 = vsel %vm719_vm0, %v2625_v29, 0.0 }
 0x37b   :  { %v2885_v39 = vadd.f32 %v2884_v34, %v2883_v53  ;;  %v2878_v33 = vadd.f32 %v2877_v56, %v2876_v63  ;;  %v5800_v14 = vadd.f32 %v2856_v24, %v2855_v9  ;;  %v5802_v55 = vadd.f32 %v2931_v25, %v2930_v60  ;;  %v77_v9 = vld [vmem:[%s6025_s1 + $0x150] sm:$0xff]  ;;  %v78_v24 = vld [vmem:[%s6025_s1 + $0x158] sm:$0xff] }
 0x37c   :  { %v2575_v0 = vpop.permute.xlu0 %2574  ;;  %v3190_v52 = vand.u32 4294901760, %v3189_v50  ;;  %v5810_v45 = vand.u32 4294901760, %v3103_v54  ;;  %v2812_v7 = vrot.slane %v2811_v15, 4  ;;  %v2643_v21 = vmul.f32 %v2570_v28, %v76_v13 }
 0x37d   :  { %v2520_v23 = vpop.permute.xlu1 %2519  ;;  %v5813_v49 = vsel %vm1112_vm4, %v2852_v43, %v3057_v47  ;;  %v5816_v53 = vsel %vm1114_vm5, %v2803_v46, %v3051_v31  ;;  %v2891_v63 = vrot.slane %v2890_v19, 2  ;;  %v5818_v22 = vadd.f32 %v2807_v48, %v2806_v57 }
 0x37e   :  { %3938 = vmatprep.mubr.f32.mxu0 %v3190_v52  ;;  %3956 = vmatmul.mubr.f32.vlgmr.msra.gmra.mxu1 %v5810_v45  ;;  %v2937_v20 = vsel %vm719_vm0, %v2643_v21, 0.0  ;;  %v2637_v4 = vmul.f32 %v2540_v36, %v70_v10  ;;  %v2632_v35 = vmul.f32 %v2515_v61, %v65_v37  ;;  %v2886_v60 = vrot.slane %v2885_v39, 1  ;;  %v71_v37 = vld [vmem:[%s6025_s1 + $0x120] sm:$0xff] }
 0x37f   :  { %v2879_v26 = vrot.slane %v2878_v33, 1  ;;  %v2933_v28 = vrot.slane %v5802_v55, 2  ;;  %v2813_v30 = vadd.f32 %v2812_v7, %v2811_v15  ;;  %3982 = vmatpush3.msra.mxu1 %v5511_v41  ;;  %v2858_v58 = vrot.slane %v5800_v14, 1 }
 0x380   :  { %v2545_v59 = vpop.permute.xlu0 %2544  ;;  %v2938_v5 = vrot.slane %v2937_v20, 4  ;;  %v2895_v61 = vsel %vm719_vm0, %v2637_v4, 0.0  ;;  %v2860_v11 = vsel %vm719_vm0, %v2632_v35, 0.0  ;;  %3983 = vmatprep.subr.mxu1 %v5526_v18  ;;  %v2892_v27 = vadd.f32 %v2891_v63, %v2890_v19  ;;  %v79_v35 = vld [vmem:[%s6025_s1 + $0x160] sm:$0xff] }
 0x381   :  { %v2580_v57 = vpop.permute.xlu1 %2579  ;;  %v2896_v36 = vrot.slane %v2895_v61, 4  ;;  %v2861_v34 = vrot.slane %v2860_v11, 4  ;;  %v5835_v56 = vsub.f32 %v3103_v54, %v5810_v45  ;;  %3984 = vmatpush3.msra.mxu1 %v5526_v18  ;;  %v2809_v25 = vrot.slane %v5818_v22, 1 }
 0x382   :  { %v2939_v47 = vadd.f32 %v2938_v5, %v2937_v20  ;;  %v2633_v17 = vmul.f32 %v2520_v23, %v66_v44  ;;  %v2644_v29 = vmul.f32 %v2575_v0, %v77_v9  ;;  %3985 = vmatprep.subr.mxu1 %v5544_v12  ;;  %v2814_v31 = vrot.slane %v2813_v30, 2 }
 0x383   :  { %v2897_v43 = vadd.f32 %v2896_v36, %v2895_v61  ;;  %v2862_v46 = vadd.f32 %v2861_v34, %v2860_v11  ;;  %v3198_v19 = vand.u32 4294901760, %v5835_v56  ;;  %3986 = vmatpush3.msra.mxu1 %v5544_v12  ;;  %v2645_v54 = vmul.f32 %v2580_v57, %v78_v24 }
 0x384   :  { %v2940_v13 = vrot.slane %v2939_v47, 2  ;;  %v2867_v48 = vsel %vm719_vm0, %v2633_v17, 0.0  ;;  %v2944_v50 = vsel %vm719_vm0, %v2644_v29, 0.0  ;;  %3987 = vmatprep.subr.mxu1 %v5556_v16  ;;  %v2893_v15 = vrot.slane %v2892_v27, 1  ;;  %v2550_v52 = vpop.permute.xlu0 %2549 }
 0x385   :  { %v2898_v23 = vrot.slane %v2897_v43, 2  ;;  %v3199_v0 = vsub.f32 %v5835_v56, %v3198_v19  ;;  %v2868_v10 = vrot.slane %v2867_v48, 4  ;;  %3988 = vmatpush3.msra.mxu1 %v5556_v16  ;;  %v2887_v7 = vadd.f32 %v2886_v60, %v2885_v39  ;;  %v2585_v4 = vpop.permute.xlu1 %2584 }
 0x386   :  { %v2880_v21 = vadd.f32 %v2879_v26, %v2878_v33  ;;  %v2863_v63 = vrot.slane %v2862_v46, 2  ;;  %v2945_v20 = vrot.slane %v2944_v50, 4  ;;  %4015 = vmatprep.subr.mxu1 %v5511_v41  ;;  %v5860_v44 = vadd.f32 %v2933_v28, %v5802_v55 }
 0x387   :  { %v2815_v9 = vadd.f32 %v2814_v31, %v2813_v30  ;;  %v2941_v5 = vadd.f32 %v2940_v13, %v2939_v47  ;;  %v3200_v61 = vand.u32 4294901760, %v3199_v0  ;;  %v2899_v11 = vadd.f32 %v2898_v23, %v2897_v43 }
 0x388   :  { %v2869_v57 = vadd.f32 %v2868_v10, %v2867_v48  ;;  %v2951_v39 = vsel %vm719_vm0, %v2645_v54, 0.0  ;;  %v2638_v33 = vmul.f32 %v2545_v59, %v71_v37  ;;  %v2859_v60 = vadd.f32 %v2858_v58, %v5800_v14  ;;  %v72_v14 = vld [vmem:[%s6025_s1 + $0x128] sm:$0xff] }
 0x389   :  { %v2810_v26 = vadd.f32 %v2809_v25, %v5818_v22  ;;  %v2894_v36 = vadd.f32 %v2893_v15, %v2892_v27  ;;  %3939 = vmatmul.mubr.f32.vlgmr.msra.gmra.mxu0 %v3200_v61  ;;  %v2646_v34 = vmul.f32 %v2585_v4, %v79_v35  ;;  %v3062_v24 = vsel %vm1106_vm1, %v2887_v7, %v2880_v21  ;;  %v2555_v22 = vpop.permute.xlu0 %2554  ;;  %v2590_v43 = vpop.permute.xlu1 %2589 }
 0x38a   :  { %v2864_v17 = vadd.f32 %v2863_v63, %v2862_v46  ;;  %v2946_v55 = vadd.f32 %v2945_v20, %v2944_v50  ;;  %v2902_v28 = vsel %vm719_vm0, %v2638_v33, 0.0  ;;  %3965 = vmatpush3.msra.mxu0 %v5519_v62  ;;  %v2935_v30 = vrot.slane %v5860_v44, 1  ;;  %v80_v62 = vld [vmem:[%s6025_s1 + $0x168] sm:$0xff]  ;;  %v73_v46 = vld [vmem:[%s6025_s1 + $0x130] sm:$0xff] }
 0x38b   :  { %v2816_v47 = vrot.slane %v2815_v9, 1  ;;  %v2952_v29 = vrot.slane %v2951_v39, 4  ;;  %v2903_v59 = vrot.slane %v2902_v28, 4  ;;  %3966 = vmatprep.subr.mxu0 %v5535_v6  ;;  %v2942_v58 = vrot.slane %v2941_v5, 1 }
 0x38c   :  { %v2900_v27 = vrot.slane %v2899_v11, 1  ;;  %v2870_v25 = vrot.slane %v2869_v57, 2  ;;  %v2958_v31 = vsel %vm719_vm0, %v2646_v34, 0.0  ;;  %3967 = vmatpush3.msra.mxu0 %v5535_v6  ;;  %v3059_v13 = vsel %vm1114_vm5, %v2859_v60, %v5813_v49 }
 0x38d   :  { %v3053_v48 = vsel %vm1116_vm6, %v2810_v26, %v5816_v53  ;;  %v3063_v50 = vsel %vm1108_vm2, %v2894_v36, %v3062_v24  ;;  %v2904_v54 = vadd.f32 %v2903_v59, %v2902_v28  ;;  %3968 = vmatprep.subr.mxu0 %v5559_v40  ;;  %v2865_v15 = vrot.slane %v2864_v17, 1  ;;  %v2560_v61 = vpop.permute.xlu0 %2559  ;;  %v2595_v33 = vpop.permute.xlu1 %2594  ;;  %v74_v24 = vld [vmem:[%s6025_s1 + $0x138] sm:$0xff] }
 0x38e   :  { %v2947_v23 = vrot.slane %v2946_v55, 2  ;;  %v2959_v0 = vrot.slane %v2958_v31, 4  ;;  %v2639_v10 = vmul.f32 %v2550_v52, %v72_v14  ;;  %3969 = vmatpush3.msra.mxu0 %v5559_v40  ;;  %v2817_v37 = vadd.f32 %v2816_v47, %v2815_v9  ;;  %v25_v9 = vld [vmem:[%s6026_s0 + $0x10] sm:$0xff] }
 0x38f   :  { %v2953_v7 = vadd.f32 %v2952_v29, %v2951_v39  ;;  %v2647_v6 = vmul.f32 %v2590_v43, %v80_v62  ;;  %v2640_v21 = vmul.f32 %v2555_v22, %v73_v46  ;;  %3970 = vmatprep.subr.mxu0 %v5567_v42  ;;  %v5889_v49 = vadd.f32 %v2942_v58, %v2941_v5 }
 0x390   :  { %v2901_v53 = vadd.f32 %v2900_v27, %v2899_v11  ;;  %v2871_v63 = vadd.f32 %v2870_v25, %v2869_v57  ;;  %v2909_v20 = vsel %vm719_vm0, %v2639_v10, 0.0  ;;  %3971 = vmatpush3.msra.mxu0 %v5567_v42  ;;  %v2905_v4 = vrot.slane %v2904_v54, 2  ;;  %v81_v42 = vld [vmem:[%s6025_s1 + $0x170] sm:$0xff] }
 0x391   :  { %v2910_v35 = vrot.slane %v2909_v20, 4  ;;  %v2965_v52 = vsel %vm719_vm0, %v2647_v6, 0.0  ;;  %v2916_v40 = vsel %vm719_vm0, %v2640_v21, 0.0  ;;  %3998 = vmatprep.subr.mxu0 %v5530_v3  ;;  %v2866_v5 = vadd.f32 %v2865_v15, %v2864_v17  ;;  %v82_v15 = vld [vmem:[%s6025_s1 + $0x178] sm:$0xff] }
 0x392   :  { %v5899_v11 = vadd.f32 %v2947_v23, %v2946_v55  ;;  %v2960_v57 = vadd.f32 %v2959_v0, %v2958_v31  ;;  %v2966_v39 = vrot.slane %v2965_v52, 4  ;;  %v2954_v60 = vrot.slane %v2953_v7, 2 }
 0x393   :  { %v2911_v26 = vadd.f32 %v2910_v35, %v2909_v20  ;;  %v2917_v36 = vrot.slane %v2916_v40, 4  ;;  %v3054_v34 = vsel %vm1118_vm7, %v2817_v37, %v3053_v48  ;;  %v5909_v17 = vsel %vm1110_vm3, %v2901_v53, %v3063_v50  ;;  %v2600_v50 = vpop.permute.xlu0 %2599 }
 0x394   :  { %v2872_v55 = vrot.slane %v2871_v63, 1  ;;  %v2967_v28 = vadd.f32 %v2966_v39, %v2965_v52  ;;  %v3084_v47 = vadd.f32 %v3054_v34, %v25_v9  ;;  %v2906_v29 = vadd.f32 %v2905_v4, %v2904_v54  ;;  %v26_v9 = vld [vmem:[%s6026_s0 + $0x18] sm:$0xff] }
 0x395   :  { %v2912_v59 = vrot.slane %v2911_v26, 2  ;;  %v2918_v14 = vadd.f32 %v2917_v36, %v2916_v40  ;;  %v2648_v22 = vmul.f32 %v2595_v33, %v81_v42  ;;  %v3060_v58 = vsel %vm1116_vm6, %v2866_v5, %v3059_v13 }
 0x396   :  { %v2961_v27 = vrot.slane %v2960_v57, 2  ;;  %v3106_v25 = vsel %vm719_vm0, %v3084_v47, 0  ;;  %v2641_v31 = vmul.f32 %v2560_v61, %v74_v24  ;;  %v2968_v62 = vrot.slane %v2967_v28, 2 }
 0x397   :  { %v2913_v43 = vadd.f32 %v2912_v59, %v2911_v26  ;;  %v2919_v46 = vrot.slane %v2918_v14, 2  ;;  %v5913_v48 = vand.u32 4294901760, %v3106_v25  ;;  %v2873_v54 = vadd.f32 %v2872_v55, %v2871_v63 }
 0x398   :  { %v2955_v23 = vadd.f32 %v2954_v60, %v2953_v7  ;;  %v2972_v0 = vsel %vm719_vm0, %v2648_v22, 0.0  ;;  %v2923_v13 = vsel %vm719_vm0, %v2641_v31, 0.0  ;;  %v2907_v10 = vrot.slane %v2906_v29, 1 }
 0x399   :  { %v2920_v37 = vadd.f32 %v2919_v46, %v2918_v14  ;;  %3958 = vmatprep.mubr.f32.mxu1 %v5913_v48  ;;  %v2973_v6 = vrot.slane %v2972_v0, 4  ;;  %v2924_v21 = vrot.slane %v2923_v13, 4  ;;  %v2949_v53 = vrot.slane %v5899_v11, 1 }
 0x39a   :  { %v2962_v20 = vadd.f32 %v2961_v27, %v2960_v57  ;;  %v2649_v4 = vmul.f32 %v2600_v50, %v82_v15  ;;  %v5923_v35 = vsub.f32 %v3106_v25, %v5913_v48  ;;  %v2914_v52 = vrot.slane %v2913_v43, 1 }
 0x39b   :  { %v2969_v63 = vadd.f32 %v2968_v62, %v2967_v28  ;;  %v2974_v7 = vadd.f32 %v2973_v6, %v2972_v0  ;;  %v2925_v40 = vadd.f32 %v2924_v21, %v2923_v13  ;;  %v2921_v61 = vrot.slane %v2920_v37, 1 }
 0x39c   :  { %v2979_v5 = vsel %vm719_vm0, %v2649_v4, 0.0  ;;  %v3208_v39 = vand.u32 4294901760, %v5923_v35  ;;  %v3061_v33 = vsel %vm1118_vm7, %v2873_v54, %v3060_v58  ;;  %v2956_v57 = vrot.slane %v2955_v23, 1 }
 0x39d   :  { %v2908_v42 = vadd.f32 %v2907_v10, %v2906_v29  ;;  %v2975_v60 = vrot.slane %v2974_v7, 2  ;;  %v2926_v26 = vrot.slane %v2925_v40, 2  ;;  %v2963_v36 = vrot.slane %v2962_v20, 1 }
 0x39e   :  { %v2980_v34 = vrot.slane %v2979_v5, 4  ;;  %v3209_v24 = vsub.f32 %v5923_v35, %v3208_v39  ;;  %v3085_v55 = vadd.f32 %v3061_v33, %v26_v9  ;;  %v2915_v28 = vadd.f32 %v2914_v52, %v2913_v43 }
 0x39f   :  { %v2970_v47 = vrot.slane %v2969_v63, 1  ;;  %v2976_v59 = vadd.f32 %v2975_v60, %v2974_v7  ;;  %v2927_v14 = vadd.f32 %v2926_v26, %v2925_v40  ;;  %v2922_v22 = vadd.f32 %v2921_v61, %v2920_v37  ;;  %v27_v37 = vld [vmem:[%s6026_s0 + $0x20] sm:$0xff] }
 0x3a0   :  { %v2981_v27 = vadd.f32 %v2980_v34, %v2979_v5  ;;  %v3210_v25 = vand.u32 4294901760, %v3209_v24  ;;  %v3109_v58 = vsel %vm719_vm0, %v3085_v55, 0  ;;  %v2950_v29 = vadd.f32 %v2949_v53, %v5899_v11  ;;  %v28_v5 = vld [vmem:[%s6026_s0 + $0x28] sm:$0xff] }
 0x3a1   :  { %v2977_v31 = vrot.slane %v2976_v59, 1  ;;  %v2928_v62 = vrot.slane %v2927_v14, 1  ;;  %v5936_v46 = vand.u32 4294901760, %v3109_v58  ;;  %v2936_v50 = vadd.f32 %v2935_v30, %v5860_v44 }
 0x3a2   :  { %v2957_v15 = vadd.f32 %v2956_v57, %v2955_v23  ;;  %v3065_v43 = vsel %vm1112_vm4, %v2908_v42, %v5909_v17  ;;  %v2982_v54 = vrot.slane %v2981_v27, 2  ;;  %3941 = vmatprep.mubr.f32.mxu0 %v3210_v25  ;;  %v2964_v0 = vadd.f32 %v2963_v36, %v2962_v20 }
 0x3a3   :  { %v3066_v13 = vsel %vm1114_vm5, %v2915_v28, %v3065_v43  ;;  %v2929_v10 = vadd.f32 %v2928_v62, %v2927_v14  ;;  %3959 = vmatmul.mubr.f32.gmra.mxu1 %v5936_v46  ;;  %v3217_v11 = vsub.f32 %v3109_v58, %v5936_v46  ;;  %v3069_v44 = vsel %vm1106_vm1, %v5889_v49, %v2936_v50 }
 0x3a4   :  { %v2971_v30 = vadd.f32 %v2970_v47, %v2969_v63  ;;  %v3067_v17 = vsel %vm1116_vm6, %v2922_v22, %v3066_v13  ;;  %v2983_v23 = vadd.f32 %v2982_v54, %v2981_v27  ;;  %v3070_v6 = vsel %vm1108_vm2, %v2950_v29, %v3069_v44 }
 0x3a5   :  { %v2978_v21 = vadd.f32 %v2977_v31, %v2976_v59  ;;  %v3218_v53 = vand.u32 4294901760, %v3217_v11  ;;  %v3068_v20 = vsel %vm1118_vm7, %v2929_v10, %v3067_v17  ;;  %v3071_v4 = vsel %vm1110_vm3, %v2957_v15, %v3070_v6 }
 0x3a6   :  { %v2984_v52 = vrot.slane %v2983_v23, 1  ;;  %v3086_v7 = vadd.f32 %v3068_v20, %v27_v37  ;;  %v3072_v40 = vsel %vm1112_vm4, %v2964_v0, %v3071_v4 }
 0x3a7   :  { %v3219_v9 = vsub.f32 %v3217_v11, %v3218_v53  ;;  %v3073_v61 = vsel %vm1114_vm5, %v2971_v30, %v3072_v40 }
 0x3a8   :  { %v2985_v49 = vadd.f32 %v2984_v52, %v2983_v23  ;;  %v3112_v63 = vsel %vm719_vm0, %v3086_v7, 0  ;;  %v3074_v33 = vsel %vm1116_vm6, %v2978_v21, %v3073_v61 }
 0x3a9   :  { %v3220_v57 = vand.u32 4294901760, %v3219_v9  ;;  %v3226_v42 = vand.u32 4294901760, %v3112_v63 }
 0x3aa   :  { %v3075_v60 = vsel %vm1118_vm7, %v2985_v49, %v3074_v33 }
 0x3ab   :  { %3942 = vmatmul.mubr.f32.gmra.mxu0 %v3220_v57  ;;  %3961 = vmatprep.mubr.f32.mxu1 %v3226_v42  ;;  %v3087_v26 = vadd.f32 %v3075_v60, %v28_v5  ;;  %v3227_v36 = vsub.f32 %v3112_v63, %v3226_v42 }
 0x3ad   :  { %v3115_v34 = vsel %vm719_vm0, %v3087_v26, 0  ;;  %v3228_v24 = vand.u32 4294901760, %v3227_v36 }
 0x3ae   :  { %v3236_v55 = vand.u32 4294901760, %v3115_v34 }
 0x3af   :  { %v3229_v28 = vsub.f32 %v3227_v36, %v3228_v24 }
 0x3b0   :  { %3962 = vmatmul.mubr.f32.gmra.mxu1 %v3236_v55  ;;  %v3237_v47 = vsub.f32 %v3115_v34, %v3236_v55 }
 0x3b1   :  { %3989 = vmatprep.mubr.f32.mxu1 %v3188_v38  ;;  %v3230_v59 = vand.u32 4294901760, %v3229_v28 }
 0x3b2   :  { %v3238_v14 = vand.u32 4294901760, %v3237_v47 }
 0x3b3   :  { %3944 = vmatprep.mubr.f32.mxu0 %v3230_v59 }
 0x3b4   :  { %3990 = vmatmul.mubr.f32.vlgmr.msra.gmra.mxu1 %v3198_v19  ;;  %v3239_v22 = vsub.f32 %v3237_v47, %v3238_v14 }
 0x3b5   :  { %3992 = vmatprep.mubr.f32.mxu1 %v3208_v39  ;;  %4016 = vmatpush3.msra.mxu1 %v5511_v41 }
 0x3b6   :  { %v3240_v27 = vand.u32 4294901760, %v3239_v22  ;;  %4017 = vmatprep.subr.mxu1 %v5526_v18 }
 0x3b7   :  { %4018 = vmatpush3.msra.mxu1 %v5526_v18 }
 0x3b8   :  { %3945 = vmatmul.mubr.f32.gmra.mxu0 %v3240_v27  ;;  %3993 = vmatmul.mubr.f32.gmra.mxu1 %v3218_v53 }
 0x3b9   :  { %3972 = vmatprep.mubr.f32.mxu0 %v5786_v32  ;;  %3995 = vmatprep.mubr.f32.mxu1 %v3228_v24 }
 0x3ba   :  { %4019 = vmatprep.subr.mxu1 %v5544_v12 }
 0x3bb   :  { %4020 = vmatpush3.msra.mxu1 %v5544_v12 }
 0x3bc   :  { %3973 = vmatmul.mubr.f32.vlgmr.msra.gmra.mxu0 %v5835_v56  ;;  %3996 = vmatmul.mubr.f32.gmra.mxu1 %v3238_v14 }
 0x3bd   :  { %3999 = vmatpush3.msra.mxu0 %v5530_v3  ;;  %3975 = vmatprep.mubr.f32.mxu0 %v5923_v35 }
 0x3be   :  { %4023 = vmatprep.mubr.f32.mxu1 %v5771_v1  ;;  %4000 = vmatprep.subr.mxu0 %v5554_v8 }
 0x3bf   :  { %4021 = vmatprep.subr.mxu1 %v5556_v16  ;;  %4001 = vmatpush3.msra.mxu0 %v5554_v8 }
 0x3c0   :  { %4022 = vmatpush3.msra.mxu1 %v5556_v16  ;;  %3976 = vmatmul.mubr.f32.gmra.mxu0 %v3217_v11 }
 0x3c1   :  { %4024 = vmatmul.mubr.f32.vlgmr.msra.gmra.mxu1 %v5810_v45  ;;  %3978 = vmatprep.mubr.f32.mxu0 %v3227_v36 }
 0x3c2   :  { %4002 = vmatprep.subr.mxu0 %v5574_v2  ;;  %4026 = vmatprep.mubr.f32.mxu1 %v5913_v48 }
 0x3c3   :  { %4003 = vmatpush3.msra.mxu0 %v5574_v2 }
 0x3c4   :  { %3979 = vmatmul.mubr.f32.gmra.mxu0 %v3237_v47  ;;  %4004 = vmatprep.subr.mxu0 %v5579_v51 }
 0x3c5   :  { %4027 = vmatmul.mubr.f32.gmra.mxu1 %v5936_v46  ;;  %4005 = vmatpush3.msra.mxu0 %v5579_v51 }
 0x3c6   :  { %4006 = vmatprep.mubr.f32.mxu0 %v5771_v1  ;;  %4029 = vmatprep.mubr.f32.mxu1 %v3226_v42 }
 0x3c8   :  { %4007 = vmatmul.mubr.f32.vlgmr.msra.gmra.mxu0 %v5810_v45 }
 0x3c9   :  { %4030 = vmatmul.mubr.f32.gmra.mxu1 %v3236_v55  ;;  %4009 = vmatprep.mubr.f32.mxu0 %v5913_v48  ;;  %v3863_v48 = vld [vmem:[%s6027_s5] ss:$0 sm:$0xff] }
 0x3cc   :  { %4010 = vmatmul.mubr.f32.gmra.mxu0 %v5936_v46 }
 0x3cd   :  { %4012 = vmatprep.mubr.f32.mxu0 %v3226_v42 }
 0x3d0   :  { %4013 = vmatmul.mubr.f32.gmra.mxu0 %v3236_v55 }
 0x43e   :  { %v3957_v41 = vpop.f32.mrf.mxu1 }
 0x440   :  { %v3333_v18 = vpop.f32.mrf.mxu1 }
 0x449   :  { %v3940_v12 = vpop.f32.mrf.mxu0 }
 0x44a   :  { %v3203_v29 = vadd.f32 %v3940_v12, %v3863_v48 }
 0x44b   :  { %v3192_v16 = vpop.f32.mrf.mxu0 }
 0x44c   :  { %v3193_v46 = vadd.f32 %v3863_v48, %v3192_v16  ;;  %v3340_v43 = vadd.f32 %v3957_v41, %v3203_v29 }
 0x44e   :  { %v3334_v11 = vadd.f32 %v3333_v18, %v3193_v46 }
 0x463   :  { %v3960_v3 = vpop.f32.mrf.mxu1 }
 0x465   :  { %v3345_v8 = vpop.f32.mrf.mxu1 }
 0x46b   :  { %v3943_v51 = vpop.f32.mrf.mxu0 }
 0x46c   :  { %v3223_v15 = vadd.f32 %v3943_v51, %v3863_v48 }
 0x46d   :  { %v3212_v38 = vpop.f32.mrf.mxu0 }
 0x46e   :  { %v3213_v13 = vadd.f32 %v3863_v48, %v3212_v38  ;;  %v3352_v23 = vadd.f32 %v3960_v3, %v3223_v15 }
 0x470   :  { %v3963_v2 = vpop.f32.mrf.mxu1  ;;  %v3346_v20 = vadd.f32 %v3345_v8, %v3213_v13 }
 0x472   :  { %v3357_v32 = vpop.f32.mrf.mxu1 }
 0x474   :  { %v3991_v1 = vpop.f32.mrf.mxu1 }
 0x476   :  { %v3555_v56 = vpop.f32.mrf.mxu1 }
 0x478   :  { %v3946_v45 = vpop.f32.mrf.mxu0  ;;  %v3994_v19 = vpop.f32.mrf.mxu1 }
 0x479   :  { %v3243_v37 = vadd.f32 %v3946_v45, %v3863_v48 }
 0x47a   :  { %v3232_v35 = vpop.f32.mrf.mxu0  ;;  %v3571_v39 = vpop.f32.mrf.mxu1 }
 0x47b   :  { %v3233_v6 = vadd.f32 %v3863_v48, %v3232_v35  ;;  %v3364_v52 = vadd.f32 %v3963_v2, %v3243_v37 }
 0x47c   :  { %v3974_v25 = vpop.f32.mrf.mxu0  ;;  %v3997_v58 = vpop.f32.mrf.mxu1 }
 0x47d   :  { %v3451_v10 = vadd.f32 %v3974_v25, %v3340_v43  ;;  %v3358_v5 = vadd.f32 %v3357_v32, %v3233_v6 }
 0x47e   :  { %v3443_v31 = vpop.f32.mrf.mxu0  ;;  %v3587_v62 = vpop.f32.mrf.mxu1 }
 0x47f   :  { %v3444_v17 = vadd.f32 %v3443_v31, %v3334_v11  ;;  %v3564_v4 = vadd.f32 %v3991_v1, %v3451_v10 }
 0x480   :  { %v3977_v50 = vpop.f32.mrf.mxu0 }
 0x481   :  { %v4025_v54 = vpop.f32.mrf.mxu1  ;;  %v3465_v53 = vadd.f32 %v3977_v50, %v3352_v23  ;;  %v3556_v49 = vadd.f32 %v3555_v56, %v3444_v17 }
 0x482   :  { %v3457_v0 = vpop.f32.mrf.mxu0 }
 0x483   :  { %v3783_v44 = vpop.f32.mrf.mxu1  ;;  %v3458_v9 = vadd.f32 %v3457_v0, %v3346_v20  ;;  %v3580_v60 = vadd.f32 %v3994_v19, %v3465_v53 }
 0x484   :  { %v3980_v30 = vpop.f32.mrf.mxu0 }
 0x485   :  { %v4028_v7 = vpop.f32.mrf.mxu1  ;;  %v3479_v63 = vadd.f32 %v3980_v30, %v3364_v52  ;;  %v3572_v47 = vadd.f32 %v3571_v39, %v3458_v9 }
 0x486   :  { %v3471_v21 = vpop.f32.mrf.mxu0 }
 0x487   :  { %v3472_v26 = vadd.f32 %v3471_v21, %v3358_v5  ;;  %v3795_v36 = vpop.f32.mrf.mxu1  ;;  %v3596_v14 = vadd.f32 %v3997_v58, %v3479_v63 }
 0x488   :  { %v4008_v40 = vpop.f32.mrf.mxu0 }
 0x489   :  { %v3685_v61 = vadd.f32 %v4008_v40, %v3564_v4  ;;  %v4031_v18 = vpop.f32.mrf.mxu1  ;;  %v3588_v12 = vadd.f32 %v3587_v62, %v3472_v26 }
 0x48a   :  { %v3678_v33 = vpop.f32.mrf.mxu0 }
 0x48b   :  { %v3790_v57 = vadd.f32 %v4025_v54, %v3685_v61  ;;  %v3679_v42 = vadd.f32 %v3678_v33, %v3556_v49  ;;  %v3807_v56 = vpop.f32.mrf.mxu1 }
 0x48c   :  { %v4011_v34 = vpop.f32.mrf.mxu0 }
 0x48d   :  { %v3865_v24 = vmul.f32 -1.442695, %v3790_v57  ;;  %v3784_v55 = vadd.f32 %v3783_v44, %v3679_v42  ;;  %v3697_v28 = vadd.f32 %v4011_v34, %v3580_v60 }
 0x48e   :  { %v3690_v59 = vpop.f32.mrf.mxu0 }
 0x48f   :  { %4234 = vpow2.f32 %v3865_v24  ;;  %v3864_v22 = vmul.f32 -1.442695, %v3784_v55  ;;  %v3802_v27 = vadd.f32 %v4028_v7, %v3697_v28  ;;  %v3691_v41 = vadd.f32 %v3690_v59, %v3572_v47 }
 0x490   :  { %v4014_v3 = vpop.f32.mrf.mxu0 }
 0x491   :  { %4236 = vpow2.f32 %v3864_v22  ;;  %v3867_v8 = vmul.f32 -1.442695, %v3802_v27  ;;  %v3796_v16 = vadd.f32 %v3795_v36, %v3691_v41  ;;  %v3709_v2 = vadd.f32 %v4014_v3, %v3596_v14 }
 0x492   :  { %v3702_v51 = vpop.f32.mrf.mxu0 }
 0x493   :  { %4238 = vpow2.f32 %v3867_v8  ;;  %v3866_v32 = vmul.f32 -1.442695, %v3796_v16  ;;  %v3814_v1 = vadd.f32 %v4031_v18, %v3709_v2  ;;  %v3703_v38 = vadd.f32 %v3702_v51, %v3588_v12 }
 0x495   :  { %4240 = vpow2.f32 %v3866_v32  ;;  %v3869_v45 = vmul.f32 -1.442695, %v3814_v1  ;;  %v3808_v19 = vadd.f32 %v3807_v56, %v3703_v38 }
 0x497   :  { %4242 = vpow2.f32 %v3869_v45  ;;  %v3868_v48 = vmul.f32 -1.442695, %v3808_v19 }
 0x499   :  { %4244 = vpow2.f32 %v3868_v48 }
 0x49c   :  { %v4235_v35 = vpop.eup %4234 }
 0x49d   :  { %v3836_v39 = vadd.f32 1.0, %v4235_v35 }
 0x49e   :  { %v4237_v25 = vpop.eup %4236 }
 0x49f   :  { %4246 = vrcp.f32 %v3836_v39  ;;  %v3835_v58 = vadd.f32 1.0, %v4237_v25 }
 0x4a0   :  { %v4239_v29 = vpop.eup %4238 }
 0x4a1   :  { %4248 = vrcp.f32 %v3835_v58  ;;  %v3838_v31 = vadd.f32 1.0, %v4239_v29 }
 0x4a2   :  { %v4241_v62 = vpop.eup %4240 }
 0x4a3   :  { %4250 = vrcp.f32 %v3838_v31  ;;  %v3837_v46 = vadd.f32 1.0, %v4241_v62 }
 0x4a4   :  { %v4243_v50 = vpop.eup %4242 }
 0x4a5   :  { %4252 = vrcp.f32 %v3837_v46  ;;  %v3840_v15 = vadd.f32 1.0, %v4243_v50 }
 0x4a6   :  { %v4245_v43 = vpop.eup %4244 }
 0x4a7   :  { %4254 = vrcp.f32 %v3840_v15  ;;  %v3839_v54 = vadd.f32 1.0, %v4245_v43 }
 0x4a9   :  { %4256 = vrcp.f32 %v3839_v54 }
 0x4ac   :  { %v4247_v0 = vpop.eup %4246 }
 0x4ad   :  { %3854 = vst.msk [vmem:[%s6028_s6 + $0x8] sm:$0xff] %vm719_vm0, %v4247_v0 }
 0x4ae   :  { %v4249_v13 = vpop.eup %4248 }
 0x4af   :  { %3853 = vst.msk [vmem:[%s6028_s6] sm:$0xff] %vm719_vm0, %v4249_v13 }
 0x4b0   :  { %v4251_v10 = vpop.eup %4250 }
 0x4b1   :  { %3856 = vst.msk [vmem:[%s6028_s6 + $0x18] sm:$0xff] %vm719_vm0, %v4251_v10 }
 0x4b2   :  { %v4253_v11 = vpop.eup %4252 }
 0x4b3   :  { %3855 = vst.msk [vmem:[%s6028_s6 + $0x10] sm:$0xff] %vm719_vm0, %v4253_v11 }
 0x4b4   :  { %v4255_v37 = vpop.eup %4254 }
 0x4b5   :  { %3858 = vst.msk [vmem:[%s6028_s6 + $0x28] sm:$0xff] %vm719_vm0, %v4255_v37 }
 0x4b6   :  { %v4257_v44 = vpop.eup %4256 }
 0x4b7   :  { %3857 = vst.msk [vmem:[%s6028_s6 + $0x20] sm:$0xff] %vm719_vm0, %v4257_v44 }

</bundles_post_ra>
